<compile_context>
chip_gen: v6e
topology: v6e:2x2x1
jax: 0.10.0
libtpu: 0.0.40
codegen_flags: <defaults>
</compile_context>

<pallas_src>
import functools
import math

import jax
import jax.numpy as jnp
from jax.experimental import pallas as pl
from jax.experimental.pallas import tpu as pltpu


# ----------------------------------------------------------------------------
# Fused decoder-block kernel: self-attn + LN, cross-attn + LN, FFN + LN
# (whole batch resident in VMEM; batch folded into the matmul M axis)
# ----------------------------------------------------------------------------
def _decoder_block_kernel(
        x_ref, ke_ref, ve_ref, sbias_ref, tbias_ref,
        sa_wq, sa_bq, sa_wk, sa_bk, sa_wv, sa_bv, sa_wfc, sa_bfc, sa_g, sa_b,
        ca_wq, ca_bq, ca_wk, ca_bk, ca_wv, ca_bv, ca_wfc, ca_bfc, ca_g, ca_b,
        w1_ref, b1_ref, w2_ref, b2_ref, f_g, f_b,
        *out_refs,
        batch, seq_q, seq_k, n_heads, atten_size, eps):
    H, A = n_heads, atten_size
    scale = 1.0 / math.sqrt(A)
    bf16, f32 = jnp.bfloat16, jnp.float32

    def layernorm(y, g_r, b_r):
        # NOTE: eps == n_dim reproduces nn.LayerNorm(n_dim, n_dim) exactly
        # (the second positional argument of nn.LayerNorm is eps).
        mu = jnp.mean(y, axis=-1, keepdims=True)
        var = jnp.mean(jnp.square(y - mu), axis=-1, keepdims=True)
        return (y - mu) * jax.lax.rsqrt(var + eps) * g_r[...] + b_r[...]

    def mha(xq, xk, xv, bias, sq, sk,
            wq_r, bq_r, wk_r, bk_r, wv_r, bv_r, wfc_r, bfc_r):
        # Lane-dense (B*S, D) x (D, D) projections; per-head shared weights
        # were expanded to block-diagonal form in the wrapper.  bf16 operands,
        # f32 accumulation.
        q = jnp.dot(xq.astype(bf16), wq_r[...], preferred_element_type=f32) + bq_r[...]
        k = jnp.dot(xk.astype(bf16), wk_r[...], preferred_element_type=f32) + bk_r[...]
        v = jnp.dot(xv.astype(bf16), wv_r[...], preferred_element_type=f32) + bv_r[...]
        q = q.astype(bf16)
        k = k.astype(bf16)
        v = v.astype(bf16)
        batch_outs = []
        for b in range(batch):            # static unroll (small B)
            rq = slice(b * sq, (b + 1) * sq)
            rk = slice(b * sk, (b + 1) * sk)
            head_outs = []
            for h in range(H):            # static unroll (small H)
                c = slice(h * A, (h + 1) * A)
                # scores: contract the A axes directly — no materialized k.T
                e = jax.lax.dot_general(
                    q[rq, c], k[rk, c],
                    dimension_numbers=(((1,), (1,)), ((), ())),
                    preferred_element_type=f32)
                e = e * scale + bias[b]                      # additive mask
                e = e - jnp.max(e, axis=-1, keepdims=True)
                p = jnp.exp(e)
                # softmax denominator on the EUP (reciprocal), not a VALU divide
                p = p * pl.reciprocal(jnp.sum(p, axis=-1, keepdims=True),
                                      approx=True)
                head_outs.append(jnp.dot(p.astype(bf16), v[rk, c],
                                         preferred_element_type=f32))
            batch_outs.append(jnp.concatenate(head_outs, axis=-1))  # (sq, D)
        att = (jnp.concatenate(batch_outs, axis=0)
               if batch > 1 else batch_outs[0])                     # (B*sq, D)
        # single (B*sq, D) x (D, D) output projection over concatenated heads
        return (jnp.dot(att.astype(bf16), wfc_r[...],
                        preferred_element_type=f32) + bfc_r[...])

    x = x_ref[...]            # (B*Sq, D) f32   decoder activations / residual
    ke = ke_ref[...]          # (B*Sk, D)       encoder keys
    ve = ve_ref[...]          # (B*Sk, D)       encoder values
    sbias = sbias_ref[...]    # (B, Sq, Sk)     additive mask bias (0 / -1e20)
    tbias = tbias_ref[...]    # (B, Sq, Sq)

    # 1) masked self-attention + residual + LN       (dropout == identity)
    fst = layernorm(
        mha(x, x, x, tbias, seq_q, seq_q,
            sa_wq, sa_bq, sa_wk, sa_bk, sa_wv, sa_bv, sa_wfc, sa_bfc) + x,
        sa_g, sa_b)
    # 2) encoder-decoder attention + residual + LN
    snd = layernorm(
        mha(fst, ke, ve, sbias, seq_q, seq_k,
            ca_wq, ca_bq, ca_wk, ca_bk, ca_wv, ca_bv, ca_wfc, ca_bfc) + fst,
        ca_g, ca_b)
    # 3) feed-forward + residual + LN
    hdn = jnp.maximum(
        jnp.dot(snd.astype(bf16), w1_ref[...],
                preferred_element_type=f32) + b1_ref[...], 0.0)
    y = (jnp.dot(hdn.astype(bf16), w2_ref[...],
                 preferred_element_type=f32) + b2_ref[...] + snd)
    out_refs[0][...] = layernorm(y, f_g, f_b)
    if len(out_refs) == 2:            # snd only requested by extra_decoder
        out_refs[1][...] = snd


def _linear_kernel(x_ref, w_ref, b_ref, o_ref):
    o_ref[...] = (jnp.dot(x_ref[...].astype(jnp.bfloat16), w_ref[...],
                          preferred_element_type=jnp.float32) + b_ref[...])


# ----------------------------------------------------------------------------
# Wrappers (pallas_call plumbing)
# ----------------------------------------------------------------------------
def _vmem_limit(raw_bytes):
    # Generous headroom for in-kernel intermediates; clamp so the scoped limit
    # stays below v7x's 64 MiB physical VMEM and above v5e's 16 MiB default.
    return int(min(max(4 * raw_bytes + (2 << 20), 16 << 20), 48 << 20))


def decoder_block(x, key_enc, value_enc, src_bias, trg_bias, bp, *,
                  n_heads, eps, return_extra=False):
    B, Sq, D = x.shape
    Sk = key_enc.shape[1]
    A = D // n_heads
    sa, ca, ff = bp["self_attn"], bp["cross_attn"], bp["ffn"]

    # Fold batch into the matmul M axis; masks stay per-batch for the scores.
    x2 = x.reshape(B * Sq, D)
    ke2 = key_enc.reshape(B * Sk, D)
    ve2 = value_enc.reshape(B * Sk, D)

    kernel = functools.partial(
        _decoder_block_kernel,
        batch=B, seq_q=Sq, seq_k=Sk, n_heads=n_heads, atten_size=A, eps=eps)

    inputs = (x2, ke2, ve2, src_bias, trg_bias,
              sa["wq"], sa["bq"], sa["wk"], sa["bk"], sa["wv"], sa["bv"],
              sa["wfc"], sa["bfc"], sa["gamma"], sa["beta"],
              ca["wq"], ca["bq"], ca["wk"], ca["bk"], ca["wv"], ca["bv"],
              ca["wfc"], ca["bfc"], ca["gamma"], ca["beta"],
              ff["w1"], ff["b1"], ff["w2"], ff["b2"], ff["gamma"], ff["beta"])

    n_out = 2 if return_extra else 1
    struct = jax.ShapeDtypeStruct((B * Sq, D), jnp.float32)
    out_shape = (struct, struct) if return_extra else struct

    raw_bytes = (sum(int(a.size) * a.dtype.itemsize for a in inputs)
                 + n_out * B * Sq * D * 4)

    result = pl.pallas_call(
        kernel,
        out_shape=out_shape,
        compiler_params=pltpu.CompilerParams(
            vmem_limit_bytes=_vmem_limit(raw_bytes)),
    )(*inputs)

    if return_extra:
        out, snd = result
        return out.reshape(B, Sq, D), snd.reshape(B, Sq, D)
    return result.reshape(B, Sq, D)


def linear_out(x, p):
    # fc_out: fold (B, S) into the sublane axis -> lane-dense (B*S, V) output.
    B, S, D = x.shape
    V = p["w"].shape[1]
    M = B * S
    x2 = x.reshape(M, D)
    tm = M if M <= 512 else 512          # large row tiles (full if small)
    tv = V if V <= 1024 else 1024        # lane-dense vocab tiles
    tile_bytes = 2 * (tm * D * 4 + D * tv * 2 + tv * 4 + tm * tv * 4)
    out = pl.pallas_call(
        _linear_kernel,
        out_shape=jax.ShapeDtypeStruct((M, V), jnp.float32),
        grid=(pl.cdiv(M, tm), pl.cdiv(V, tv)),
        in_specs=[
            pl.BlockSpec((tm, D), lambda i, j: (i, 0)),
            pl.BlockSpec((D, tv), lambda i, j: (0, j)),
            pl.BlockSpec((1, tv), lambda i, j: (0, j)),
        ],
        out_specs=pl.BlockSpec((tm, tv), lambda i, j: (i, j)),
        compiler_params=pltpu.CompilerParams(
            dimension_semantics=("parallel", "parallel"),
            vmem_limit_bytes=_vmem_limit(tile_bytes)),
    )(x2, p["w"], p["b"])
    return out.reshape(B, S, V)


# ----------------------------------------------------------------------------
# Model glue (plain JAX)
# ----------------------------------------------------------------------------
def embed(input_ids, token_type_ids, ep):
    # TODO(synk): the embedding module is external to Decoder; modeled here as a
    # BERT-style embedding (word + position + token_type, then LayerNorm).
    S = input_ids.shape[1]
    pos = jnp.arange(S)
    x = ep["word"][input_ids] + ep["pos"][pos][None, :, :] + ep["type"][token_type_ids]
    mu = jnp.mean(x, axis=-1, keepdims=True)
    var = jnp.mean((x - mu) ** 2, axis=-1, keepdims=True)
    return (x - mu) / jnp.sqrt(var + 1e-12) * ep["gamma"] + ep["beta"]


def decoder_forward(input_ids, token_type_ids, key_enc, value_enc,
                    src_mask, trg_mask, params, return_extra=False):
    x = embed(input_ids, token_type_ids, params["embedding"])
    eps = params["ln_eps"]
    H = params["n_heads"]
    # additive mask biases (0 / -1e20) computed once and reused by every block
    src_bias = jnp.where(src_mask == 0.0, jnp.float32(-1e20), jnp.float32(0.0))
    trg_bias = jnp.where(trg_mask == 0.0, jnp.float32(-1e20), jnp.float32(0.0))
    for bp in params["decoders"]:
        x = decoder_block(x, key_enc, value_enc, src_bias, trg_bias, bp,
                          n_heads=H, eps=eps)
    s_t, q_t = decoder_block(x, key_enc, value_enc, src_bias, trg_bias,
                             params["extra_decoder"], n_heads=H, eps=eps,
                             return_extra=True)
    logits = linear_out(s_t, params["fc_out"])
    if return_extra:
        return logits, s_t, q_t
    return logits


# ----------------------------------------------------------------------------
# Deterministic parameter initialization (PyTorch layout) + kernel-ready prep
# ----------------------------------------------------------------------------
def _init_attn(key, D, A):
    ks = jax.random.split(key, 10)
    s = 0.1
    return dict(
        wq=s * jax.random.normal(ks[0], (A, A), jnp.float32),
        bq=0.01 * jax.random.normal(ks[1], (1, A), jnp.float32),
        wk=s * jax.random.normal(ks[2], (A, A), jnp.float32),
        bk=0.01 * jax.random.normal(ks[3], (1, A), jnp.float32),
        wv=s * jax.random.normal(ks[4], (A, A), jnp.float32),
        bv=0.01 * jax.random.normal(ks[5], (1, A), jnp.float32),
        wfc=s * jax.random.normal(ks[6], (D, D), jnp.float32),
        bfc=0.01 * jax.random.normal(ks[7], (1, D), jnp.float32),
        gamma=jnp.ones((1, D), jnp.float32),
        beta=jnp.zeros((1, D), jnp.float32),
    )


def _init_ffn(key, D, F):
    ks = jax.random.split(key, 4)
    s = 0.1
    return dict(
        w1=s * jax.random.normal(ks[0], (D, F), jnp.float32),
        b1=0.01 * jax.random.normal(ks[1], (1, F), jnp.float32),
        w2=s * jax.random.normal(ks[2], (F, D), jnp.float32),
        b2=0.01 * jax.random.normal(ks[3], (1, D), jnp.float32),
        gamma=jnp.ones((1, D), jnp.float32),
        beta=jnp.zeros((1, D), jnp.float32),
    )


def _init_block(key, D, F, A):
    k1, k2, k3 = jax.random.split(key, 3)
    return dict(self_attn=_init_attn(k1, D, A),
                cross_attn=_init_attn(k2, D, A),
                ffn=_init_ffn(k3, D, F))


def init_params(key, *, n_vocab, n_dim, n_heads, forward_expansion,
                n_decoders, max_pos):
    A = n_dim // n_heads
    ks = jax.random.split(key, n_decoders + 3)
    embedding = dict(
        word=0.1 * jax.random.normal(ks[0], (n_vocab, n_dim), jnp.float32),
        pos=0.1 * jax.random.normal(jax.random.fold_in(ks[0], 1),
                                    (max_pos, n_dim), jnp.float32),
        type=0.1 * jax.random.normal(jax.random.fold_in(ks[0], 2),
                                     (2, n_dim), jnp.float32),
        gamma=jnp.ones((n_dim,), jnp.float32),
        beta=jnp.zeros((n_dim,), jnp.float32),
    )
    decoders = [_init_block(ks[1 + i], n_dim, forward_expansion, A)
                for i in range(n_decoders - 1)]
    extra = _init_block(ks[n_decoders], n_dim, forward_expansion, A)
    fc_out = dict(
        w=0.1 * jax.random.normal(ks[n_decoders + 1], (n_dim, n_vocab), jnp.float32),
        b=0.01 * jax.random.normal(ks[n_decoders + 2], (1, n_vocab), jnp.float32),
    )
    return dict(embedding=embedding, decoders=decoders, extra_decoder=extra,
                fc_out=fc_out,
                # nn.LayerNorm(n_dim, n_dim): the second positional arg is eps.
                ln_eps=float(n_dim))


def prepare_params(params, n_heads):
    """One-time, host/XLA-side conversion to kernel-ready form:
    block-diagonal Q/K/V weights (kron(I_H, W) -> one lane-dense (D, D)
    matmul per projection), head-tiled biases, bf16 weight storage (halves
    weight DMA bytes; matmuls accumulate in f32)."""
    H = n_heads
    eye = jnp.eye(H, dtype=jnp.float32)

    def prep_attn(a):
        return dict(
            wq=jnp.kron(eye, a["wq"]).astype(jnp.bfloat16),
            bq=jnp.tile(a["bq"], (1, H)),
            wk=jnp.kron(eye, a["wk"]).astype(jnp.bfloat16),
            bk=jnp.tile(a["bk"], (1, H)),
            wv=jnp.kron(eye, a["wv"]).astype(jnp.bfloat16),
            bv=jnp.tile(a["bv"], (1, H)),
            wfc=a["wfc"].astype(jnp.bfloat16),
            bfc=a["bfc"], gamma=a["gamma"], beta=a["beta"])

    def prep_ffn(f):
        return dict(w1=f["w1"].astype(jnp.bfloat16), b1=f["b1"],
                    w2=f["w2"].astype(jnp.bfloat16), b2=f["b2"],
                    gamma=f["gamma"], beta=f["beta"])

    def prep_block(bp):
        return dict(self_attn=prep_attn(bp["self_attn"]),
                    cross_attn=prep_attn(bp["cross_attn"]),
                    ffn=prep_ffn(bp["ffn"]))

    return dict(
        embedding=params["embedding"],
        decoders=[prep_block(b) for b in params["decoders"]],
        extra_decoder=prep_block(params["extra_decoder"]),
        fc_out=dict(w=params["fc_out"]["w"].astype(jnp.bfloat16),
                    b=params["fc_out"]["b"]),
        ln_eps=params["ln_eps"],
        n_heads=n_heads)


# ----------------------------------------------------------------------------
if __name__ == "__main__":
    B, S_DEC, S_ENC = 2, 8, 8
    N_DIM, N_HEADS, FWD_EXP = 32, 4, 64
    N_VOCAB, N_DECODERS = 64, 2

    root = jax.random.PRNGKey(0)
    kp, k_ids, k_key, k_val = jax.random.split(root, 4)

    params = init_params(kp, n_vocab=N_VOCAB, n_dim=N_DIM, n_heads=N_HEADS,
                         forward_expansion=FWD_EXP, n_decoders=N_DECODERS,
                         max_pos=S_DEC)
    kparams = prepare_params(params, N_HEADS)

    input_ids = jax.random.randint(k_ids, (B, S_DEC), 0, N_VOCAB)
    token_type_ids = jnp.zeros((B, S_DEC), jnp.int32)
    key_enc = jax.random.normal(k_key, (B, S_ENC, N_DIM), jnp.float32)
    value_enc = jax.random.normal(k_val, (B, S_ENC, N_DIM), jnp.float32)

    # masks: 0 => masked (filled with -1e20), broadcast over heads
    trg_mask = jnp.broadcast_to(jnp.tril(jnp.ones((S_DEC, S_DEC), jnp.float32)),
                                (B, S_DEC, S_DEC))
    src_mask = jnp.ones((B, S_DEC, S_ENC), jnp.float32)

    logits = decoder_forward(input_ids, token_type_ids, key_enc, value_enc,
                             src_mask, trg_mask, kparams)
    jax.block_until_ready(logits)
    assert logits.shape == (B, S_DEC, N_VOCAB)
    assert bool(jnp.all(jnp.isfinite(logits)))
    print("KERNEL_OK")
</pallas_src>

<mosaic_0001>
module attributes {stable_mosaic.version = 11 : i64} {
  func.func @_decoder_block_kernel(%arg0: memref<16x32xf32, #tpu.memory_space<vmem>>, %arg1: memref<16x32xf32, #tpu.memory_space<vmem>>, %arg2: memref<16x32xf32, #tpu.memory_space<vmem>>, %arg3: memref<2x8x8xf32, #tpu.memory_space<vmem>>, %arg4: memref<2x8x8xf32, #tpu.memory_space<vmem>>, %arg5: memref<32x32xbf16, #tpu.memory_space<vmem>>, %arg6: memref<1x32xf32, #tpu.memory_space<vmem>>, %arg7: memref<32x32xbf16, #tpu.memory_space<vmem>>, %arg8: memref<1x32xf32, #tpu.memory_space<vmem>>, %arg9: memref<32x32xbf16, #tpu.memory_space<vmem>>, %arg10: memref<1x32xf32, #tpu.memory_space<vmem>>, %arg11: memref<32x32xbf16, #tpu.memory_space<vmem>>, %arg12: memref<1x32xf32, #tpu.memory_space<vmem>>, %arg13: memref<1x32xf32, #tpu.memory_space<vmem>>, %arg14: memref<1x32xf32, #tpu.memory_space<vmem>>, %arg15: memref<32x32xbf16, #tpu.memory_space<vmem>>, %arg16: memref<1x32xf32, #tpu.memory_space<vmem>>, %arg17: memref<32x32xbf16, #tpu.memory_space<vmem>>, %arg18: memref<1x32xf32, #tpu.memory_space<vmem>>, %arg19: memref<32x32xbf16, #tpu.memory_space<vmem>>, %arg20: memref<1x32xf32, #tpu.memory_space<vmem>>, %arg21: memref<32x32xbf16, #tpu.memory_space<vmem>>, %arg22: memref<1x32xf32, #tpu.memory_space<vmem>>, %arg23: memref<1x32xf32, #tpu.memory_space<vmem>>, %arg24: memref<1x32xf32, #tpu.memory_space<vmem>>, %arg25: memref<32x64xbf16, #tpu.memory_space<vmem>>, %arg26: memref<1x64xf32, #tpu.memory_space<vmem>>, %arg27: memref<64x32xbf16, #tpu.memory_space<vmem>>, %arg28: memref<1x32xf32, #tpu.memory_space<vmem>>, %arg29: memref<1x32xf32, #tpu.memory_space<vmem>>, %arg30: memref<1x32xf32, #tpu.memory_space<vmem>>, %arg31: memref<16x32xf32, #tpu.memory_space<vmem>>) attributes {dimension_semantics = [], scalar_prefetch = 0 : i64, scratch_operands = 0 : i64, tpu.core_type = #tpu.core_type<tc>} {
    %c0 = arith.constant 0 : index
    %c0_0 = arith.constant 0 : index
    %0 = vector.load %arg0[%c0, %c0_0] : memref<16x32xf32, #tpu.memory_space<vmem>>, vector<16x32xf32>
    %c0_1 = arith.constant 0 : index
    %c0_2 = arith.constant 0 : index
    %1 = vector.load %arg1[%c0_1, %c0_2] : memref<16x32xf32, #tpu.memory_space<vmem>>, vector<16x32xf32>
    %c0_3 = arith.constant 0 : index
    %c0_4 = arith.constant 0 : index
    %2 = vector.load %arg2[%c0_3, %c0_4] : memref<16x32xf32, #tpu.memory_space<vmem>>, vector<16x32xf32>
    %c0_5 = arith.constant 0 : index
    %c0_6 = arith.constant 0 : index
    %c0_7 = arith.constant 0 : index
    %3 = vector.load %arg3[%c0_5, %c0_6, %c0_7] : memref<2x8x8xf32, #tpu.memory_space<vmem>>, vector<2x8x8xf32>
    %c0_8 = arith.constant 0 : index
    %c0_9 = arith.constant 0 : index
    %c0_10 = arith.constant 0 : index
    %4 = vector.load %arg4[%c0_8, %c0_9, %c0_10] : memref<2x8x8xf32, #tpu.memory_space<vmem>>, vector<2x8x8xf32>
    %5 = arith.truncf %0 : vector<16x32xf32> to vector<16x32xbf16>
    %c0_11 = arith.constant 0 : index
    %c0_12 = arith.constant 0 : index
    %6 = vector.load %arg5[%c0_11, %c0_12] : memref<32x32xbf16, #tpu.memory_space<vmem>>, vector<32x32xbf16>
    %cst = arith.constant dense<0.000000e+00> : vector<16x32xf32>
    %7 = tpu.matmul %5, %6, %cst {dimension_numbers = #tpu.dot_dimension_numbers<[1], [0], [0], [1], [0, 0, 1, 1], [], []>} : vector<16x32xbf16>, vector<32x32xbf16>, vector<16x32xf32> -> vector<16x32xf32>
    %c0_13 = arith.constant 0 : index
    %c0_14 = arith.constant 0 : index
    %8 = vector.load %arg6[%c0_13, %c0_14] : memref<1x32xf32, #tpu.memory_space<vmem>>, vector<1x32xf32>
    %9 = vector.broadcast %8 : vector<1x32xf32> to vector<16x32xf32>
    %10 = arith.addf %7, %9 : vector<16x32xf32>
    %11 = arith.truncf %0 : vector<16x32xf32> to vector<16x32xbf16>
    %c0_15 = arith.constant 0 : index
    %c0_16 = arith.constant 0 : index
    %12 = vector.load %arg7[%c0_15, %c0_16] : memref<32x32xbf16, #tpu.memory_space<vmem>>, vector<32x32xbf16>
    %cst_17 = arith.constant dense<0.000000e+00> : vector<16x32xf32>
    %13 = tpu.matmul %11, %12, %cst_17 {dimension_numbers = #tpu.dot_dimension_numbers<[1], [0], [0], [1], [0, 0, 1, 1], [], []>} : vector<16x32xbf16>, vector<32x32xbf16>, vector<16x32xf32> -> vector<16x32xf32>
    %c0_18 = arith.constant 0 : index
    %c0_19 = arith.constant 0 : index
    %14 = vector.load %arg8[%c0_18, %c0_19] : memref<1x32xf32, #tpu.memory_space<vmem>>, vector<1x32xf32>
    %15 = vector.broadcast %14 : vector<1x32xf32> to vector<16x32xf32>
    %16 = arith.addf %13, %15 : vector<16x32xf32>
    %17 = arith.truncf %0 : vector<16x32xf32> to vector<16x32xbf16>
    %c0_20 = arith.constant 0 : index
    %c0_21 = arith.constant 0 : index
    %18 = vector.load %arg9[%c0_20, %c0_21] : memref<32x32xbf16, #tpu.memory_space<vmem>>, vector<32x32xbf16>
    %cst_22 = arith.constant dense<0.000000e+00> : vector<16x32xf32>
    %19 = tpu.matmul %17, %18, %cst_22 {dimension_numbers = #tpu.dot_dimension_numbers<[1], [0], [0], [1], [0, 0, 1, 1], [], []>} : vector<16x32xbf16>, vector<32x32xbf16>, vector<16x32xf32> -> vector<16x32xf32>
    %c0_23 = arith.constant 0 : index
    %c0_24 = arith.constant 0 : index
    %20 = vector.load %arg10[%c0_23, %c0_24] : memref<1x32xf32, #tpu.memory_space<vmem>>, vector<1x32xf32>
    %21 = vector.broadcast %20 : vector<1x32xf32> to vector<16x32xf32>
    %22 = arith.addf %19, %21 : vector<16x32xf32>
    %23 = arith.truncf %10 : vector<16x32xf32> to vector<16x32xbf16>
    %24 = arith.truncf %16 : vector<16x32xf32> to vector<16x32xbf16>
    %25 = arith.truncf %22 : vector<16x32xf32> to vector<16x32xbf16>
    %26 = vector.extract_strided_slice %23 {offsets = [0, 0], sizes = [8, 8], strides = [1, 1]} : vector<16x32xbf16> to vector<8x8xbf16>
    %27 = vector.extract_strided_slice %24 {offsets = [0, 0], sizes = [8, 8], strides = [1, 1]} : vector<16x32xbf16> to vector<8x8xbf16>
    %cst_25 = arith.constant dense<0.000000e+00> : vector<8x8xf32>
    %28 = tpu.matmul %26, %27, %cst_25 {dimension_numbers = #tpu.dot_dimension_numbers<[1], [1], [0], [0], [0, 0, 1, 0], [], []>} : vector<8x8xbf16>, vector<8x8xbf16>, vector<8x8xf32> -> vector<8x8xf32>
    %cst_26 = arith.constant 0.353553385 : f32
    %29 = vector.broadcast %cst_26 : f32 to vector<8x8xf32>
    %30 = arith.mulf %28, %29 : vector<8x8xf32>
    %31 = vector.extract_strided_slice %4 {offsets = [0, 0, 0], sizes = [1, 8, 8], strides = [1, 1, 1]} : vector<2x8x8xf32> to vector<1x8x8xf32>
    %32 = vector.shape_cast %31 : vector<1x8x8xf32> to vector<8x8xf32>
    %33 = arith.addf %30, %32 : vector<8x8xf32>
    %cst_27 = arith.constant dense<0xFF800000> : vector<8xf32>
    %34 = vector.multi_reduction <maximumf>, %33, %cst_27 [1] : vector<8x8xf32> to vector<8xf32>
    %35 = vector.shape_cast %34 : vector<8xf32> to vector<8x1xf32>
    %36 = vector.broadcast %35 : vector<8x1xf32> to vector<8x8xf32>
    %37 = arith.subf %33, %36 : vector<8x8xf32>
    %38 = math.exp %37 : vector<8x8xf32>
    %cst_28 = arith.constant dense<0.000000e+00> : vector<8xf32>
    %39 = vector.multi_reduction <add>, %38, %cst_28 [1] : vector<8x8xf32> to vector<8xf32>
    %40 = vector.shape_cast %39 : vector<8xf32> to vector<8x1xf32>
    %41 = tpu.reciprocal %40 {approx = true} : vector<8x1xf32> -> vector<8x1xf32>
    %42 = vector.broadcast %41 : vector<8x1xf32> to vector<8x8xf32>
    %43 = arith.mulf %38, %42 : vector<8x8xf32>
    %44 = arith.truncf %43 : vector<8x8xf32> to vector<8x8xbf16>
    %45 = vector.extract_strided_slice %25 {offsets = [0, 0], sizes = [8, 8], strides = [1, 1]} : vector<16x32xbf16> to vector<8x8xbf16>
    %cst_29 = arith.constant dense<0.000000e+00> : vector<8x8xf32>
    %46 = tpu.matmul %44, %45, %cst_29 {dimension_numbers = #tpu.dot_dimension_numbers<[1], [0], [0], [1], [0, 0, 1, 1], [], []>} : vector<8x8xbf16>, vector<8x8xbf16>, vector<8x8xf32> -> vector<8x8xf32>
    %47 = vector.extract_strided_slice %23 {offsets = [0, 8], sizes = [8, 8], strides = [1, 1]} : vector<16x32xbf16> to vector<8x8xbf16>
    %48 = vector.extract_strided_slice %24 {offsets = [0, 8], sizes = [8, 8], strides = [1, 1]} : vector<16x32xbf16> to vector<8x8xbf16>
    %cst_30 = arith.constant dense<0.000000e+00> : vector<8x8xf32>
    %49 = tpu.matmul %47, %48, %cst_30 {dimension_numbers = #tpu.dot_dimension_numbers<[1], [1], [0], [0], [0, 0, 1, 0], [], []>} : vector<8x8xbf16>, vector<8x8xbf16>, vector<8x8xf32> -> vector<8x8xf32>
    %cst_31 = arith.constant 0.353553385 : f32
    %50 = vector.broadcast %cst_31 : f32 to vector<8x8xf32>
    %51 = arith.mulf %49, %50 : vector<8x8xf32>
    %52 = vector.extract_strided_slice %4 {offsets = [0, 0, 0], sizes = [1, 8, 8], strides = [1, 1, 1]} : vector<2x8x8xf32> to vector<1x8x8xf32>
    %53 = vector.shape_cast %52 : vector<1x8x8xf32> to vector<8x8xf32>
    %54 = arith.addf %51, %53 : vector<8x8xf32>
    %cst_32 = arith.constant dense<0xFF800000> : vector<8xf32>
    %55 = vector.multi_reduction <maximumf>, %54, %cst_32 [1] : vector<8x8xf32> to vector<8xf32>
    %56 = vector.shape_cast %55 : vector<8xf32> to vector<8x1xf32>
    %57 = vector.broadcast %56 : vector<8x1xf32> to vector<8x8xf32>
    %58 = arith.subf %54, %57 : vector<8x8xf32>
    %59 = math.exp %58 : vector<8x8xf32>
    %cst_33 = arith.constant dense<0.000000e+00> : vector<8xf32>
    %60 = vector.multi_reduction <add>, %59, %cst_33 [1] : vector<8x8xf32> to vector<8xf32>
    %61 = vector.shape_cast %60 : vector<8xf32> to vector<8x1xf32>
    %62 = tpu.reciprocal %61 {approx = true} : vector<8x1xf32> -> vector<8x1xf32>
    %63 = vector.broadcast %62 : vector<8x1xf32> to vector<8x8xf32>
    %64 = arith.mulf %59, %63 : vector<8x8xf32>
    %65 = arith.truncf %64 : vector<8x8xf32> to vector<8x8xbf16>
    %66 = vector.extract_strided_slice %25 {offsets = [0, 8], sizes = [8, 8], strides = [1, 1]} : vector<16x32xbf16> to vector<8x8xbf16>
    %cst_34 = arith.constant dense<0.000000e+00> : vector<8x8xf32>
    %67 = tpu.matmul %65, %66, %cst_34 {dimension_numbers = #tpu.dot_dimension_numbers<[1], [0], [0], [1], [0, 0, 1, 1], [], []>} : vector<8x8xbf16>, vector<8x8xbf16>, vector<8x8xf32> -> vector<8x8xf32>
    %68 = vector.extract_strided_slice %23 {offsets = [0, 16], sizes = [8, 8], strides = [1, 1]} : vector<16x32xbf16> to vector<8x8xbf16>
    %69 = vector.extract_strided_slice %24 {offsets = [0, 16], sizes = [8, 8], strides = [1, 1]} : vector<16x32xbf16> to vector<8x8xbf16>
    %cst_35 = arith.constant dense<0.000000e+00> : vector<8x8xf32>
    %70 = tpu.matmul %68, %69, %cst_35 {dimension_numbers = #tpu.dot_dimension_numbers<[1], [1], [0], [0], [0, 0, 1, 0], [], []>} : vector<8x8xbf16>, vector<8x8xbf16>, vector<8x8xf32> -> vector<8x8xf32>
    %cst_36 = arith.constant 0.353553385 : f32
    %71 = vector.broadcast %cst_36 : f32 to vector<8x8xf32>
    %72 = arith.mulf %70, %71 : vector<8x8xf32>
    %73 = vector.extract_strided_slice %4 {offsets = [0, 0, 0], sizes = [1, 8, 8], strides = [1, 1, 1]} : vector<2x8x8xf32> to vector<1x8x8xf32>
    %74 = vector.shape_cast %73 : vector<1x8x8xf32> to vector<8x8xf32>
    %75 = arith.addf %72, %74 : vector<8x8xf32>
    %cst_37 = arith.constant dense<0xFF800000> : vector<8xf32>
    %76 = vector.multi_reduction <maximumf>, %75, %cst_37 [1] : vector<8x8xf32> to vector<8xf32>
    %77 = vector.shape_cast %76 : vector<8xf32> to vector<8x1xf32>
    %78 = vector.broadcast %77 : vector<8x1xf32> to vector<8x8xf32>
    %79 = arith.subf %75, %78 : vector<8x8xf32>
    %80 = math.exp %79 : vector<8x8xf32>
    %cst_38 = arith.constant dense<0.000000e+00> : vector<8xf32>
    %81 = vector.multi_reduction <add>, %80, %cst_38 [1] : vector<8x8xf32> to vector<8xf32>
    %82 = vector.shape_cast %81 : vector<8xf32> to vector<8x1xf32>
    %83 = tpu.reciprocal %82 {approx = true} : vector<8x1xf32> -> vector<8x1xf32>
    %84 = vector.broadcast %83 : vector<8x1xf32> to vector<8x8xf32>
    %85 = arith.mulf %80, %84 : vector<8x8xf32>
    %86 = arith.truncf %85 : vector<8x8xf32> to vector<8x8xbf16>
    %87 = vector.extract_strided_slice %25 {offsets = [0, 16], sizes = [8, 8], strides = [1, 1]} : vector<16x32xbf16> to vector<8x8xbf16>
    %cst_39 = arith.constant dense<0.000000e+00> : vector<8x8xf32>
    %88 = tpu.matmul %86, %87, %cst_39 {dimension_numbers = #tpu.dot_dimension_numbers<[1], [0], [0], [1], [0, 0, 1, 1], [], []>} : vector<8x8xbf16>, vector<8x8xbf16>, vector<8x8xf32> -> vector<8x8xf32>
    %89 = vector.extract_strided_slice %23 {offsets = [0, 24], sizes = [8, 8], strides = [1, 1]} : vector<16x32xbf16> to vector<8x8xbf16>
    %90 = vector.extract_strided_slice %24 {offsets = [0, 24], sizes = [8, 8], strides = [1, 1]} : vector<16x32xbf16> to vector<8x8xbf16>
    %cst_40 = arith.constant dense<0.000000e+00> : vector<8x8xf32>
    %91 = tpu.matmul %89, %90, %cst_40 {dimension_numbers = #tpu.dot_dimension_numbers<[1], [1], [0], [0], [0, 0, 1, 0], [], []>} : vector<8x8xbf16>, vector<8x8xbf16>, vector<8x8xf32> -> vector<8x8xf32>
    %cst_41 = arith.constant 0.353553385 : f32
    %92 = vector.broadcast %cst_41 : f32 to vector<8x8xf32>
    %93 = arith.mulf %91, %92 : vector<8x8xf32>
    %94 = vector.extract_strided_slice %4 {offsets = [0, 0, 0], sizes = [1, 8, 8], strides = [1, 1, 1]} : vector<2x8x8xf32> to vector<1x8x8xf32>
    %95 = vector.shape_cast %94 : vector<1x8x8xf32> to vector<8x8xf32>
    %96 = arith.addf %93, %95 : vector<8x8xf32>
    %cst_42 = arith.constant dense<0xFF800000> : vector<8xf32>
    %97 = vector.multi_reduction <maximumf>, %96, %cst_42 [1] : vector<8x8xf32> to vector<8xf32>
    %98 = vector.shape_cast %97 : vector<8xf32> to vector<8x1xf32>
    %99 = vector.broadcast %98 : vector<8x1xf32> to vector<8x8xf32>
    %100 = arith.subf %96, %99 : vector<8x8xf32>
    %101 = math.exp %100 : vector<8x8xf32>
    %cst_43 = arith.constant dense<0.000000e+00> : vector<8xf32>
    %102 = vector.multi_reduction <add>, %101, %cst_43 [1] : vector<8x8xf32> to vector<8xf32>
    %103 = vector.shape_cast %102 : vector<8xf32> to vector<8x1xf32>
    %104 = tpu.reciprocal %103 {approx = true} : vector<8x1xf32> -> vector<8x1xf32>
    %105 = vector.broadcast %104 : vector<8x1xf32> to vector<8x8xf32>
    %106 = arith.mulf %101, %105 : vector<8x8xf32>
    %107 = arith.truncf %106 : vector<8x8xf32> to vector<8x8xbf16>
    %108 = vector.extract_strided_slice %25 {offsets = [0, 24], sizes = [8, 8], strides = [1, 1]} : vector<16x32xbf16> to vector<8x8xbf16>
    %cst_44 = arith.constant dense<0.000000e+00> : vector<8x8xf32>
    %109 = tpu.matmul %107, %108, %cst_44 {dimension_numbers = #tpu.dot_dimension_numbers<[1], [0], [0], [1], [0, 0, 1, 1], [], []>} : vector<8x8xbf16>, vector<8x8xbf16>, vector<8x8xf32> -> vector<8x8xf32>
    %110 = tpu.concatenate %46, %67, %88, %109 in 1 : vector<8x8xf32>, vector<8x8xf32>, vector<8x8xf32>, vector<8x8xf32> -> vector<8x32xf32>
    %111 = vector.extract_strided_slice %23 {offsets = [8, 0], sizes = [8, 8], strides = [1, 1]} : vector<16x32xbf16> to vector<8x8xbf16>
    %112 = vector.extract_strided_slice %24 {offsets = [8, 0], sizes = [8, 8], strides = [1, 1]} : vector<16x32xbf16> to vector<8x8xbf16>
    %cst_45 = arith.constant dense<0.000000e+00> : vector<8x8xf32>
    %113 = tpu.matmul %111, %112, %cst_45 {dimension_numbers = #tpu.dot_dimension_numbers<[1], [1], [0], [0], [0, 0, 1, 0], [], []>} : vector<8x8xbf16>, vector<8x8xbf16>, vector<8x8xf32> -> vector<8x8xf32>
    %cst_46 = arith.constant 0.353553385 : f32
    %114 = vector.broadcast %cst_46 : f32 to vector<8x8xf32>
    %115 = arith.mulf %113, %114 : vector<8x8xf32>
    %116 = vector.extract_strided_slice %4 {offsets = [1, 0, 0], sizes = [1, 8, 8], strides = [1, 1, 1]} : vector<2x8x8xf32> to vector<1x8x8xf32>
    %117 = vector.shape_cast %116 : vector<1x8x8xf32> to vector<8x8xf32>
    %118 = arith.addf %115, %117 : vector<8x8xf32>
    %cst_47 = arith.constant dense<0xFF800000> : vector<8xf32>
    %119 = vector.multi_reduction <maximumf>, %118, %cst_47 [1] : vector<8x8xf32> to vector<8xf32>
    %120 = vector.shape_cast %119 : vector<8xf32> to vector<8x1xf32>
    %121 = vector.broadcast %120 : vector<8x1xf32> to vector<8x8xf32>
    %122 = arith.subf %118, %121 : vector<8x8xf32>
    %123 = math.exp %122 : vector<8x8xf32>
    %cst_48 = arith.constant dense<0.000000e+00> : vector<8xf32>
    %124 = vector.multi_reduction <add>, %123, %cst_48 [1] : vector<8x8xf32> to vector<8xf32>
    %125 = vector.shape_cast %124 : vector<8xf32> to vector<8x1xf32>
    %126 = tpu.reciprocal %125 {approx = true} : vector<8x1xf32> -> vector<8x1xf32>
    %127 = vector.broadcast %126 : vector<8x1xf32> to vector<8x8xf32>
    %128 = arith.mulf %123, %127 : vector<8x8xf32>
    %129 = arith.truncf %128 : vector<8x8xf32> to vector<8x8xbf16>
    %130 = vector.extract_strided_slice %25 {offsets = [8, 0], sizes = [8, 8], strides = [1, 1]} : vector<16x32xbf16> to vector<8x8xbf16>
    %cst_49 = arith.constant dense<0.000000e+00> : vector<8x8xf32>
    %131 = tpu.matmul %129, %130, %cst_49 {dimension_numbers = #tpu.dot_dimension_numbers<[1], [0], [0], [1], [0, 0, 1, 1], [], []>} : vector<8x8xbf16>, vector<8x8xbf16>, vector<8x8xf32> -> vector<8x8xf32>
    %132 = vector.extract_strided_slice %23 {offsets = [8, 8], sizes = [8, 8], strides = [1, 1]} : vector<16x32xbf16> to vector<8x8xbf16>
    %133 = vector.extract_strided_slice %24 {offsets = [8, 8], sizes = [8, 8], strides = [1, 1]} : vector<16x32xbf16> to vector<8x8xbf16>
    %cst_50 = arith.constant dense<0.000000e+00> : vector<8x8xf32>
    %134 = tpu.matmul %132, %133, %cst_50 {dimension_numbers = #tpu.dot_dimension_numbers<[1], [1], [0], [0], [0, 0, 1, 0], [], []>} : vector<8x8xbf16>, vector<8x8xbf16>, vector<8x8xf32> -> vector<8x8xf32>
    %cst_51 = arith.constant 0.353553385 : f32
    %135 = vector.broadcast %cst_51 : f32 to vector<8x8xf32>
    %136 = arith.mulf %134, %135 : vector<8x8xf32>
    %137 = vector.extract_strided_slice %4 {offsets = [1, 0, 0], sizes = [1, 8, 8], strides = [1, 1, 1]} : vector<2x8x8xf32> to vector<1x8x8xf32>
    %138 = vector.shape_cast %137 : vector<1x8x8xf32> to vector<8x8xf32>
    %139 = arith.addf %136, %138 : vector<8x8xf32>
    %cst_52 = arith.constant dense<0xFF800000> : vector<8xf32>
    %140 = vector.multi_reduction <maximumf>, %139, %cst_52 [1] : vector<8x8xf32> to vector<8xf32>
    %141 = vector.shape_cast %140 : vector<8xf32> to vector<8x1xf32>
    %142 = vector.broadcast %141 : vector<8x1xf32> to vector<8x8xf32>
    %143 = arith.subf %139, %142 : vector<8x8xf32>
    %144 = math.exp %143 : vector<8x8xf32>
    %cst_53 = arith.constant dense<0.000000e+00> : vector<8xf32>
    %145 = vector.multi_reduction <add>, %144, %cst_53 [1] : vector<8x8xf32> to vector<8xf32>
    %146 = vector.shape_cast %145 : vector<8xf32> to vector<8x1xf32>
    %147 = tpu.reciprocal %146 {approx = true} : vector<8x1xf32> -> vector<8x1xf32>
    %148 = vector.broadcast %147 : vector<8x1xf32> to vector<8x8xf32>
    %149 = arith.mulf %144, %148 : vector<8x8xf32>
    %150 = arith.truncf %149 : vector<8x8xf32> to vector<8x8xbf16>
    %151 = vector.extract_strided_slice %25 {offsets = [8, 8], sizes = [8, 8], strides = [1, 1]} : vector<16x32xbf16> to vector<8x8xbf16>
    %cst_54 = arith.constant dense<0.000000e+00> : vector<8x8xf32>
    %152 = tpu.matmul %150, %151, %cst_54 {dimension_numbers = #tpu.dot_dimension_numbers<[1], [0], [0], [1], [0, 0, 1, 1], [], []>} : vector<8x8xbf16>, vector<8x8xbf16>, vector<8x8xf32> -> vector<8x8xf32>
    %153 = vector.extract_strided_slice %23 {offsets = [8, 16], sizes = [8, 8], strides = [1, 1]} : vector<16x32xbf16> to vector<8x8xbf16>
    %154 = vector.extract_strided_slice %24 {offsets = [8, 16], sizes = [8, 8], strides = [1, 1]} : vector<16x32xbf16> to vector<8x8xbf16>
    %cst_55 = arith.constant dense<0.000000e+00> : vector<8x8xf32>
    %155 = tpu.matmul %153, %154, %cst_55 {dimension_numbers = #tpu.dot_dimension_numbers<[1], [1], [0], [0], [0, 0, 1, 0], [], []>} : vector<8x8xbf16>, vector<8x8xbf16>, vector<8x8xf32> -> vector<8x8xf32>
    %cst_56 = arith.constant 0.353553385 : f32
    %156 = vector.broadcast %cst_56 : f32 to vector<8x8xf32>
    %157 = arith.mulf %155, %156 : vector<8x8xf32>
    %158 = vector.extract_strided_slice %4 {offsets = [1, 0, 0], sizes = [1, 8, 8], strides = [1, 1, 1]} : vector<2x8x8xf32> to vector<1x8x8xf32>
    %159 = vector.shape_cast %158 : vector<1x8x8xf32> to vector<8x8xf32>
    %160 = arith.addf %157, %159 : vector<8x8xf32>
    %cst_57 = arith.constant dense<0xFF800000> : vector<8xf32>
    %161 = vector.multi_reduction <maximumf>, %160, %cst_57 [1] : vector<8x8xf32> to vector<8xf32>
    %162 = vector.shape_cast %161 : vector<8xf32> to vector<8x1xf32>
    %163 = vector.broadcast %162 : vector<8x1xf32> to vector<8x8xf32>
    %164 = arith.subf %160, %163 : vector<8x8xf32>
    %165 = math.exp %164 : vector<8x8xf32>
    %cst_58 = arith.constant dense<0.000000e+00> : vector<8xf32>
    %166 = vector.multi_reduction <add>, %165, %cst_58 [1] : vector<8x8xf32> to vector<8xf32>
    %167 = vector.shape_cast %166 : vector<8xf32> to vector<8x1xf32>
    %168 = tpu.reciprocal %167 {approx = true} : vector<8x1xf32> -> vector<8x1xf32>
    %169 = vector.broadcast %168 : vector<8x1xf32> to vector<8x8xf32>
    %170 = arith.mulf %165, %169 : vector<8x8xf32>
    %171 = arith.truncf %170 : vector<8x8xf32> to vector<8x8xbf16>
    %172 = vector.extract_strided_slice %25 {offsets = [8, 16], sizes = [8, 8], strides = [1, 1]} : vector<16x32xbf16> to vector<8x8xbf16>
    %cst_59 = arith.constant dense<0.000000e+00> : vector<8x8xf32>
    %173 = tpu.matmul %171, %172, %cst_59 {dimension_numbers = #tpu.dot_dimension_numbers<[1], [0], [0], [1], [0, 0, 1, 1], [], []>} : vector<8x8xbf16>, vector<8x8xbf16>, vector<8x8xf32> -> vector<8x8xf32>
    %174 = vector.extract_strided_slice %23 {offsets = [8, 24], sizes = [8, 8], strides = [1, 1]} : vector<16x32xbf16> to vector<8x8xbf16>
    %175 = vector.extract_strided_slice %24 {offsets = [8, 24], sizes = [8, 8], strides = [1, 1]} : vector<16x32xbf16> to vector<8x8xbf16>
    %cst_60 = arith.constant dense<0.000000e+00> : vector<8x8xf32>
    %176 = tpu.matmul %174, %175, %cst_60 {dimension_numbers = #tpu.dot_dimension_numbers<[1], [1], [0], [0], [0, 0, 1, 0], [], []>} : vector<8x8xbf16>, vector<8x8xbf16>, vector<8x8xf32> -> vector<8x8xf32>
    %cst_61 = arith.constant 0.353553385 : f32
    %177 = vector.broadcast %cst_61 : f32 to vector<8x8xf32>
    %178 = arith.mulf %176, %177 : vector<8x8xf32>
    %179 = vector.extract_strided_slice %4 {offsets = [1, 0, 0], sizes = [1, 8, 8], strides = [1, 1, 1]} : vector<2x8x8xf32> to vector<1x8x8xf32>
    %180 = vector.shape_cast %179 : vector<1x8x8xf32> to vector<8x8xf32>
    %181 = arith.addf %178, %180 : vector<8x8xf32>
    %cst_62 = arith.constant dense<0xFF800000> : vector<8xf32>
    %182 = vector.multi_reduction <maximumf>, %181, %cst_62 [1] : vector<8x8xf32> to vector<8xf32>
    %183 = vector.shape_cast %182 : vector<8xf32> to vector<8x1xf32>
    %184 = vector.broadcast %183 : vector<8x1xf32> to vector<8x8xf32>
    %185 = arith.subf %181, %184 : vector<8x8xf32>
    %186 = math.exp %185 : vector<8x8xf32>
    %cst_63 = arith.constant dense<0.000000e+00> : vector<8xf32>
    %187 = vector.multi_reduction <add>, %186, %cst_63 [1] : vector<8x8xf32> to vector<8xf32>
    %188 = vector.shape_cast %187 : vector<8xf32> to vector<8x1xf32>
    %189 = tpu.reciprocal %188 {approx = true} : vector<8x1xf32> -> vector<8x1xf32>
    %190 = vector.broadcast %189 : vector<8x1xf32> to vector<8x8xf32>
    %191 = arith.mulf %186, %190 : vector<8x8xf32>
    %192 = arith.truncf %191 : vector<8x8xf32> to vector<8x8xbf16>
    %193 = vector.extract_strided_slice %25 {offsets = [8, 24], sizes = [8, 8], strides = [1, 1]} : vector<16x32xbf16> to vector<8x8xbf16>
    %cst_64 = arith.constant dense<0.000000e+00> : vector<8x8xf32>
    %194 = tpu.matmul %192, %193, %cst_64 {dimension_numbers = #tpu.dot_dimension_numbers<[1], [0], [0], [1], [0, 0, 1, 1], [], []>} : vector<8x8xbf16>, vector<8x8xbf16>, vector<8x8xf32> -> vector<8x8xf32>
    %195 = tpu.concatenate %131, %152, %173, %194 in 1 : vector<8x8xf32>, vector<8x8xf32>, vector<8x8xf32>, vector<8x8xf32> -> vector<8x32xf32>
    %196 = tpu.concatenate %110, %195 in 0 : vector<8x32xf32>, vector<8x32xf32> -> vector<16x32xf32>
    %197 = arith.truncf %196 : vector<16x32xf32> to vector<16x32xbf16>
    %c0_65 = arith.constant 0 : index
    %c0_66 = arith.constant 0 : index
    %198 = vector.load %arg11[%c0_65, %c0_66] : memref<32x32xbf16, #tpu.memory_space<vmem>>, vector<32x32xbf16>
    %cst_67 = arith.constant dense<0.000000e+00> : vector<16x32xf32>
    %199 = tpu.matmul %197, %198, %cst_67 {dimension_numbers = #tpu.dot_dimension_numbers<[1], [0], [0], [1], [0, 0, 1, 1], [], []>} : vector<16x32xbf16>, vector<32x32xbf16>, vector<16x32xf32> -> vector<16x32xf32>
    %c0_68 = arith.constant 0 : index
    %c0_69 = arith.constant 0 : index
    %200 = vector.load %arg12[%c0_68, %c0_69] : memref<1x32xf32, #tpu.memory_space<vmem>>, vector<1x32xf32>
    %201 = vector.broadcast %200 : vector<1x32xf32> to vector<16x32xf32>
    %202 = arith.addf %199, %201 : vector<16x32xf32>
    %203 = arith.addf %202, %0 : vector<16x32xf32>
    %cst_70 = arith.constant dense<0.000000e+00> : vector<16xf32>
    %204 = vector.multi_reduction <add>, %203, %cst_70 [1] : vector<16x32xf32> to vector<16xf32>
    %205 = vector.shape_cast %204 : vector<16xf32> to vector<16x1xf32>
    %cst_71 = arith.constant 3.200000e+01 : f32
    %206 = vector.broadcast %cst_71 : f32 to vector<16x1xf32>
    %207 = arith.divf %205, %206 : vector<16x1xf32>
    %208 = vector.broadcast %207 : vector<16x1xf32> to vector<16x32xf32>
    %209 = arith.subf %203, %208 : vector<16x32xf32>
    %210 = arith.mulf %209, %209 : vector<16x32xf32>
    %cst_72 = arith.constant dense<0.000000e+00> : vector<16xf32>
    %211 = vector.multi_reduction <add>, %210, %cst_72 [1] : vector<16x32xf32> to vector<16xf32>
    %212 = vector.shape_cast %211 : vector<16xf32> to vector<16x1xf32>
    %cst_73 = arith.constant 3.200000e+01 : f32
    %213 = vector.broadcast %cst_73 : f32 to vector<16x1xf32>
    %214 = arith.divf %212, %213 : vector<16x1xf32>
    %215 = vector.broadcast %207 : vector<16x1xf32> to vector<16x32xf32>
    %216 = arith.subf %203, %215 : vector<16x32xf32>
    %cst_74 = arith.constant 3.200000e+01 : f32
    %217 = vector.broadcast %cst_74 : f32 to vector<16x1xf32>
    %218 = arith.addf %214, %217 : vector<16x1xf32>
    %219 = math.rsqrt %218 : vector<16x1xf32>
    %220 = vector.broadcast %219 : vector<16x1xf32> to vector<16x32xf32>
    %221 = arith.mulf %216, %220 : vector<16x32xf32>
    %c0_75 = arith.constant 0 : index
    %c0_76 = arith.constant 0 : index
    %222 = vector.load %arg13[%c0_75, %c0_76] : memref<1x32xf32, #tpu.memory_space<vmem>>, vector<1x32xf32>
    %223 = vector.broadcast %222 : vector<1x32xf32> to vector<16x32xf32>
    %224 = arith.mulf %221, %223 : vector<16x32xf32>
    %c0_77 = arith.constant 0 : index
    %c0_78 = arith.constant 0 : index
    %225 = vector.load %arg14[%c0_77, %c0_78] : memref<1x32xf32, #tpu.memory_space<vmem>>, vector<1x32xf32>
    %226 = vector.broadcast %225 : vector<1x32xf32> to vector<16x32xf32>
    %227 = arith.addf %224, %226 : vector<16x32xf32>
    %228 = arith.truncf %227 : vector<16x32xf32> to vector<16x32xbf16>
    %c0_79 = arith.constant 0 : index
    %c0_80 = arith.constant 0 : index
    %229 = vector.load %arg15[%c0_79, %c0_80] : memref<32x32xbf16, #tpu.memory_space<vmem>>, vector<32x32xbf16>
    %cst_81 = arith.constant dense<0.000000e+00> : vector<16x32xf32>
    %230 = tpu.matmul %228, %229, %cst_81 {dimension_numbers = #tpu.dot_dimension_numbers<[1], [0], [0], [1], [0, 0, 1, 1], [], []>} : vector<16x32xbf16>, vector<32x32xbf16>, vector<16x32xf32> -> vector<16x32xf32>
    %c0_82 = arith.constant 0 : index
    %c0_83 = arith.constant 0 : index
    %231 = vector.load %arg16[%c0_82, %c0_83] : memref<1x32xf32, #tpu.memory_space<vmem>>, vector<1x32xf32>
    %232 = vector.broadcast %231 : vector<1x32xf32> to vector<16x32xf32>
    %233 = arith.addf %230, %232 : vector<16x32xf32>
    %234 = arith.truncf %1 : vector<16x32xf32> to vector<16x32xbf16>
    %c0_84 = arith.constant 0 : index
    %c0_85 = arith.constant 0 : index
    %235 = vector.load %arg17[%c0_84, %c0_85] : memref<32x32xbf16, #tpu.memory_space<vmem>>, vector<32x32xbf16>
    %cst_86 = arith.constant dense<0.000000e+00> : vector<16x32xf32>
    %236 = tpu.matmul %234, %235, %cst_86 {dimension_numbers = #tpu.dot_dimension_numbers<[1], [0], [0], [1], [0, 0, 1, 1], [], []>} : vector<16x32xbf16>, vector<32x32xbf16>, vector<16x32xf32> -> vector<16x32xf32>
    %c0_87 = arith.constant 0 : index
    %c0_88 = arith.constant 0 : index
    %237 = vector.load %arg18[%c0_87, %c0_88] : memref<1x32xf32, #tpu.memory_space<vmem>>, vector<1x32xf32>
    %238 = vector.broadcast %237 : vector<1x32xf32> to vector<16x32xf32>
    %239 = arith.addf %236, %238 : vector<16x32xf32>
    %240 = arith.truncf %2 : vector<16x32xf32> to vector<16x32xbf16>
    %c0_89 = arith.constant 0 : index
    %c0_90 = arith.constant 0 : index
    %241 = vector.load %arg19[%c0_89, %c0_90] : memref<32x32xbf16, #tpu.memory_space<vmem>>, vector<32x32xbf16>
    %cst_91 = arith.constant dense<0.000000e+00> : vector<16x32xf32>
    %242 = tpu.matmul %240, %241, %cst_91 {dimension_numbers = #tpu.dot_dimension_numbers<[1], [0], [0], [1], [0, 0, 1, 1], [], []>} : vector<16x32xbf16>, vector<32x32xbf16>, vector<16x32xf32> -> vector<16x32xf32>
    %c0_92 = arith.constant 0 : index
    %c0_93 = arith.constant 0 : index
    %243 = vector.load %arg20[%c0_92, %c0_93] : memref<1x32xf32, #tpu.memory_space<vmem>>, vector<1x32xf32>
    %244 = vector.broadcast %243 : vector<1x32xf32> to vector<16x32xf32>
    %245 = arith.addf %242, %244 : vector<16x32xf32>
    %246 = arith.truncf %233 : vector<16x32xf32> to vector<16x32xbf16>
    %247 = arith.truncf %239 : vector<16x32xf32> to vector<16x32xbf16>
    %248 = arith.truncf %245 : vector<16x32xf32> to vector<16x32xbf16>
    %249 = vector.extract_strided_slice %246 {offsets = [0, 0], sizes = [8, 8], strides = [1, 1]} : vector<16x32xbf16> to vector<8x8xbf16>
    %250 = vector.extract_strided_slice %247 {offsets = [0, 0], sizes = [8, 8], strides = [1, 1]} : vector<16x32xbf16> to vector<8x8xbf16>
    %cst_94 = arith.constant dense<0.000000e+00> : vector<8x8xf32>
    %251 = tpu.matmul %249, %250, %cst_94 {dimension_numbers = #tpu.dot_dimension_numbers<[1], [1], [0], [0], [0, 0, 1, 0], [], []>} : vector<8x8xbf16>, vector<8x8xbf16>, vector<8x8xf32> -> vector<8x8xf32>
    %cst_95 = arith.constant 0.353553385 : f32
    %252 = vector.broadcast %cst_95 : f32 to vector<8x8xf32>
    %253 = arith.mulf %251, %252 : vector<8x8xf32>
    %254 = vector.extract_strided_slice %3 {offsets = [0, 0, 0], sizes = [1, 8, 8], strides = [1, 1, 1]} : vector<2x8x8xf32> to vector<1x8x8xf32>
    %255 = vector.shape_cast %254 : vector<1x8x8xf32> to vector<8x8xf32>
    %256 = arith.addf %253, %255 : vector<8x8xf32>
    %cst_96 = arith.constant dense<0xFF800000> : vector<8xf32>
    %257 = vector.multi_reduction <maximumf>, %256, %cst_96 [1] : vector<8x8xf32> to vector<8xf32>
    %258 = vector.shape_cast %257 : vector<8xf32> to vector<8x1xf32>
    %259 = vector.broadcast %258 : vector<8x1xf32> to vector<8x8xf32>
    %260 = arith.subf %256, %259 : vector<8x8xf32>
    %261 = math.exp %260 : vector<8x8xf32>
    %cst_97 = arith.constant dense<0.000000e+00> : vector<8xf32>
    %262 = vector.multi_reduction <add>, %261, %cst_97 [1] : vector<8x8xf32> to vector<8xf32>
    %263 = vector.shape_cast %262 : vector<8xf32> to vector<8x1xf32>
    %264 = tpu.reciprocal %263 {approx = true} : vector<8x1xf32> -> vector<8x1xf32>
    %265 = vector.broadcast %264 : vector<8x1xf32> to vector<8x8xf32>
    %266 = arith.mulf %261, %265 : vector<8x8xf32>
    %267 = arith.truncf %266 : vector<8x8xf32> to vector<8x8xbf16>
    %268 = vector.extract_strided_slice %248 {offsets = [0, 0], sizes = [8, 8], strides = [1, 1]} : vector<16x32xbf16> to vector<8x8xbf16>
    %cst_98 = arith.constant dense<0.000000e+00> : vector<8x8xf32>
    %269 = tpu.matmul %267, %268, %cst_98 {dimension_numbers = #tpu.dot_dimension_numbers<[1], [0], [0], [1], [0, 0, 1, 1], [], []>} : vector<8x8xbf16>, vector<8x8xbf16>, vector<8x8xf32> -> vector<8x8xf32>
    %270 = vector.extract_strided_slice %246 {offsets = [0, 8], sizes = [8, 8], strides = [1, 1]} : vector<16x32xbf16> to vector<8x8xbf16>
    %271 = vector.extract_strided_slice %247 {offsets = [0, 8], sizes = [8, 8], strides = [1, 1]} : vector<16x32xbf16> to vector<8x8xbf16>
    %cst_99 = arith.constant dense<0.000000e+00> : vector<8x8xf32>
    %272 = tpu.matmul %270, %271, %cst_99 {dimension_numbers = #tpu.dot_dimension_numbers<[1], [1], [0], [0], [0, 0, 1, 0], [], []>} : vector<8x8xbf16>, vector<8x8xbf16>, vector<8x8xf32> -> vector<8x8xf32>
    %cst_100 = arith.constant 0.353553385 : f32
    %273 = vector.broadcast %cst_100 : f32 to vector<8x8xf32>
    %274 = arith.mulf %272, %273 : vector<8x8xf32>
    %275 = vector.extract_strided_slice %3 {offsets = [0, 0, 0], sizes = [1, 8, 8], strides = [1, 1, 1]} : vector<2x8x8xf32> to vector<1x8x8xf32>
    %276 = vector.shape_cast %275 : vector<1x8x8xf32> to vector<8x8xf32>
    %277 = arith.addf %274, %276 : vector<8x8xf32>
    %cst_101 = arith.constant dense<0xFF800000> : vector<8xf32>
    %278 = vector.multi_reduction <maximumf>, %277, %cst_101 [1] : vector<8x8xf32> to vector<8xf32>
    %279 = vector.shape_cast %278 : vector<8xf32> to vector<8x1xf32>
    %280 = vector.broadcast %279 : vector<8x1xf32> to vector<8x8xf32>
    %281 = arith.subf %277, %280 : vector<8x8xf32>
    %282 = math.exp %281 : vector<8x8xf32>
    %cst_102 = arith.constant dense<0.000000e+00> : vector<8xf32>
    %283 = vector.multi_reduction <add>, %282, %cst_102 [1] : vector<8x8xf32> to vector<8xf32>
    %284 = vector.shape_cast %283 : vector<8xf32> to vector<8x1xf32>
    %285 = tpu.reciprocal %284 {approx = true} : vector<8x1xf32> -> vector<8x1xf32>
    %286 = vector.broadcast %285 : vector<8x1xf32> to vector<8x8xf32>
    %287 = arith.mulf %282, %286 : vector<8x8xf32>
    %288 = arith.truncf %287 : vector<8x8xf32> to vector<8x8xbf16>
    %289 = vector.extract_strided_slice %248 {offsets = [0, 8], sizes = [8, 8], strides = [1, 1]} : vector<16x32xbf16> to vector<8x8xbf16>
    %cst_103 = arith.constant dense<0.000000e+00> : vector<8x8xf32>
    %290 = tpu.matmul %288, %289, %cst_103 {dimension_numbers = #tpu.dot_dimension_numbers<[1], [0], [0], [1], [0, 0, 1, 1], [], []>} : vector<8x8xbf16>, vector<8x8xbf16>, vector<8x8xf32> -> vector<8x8xf32>
    %291 = vector.extract_strided_slice %246 {offsets = [0, 16], sizes = [8, 8], strides = [1, 1]} : vector<16x32xbf16> to vector<8x8xbf16>
    %292 = vector.extract_strided_slice %247 {offsets = [0, 16], sizes = [8, 8], strides = [1, 1]} : vector<16x32xbf16> to vector<8x8xbf16>
    %cst_104 = arith.constant dense<0.000000e+00> : vector<8x8xf32>
    %293 = tpu.matmul %291, %292, %cst_104 {dimension_numbers = #tpu.dot_dimension_numbers<[1], [1], [0], [0], [0, 0, 1, 0], [], []>} : vector<8x8xbf16>, vector<8x8xbf16>, vector<8x8xf32> -> vector<8x8xf32>
    %cst_105 = arith.constant 0.353553385 : f32
    %294 = vector.broadcast %cst_105 : f32 to vector<8x8xf32>
    %295 = arith.mulf %293, %294 : vector<8x8xf32>
    %296 = vector.extract_strided_slice %3 {offsets = [0, 0, 0], sizes = [1, 8, 8], strides = [1, 1, 1]} : vector<2x8x8xf32> to vector<1x8x8xf32>
    %297 = vector.shape_cast %296 : vector<1x8x8xf32> to vector<8x8xf32>
    %298 = arith.addf %295, %297 : vector<8x8xf32>
    %cst_106 = arith.constant dense<0xFF800000> : vector<8xf32>
    %299 = vector.multi_reduction <maximumf>, %298, %cst_106 [1] : vector<8x8xf32> to vector<8xf32>
    %300 = vector.shape_cast %299 : vector<8xf32> to vector<8x1xf32>
    %301 = vector.broadcast %300 : vector<8x1xf32> to vector<8x8xf32>
    %302 = arith.subf %298, %301 : vector<8x8xf32>
    %303 = math.exp %302 : vector<8x8xf32>
    %cst_107 = arith.constant dense<0.000000e+00> : vector<8xf32>
    %304 = vector.multi_reduction <add>, %303, %cst_107 [1] : vector<8x8xf32> to vector<8xf32>
    %305 = vector.shape_cast %304 : vector<8xf32> to vector<8x1xf32>
    %306 = tpu.reciprocal %305 {approx = true} : vector<8x1xf32> -> vector<8x1xf32>
    %307 = vector.broadcast %306 : vector<8x1xf32> to vector<8x8xf32>
    %308 = arith.mulf %303, %307 : vector<8x8xf32>
    %309 = arith.truncf %308 : vector<8x8xf32> to vector<8x8xbf16>
    %310 = vector.extract_strided_slice %248 {offsets = [0, 16], sizes = [8, 8], strides = [1, 1]} : vector<16x32xbf16> to vector<8x8xbf16>
    %cst_108 = arith.constant dense<0.000000e+00> : vector<8x8xf32>
    %311 = tpu.matmul %309, %310, %cst_108 {dimension_numbers = #tpu.dot_dimension_numbers<[1], [0], [0], [1], [0, 0, 1, 1], [], []>} : vector<8x8xbf16>, vector<8x8xbf16>, vector<8x8xf32> -> vector<8x8xf32>
    %312 = vector.extract_strided_slice %246 {offsets = [0, 24], sizes = [8, 8], strides = [1, 1]} : vector<16x32xbf16> to vector<8x8xbf16>
    %313 = vector.extract_strided_slice %247 {offsets = [0, 24], sizes = [8, 8], strides = [1, 1]} : vector<16x32xbf16> to vector<8x8xbf16>
    %cst_109 = arith.constant dense<0.000000e+00> : vector<8x8xf32>
    %314 = tpu.matmul %312, %313, %cst_109 {dimension_numbers = #tpu.dot_dimension_numbers<[1], [1], [0], [0], [0, 0, 1, 0], [], []>} : vector<8x8xbf16>, vector<8x8xbf16>, vector<8x8xf32> -> vector<8x8xf32>
    %cst_110 = arith.constant 0.353553385 : f32
    %315 = vector.broadcast %cst_110 : f32 to vector<8x8xf32>
    %316 = arith.mulf %314, %315 : vector<8x8xf32>
    %317 = vector.extract_strided_slice %3 {offsets = [0, 0, 0], sizes = [1, 8, 8], strides = [1, 1, 1]} : vector<2x8x8xf32> to vector<1x8x8xf32>
    %318 = vector.shape_cast %317 : vector<1x8x8xf32> to vector<8x8xf32>
    %319 = arith.addf %316, %318 : vector<8x8xf32>
    %cst_111 = arith.constant dense<0xFF800000> : vector<8xf32>
    %320 = vector.multi_reduction <maximumf>, %319, %cst_111 [1] : vector<8x8xf32> to vector<8xf32>
    %321 = vector.shape_cast %320 : vector<8xf32> to vector<8x1xf32>
    %322 = vector.broadcast %321 : vector<8x1xf32> to vector<8x8xf32>
    %323 = arith.subf %319, %322 : vector<8x8xf32>
    %324 = math.exp %323 : vector<8x8xf32>
    %cst_112 = arith.constant dense<0.000000e+00> : vector<8xf32>
    %325 = vector.multi_reduction <add>, %324, %cst_112 [1] : vector<8x8xf32> to vector<8xf32>
    %326 = vector.shape_cast %325 : vector<8xf32> to vector<8x1xf32>
    %327 = tpu.reciprocal %326 {approx = true} : vector<8x1xf32> -> vector<8x1xf32>
    %328 = vector.broadcast %327 : vector<8x1xf32> to vector<8x8xf32>
    %329 = arith.mulf %324, %328 : vector<8x8xf32>
    %330 = arith.truncf %329 : vector<8x8xf32> to vector<8x8xbf16>
    %331 = vector.extract_strided_slice %248 {offsets = [0, 24], sizes = [8, 8], strides = [1, 1]} : vector<16x32xbf16> to vector<8x8xbf16>
    %cst_113 = arith.constant dense<0.000000e+00> : vector<8x8xf32>
    %332 = tpu.matmul %330, %331, %cst_113 {dimension_numbers = #tpu.dot_dimension_numbers<[1], [0], [0], [1], [0, 0, 1, 1], [], []>} : vector<8x8xbf16>, vector<8x8xbf16>, vector<8x8xf32> -> vector<8x8xf32>
    %333 = tpu.concatenate %269, %290, %311, %332 in 1 : vector<8x8xf32>, vector<8x8xf32>, vector<8x8xf32>, vector<8x8xf32> -> vector<8x32xf32>
    %334 = vector.extract_strided_slice %246 {offsets = [8, 0], sizes = [8, 8], strides = [1, 1]} : vector<16x32xbf16> to vector<8x8xbf16>
    %335 = vector.extract_strided_slice %247 {offsets = [8, 0], sizes = [8, 8], strides = [1, 1]} : vector<16x32xbf16> to vector<8x8xbf16>
    %cst_114 = arith.constant dense<0.000000e+00> : vector<8x8xf32>
    %336 = tpu.matmul %334, %335, %cst_114 {dimension_numbers = #tpu.dot_dimension_numbers<[1], [1], [0], [0], [0, 0, 1, 0], [], []>} : vector<8x8xbf16>, vector<8x8xbf16>, vector<8x8xf32> -> vector<8x8xf32>
    %cst_115 = arith.constant 0.353553385 : f32
    %337 = vector.broadcast %cst_115 : f32 to vector<8x8xf32>
    %338 = arith.mulf %336, %337 : vector<8x8xf32>
    %339 = vector.extract_strided_slice %3 {offsets = [1, 0, 0], sizes = [1, 8, 8], strides = [1, 1, 1]} : vector<2x8x8xf32> to vector<1x8x8xf32>
    %340 = vector.shape_cast %339 : vector<1x8x8xf32> to vector<8x8xf32>
    %341 = arith.addf %338, %340 : vector<8x8xf32>
    %cst_116 = arith.constant dense<0xFF800000> : vector<8xf32>
    %342 = vector.multi_reduction <maximumf>, %341, %cst_116 [1] : vector<8x8xf32> to vector<8xf32>
    %343 = vector.shape_cast %342 : vector<8xf32> to vector<8x1xf32>
    %344 = vector.broadcast %343 : vector<8x1xf32> to vector<8x8xf32>
    %345 = arith.subf %341, %344 : vector<8x8xf32>
    %346 = math.exp %345 : vector<8x8xf32>
    %cst_117 = arith.constant dense<0.000000e+00> : vector<8xf32>
    %347 = vector.multi_reduction <add>, %346, %cst_117 [1] : vector<8x8xf32> to vector<8xf32>
    %348 = vector.shape_cast %347 : vector<8xf32> to vector<8x1xf32>
    %349 = tpu.reciprocal %348 {approx = true} : vector<8x1xf32> -> vector<8x1xf32>
    %350 = vector.broadcast %349 : vector<8x1xf32> to vector<8x8xf32>
    %351 = arith.mulf %346, %350 : vector<8x8xf32>
    %352 = arith.truncf %351 : vector<8x8xf32> to vector<8x8xbf16>
    %353 = vector.extract_strided_slice %248 {offsets = [8, 0], sizes = [8, 8], strides = [1, 1]} : vector<16x32xbf16> to vector<8x8xbf16>
    %cst_118 = arith.constant dense<0.000000e+00> : vector<8x8xf32>
    %354 = tpu.matmul %352, %353, %cst_118 {dimension_numbers = #tpu.dot_dimension_numbers<[1], [0], [0], [1], [0, 0, 1, 1], [], []>} : vector<8x8xbf16>, vector<8x8xbf16>, vector<8x8xf32> -> vector<8x8xf32>
    %355 = vector.extract_strided_slice %246 {offsets = [8, 8], sizes = [8, 8], strides = [1, 1]} : vector<16x32xbf16> to vector<8x8xbf16>
    %356 = vector.extract_strided_slice %247 {offsets = [8, 8], sizes = [8, 8], strides = [1, 1]} : vector<16x32xbf16> to vector<8x8xbf16>
    %cst_119 = arith.constant dense<0.000000e+00> : vector<8x8xf32>
    %357 = tpu.matmul %355, %356, %cst_119 {dimension_numbers = #tpu.dot_dimension_numbers<[1], [1], [0], [0], [0, 0, 1, 0], [], []>} : vector<8x8xbf16>, vector<8x8xbf16>, vector<8x8xf32> -> vector<8x8xf32>
    %cst_120 = arith.constant 0.353553385 : f32
    %358 = vector.broadcast %cst_120 : f32 to vector<8x8xf32>
    %359 = arith.mulf %357, %358 : vector<8x8xf32>
    %360 = vector.extract_strided_slice %3 {offsets = [1, 0, 0], sizes = [1, 8, 8], strides = [1, 1, 1]} : vector<2x8x8xf32> to vector<1x8x8xf32>
    %361 = vector.shape_cast %360 : vector<1x8x8xf32> to vector<8x8xf32>
    %362 = arith.addf %359, %361 : vector<8x8xf32>
    %cst_121 = arith.constant dense<0xFF800000> : vector<8xf32>
    %363 = vector.multi_reduction <maximumf>, %362, %cst_121 [1] : vector<8x8xf32> to vector<8xf32>
    %364 = vector.shape_cast %363 : vector<8xf32> to vector<8x1xf32>
    %365 = vector.broadcast %364 : vector<8x1xf32> to vector<8x8xf32>
    %366 = arith.subf %362, %365 : vector<8x8xf32>
    %367 = math.exp %366 : vector<8x8xf32>
    %cst_122 = arith.constant dense<0.000000e+00> : vector<8xf32>
    %368 = vector.multi_reduction <add>, %367, %cst_122 [1] : vector<8x8xf32> to vector<8xf32>
    %369 = vector.shape_cast %368 : vector<8xf32> to vector<8x1xf32>
    %370 = tpu.reciprocal %369 {approx = true} : vector<8x1xf32> -> vector<8x1xf32>
    %371 = vector.broadcast %370 : vector<8x1xf32> to vector<8x8xf32>
    %372 = arith.mulf %367, %371 : vector<8x8xf32>
    %373 = arith.truncf %372 : vector<8x8xf32> to vector<8x8xbf16>
    %374 = vector.extract_strided_slice %248 {offsets = [8, 8], sizes = [8, 8], strides = [1, 1]} : vector<16x32xbf16> to vector<8x8xbf16>
    %cst_123 = arith.constant dense<0.000000e+00> : vector<8x8xf32>
    %375 = tpu.matmul %373, %374, %cst_123 {dimension_numbers = #tpu.dot_dimension_numbers<[1], [0], [0], [1], [0, 0, 1, 1], [], []>} : vector<8x8xbf16>, vector<8x8xbf16>, vector<8x8xf32> -> vector<8x8xf32>
    %376 = vector.extract_strided_slice %246 {offsets = [8, 16], sizes = [8, 8], strides = [1, 1]} : vector<16x32xbf16> to vector<8x8xbf16>
    %377 = vector.extract_strided_slice %247 {offsets = [8, 16], sizes = [8, 8], strides = [1, 1]} : vector<16x32xbf16> to vector<8x8xbf16>
    %cst_124 = arith.constant dense<0.000000e+00> : vector<8x8xf32>
    %378 = tpu.matmul %376, %377, %cst_124 {dimension_numbers = #tpu.dot_dimension_numbers<[1], [1], [0], [0], [0, 0, 1, 0], [], []>} : vector<8x8xbf16>, vector<8x8xbf16>, vector<8x8xf32> -> vector<8x8xf32>
    %cst_125 = arith.constant 0.353553385 : f32
    %379 = vector.broadcast %cst_125 : f32 to vector<8x8xf32>
    %380 = arith.mulf %378, %379 : vector<8x8xf32>
    %381 = vector.extract_strided_slice %3 {offsets = [1, 0, 0], sizes = [1, 8, 8], strides = [1, 1, 1]} : vector<2x8x8xf32> to vector<1x8x8xf32>
    %382 = vector.shape_cast %381 : vector<1x8x8xf32> to vector<8x8xf32>
    %383 = arith.addf %380, %382 : vector<8x8xf32>
    %cst_126 = arith.constant dense<0xFF800000> : vector<8xf32>
    %384 = vector.multi_reduction <maximumf>, %383, %cst_126 [1] : vector<8x8xf32> to vector<8xf32>
    %385 = vector.shape_cast %384 : vector<8xf32> to vector<8x1xf32>
    %386 = vector.broadcast %385 : vector<8x1xf32> to vector<8x8xf32>
    %387 = arith.subf %383, %386 : vector<8x8xf32>
    %388 = math.exp %387 : vector<8x8xf32>
    %cst_127 = arith.constant dense<0.000000e+00> : vector<8xf32>
    %389 = vector.multi_reduction <add>, %388, %cst_127 [1] : vector<8x8xf32> to vector<8xf32>
    %390 = vector.shape_cast %389 : vector<8xf32> to vector<8x1xf32>
    %391 = tpu.reciprocal %390 {approx = true} : vector<8x1xf32> -> vector<8x1xf32>
    %392 = vector.broadcast %391 : vector<8x1xf32> to vector<8x8xf32>
    %393 = arith.mulf %388, %392 : vector<8x8xf32>
    %394 = arith.truncf %393 : vector<8x8xf32> to vector<8x8xbf16>
    %395 = vector.extract_strided_slice %248 {offsets = [8, 16], sizes = [8, 8], strides = [1, 1]} : vector<16x32xbf16> to vector<8x8xbf16>
    %cst_128 = arith.constant dense<0.000000e+00> : vector<8x8xf32>
    %396 = tpu.matmul %394, %395, %cst_128 {dimension_numbers = #tpu.dot_dimension_numbers<[1], [0], [0], [1], [0, 0, 1, 1], [], []>} : vector<8x8xbf16>, vector<8x8xbf16>, vector<8x8xf32> -> vector<8x8xf32>
    %397 = vector.extract_strided_slice %246 {offsets = [8, 24], sizes = [8, 8], strides = [1, 1]} : vector<16x32xbf16> to vector<8x8xbf16>
    %398 = vector.extract_strided_slice %247 {offsets = [8, 24], sizes = [8, 8], strides = [1, 1]} : vector<16x32xbf16> to vector<8x8xbf16>
    %cst_129 = arith.constant dense<0.000000e+00> : vector<8x8xf32>
    %399 = tpu.matmul %397, %398, %cst_129 {dimension_numbers = #tpu.dot_dimension_numbers<[1], [1], [0], [0], [0, 0, 1, 0], [], []>} : vector<8x8xbf16>, vector<8x8xbf16>, vector<8x8xf32> -> vector<8x8xf32>
    %cst_130 = arith.constant 0.353553385 : f32
    %400 = vector.broadcast %cst_130 : f32 to vector<8x8xf32>
    %401 = arith.mulf %399, %400 : vector<8x8xf32>
    %402 = vector.extract_strided_slice %3 {offsets = [1, 0, 0], sizes = [1, 8, 8], strides = [1, 1, 1]} : vector<2x8x8xf32> to vector<1x8x8xf32>
    %403 = vector.shape_cast %402 : vector<1x8x8xf32> to vector<8x8xf32>
    %404 = arith.addf %401, %403 : vector<8x8xf32>
    %cst_131 = arith.constant dense<0xFF800000> : vector<8xf32>
    %405 = vector.multi_reduction <maximumf>, %404, %cst_131 [1] : vector<8x8xf32> to vector<8xf32>
    %406 = vector.shape_cast %405 : vector<8xf32> to vector<8x1xf32>
    %407 = vector.broadcast %406 : vector<8x1xf32> to vector<8x8xf32>
    %408 = arith.subf %404, %407 : vector<8x8xf32>
    %409 = math.exp %408 : vector<8x8xf32>
    %cst_132 = arith.constant dense<0.000000e+00> : vector<8xf32>
    %410 = vector.multi_reduction <add>, %409, %cst_132 [1] : vector<8x8xf32> to vector<8xf32>
    %411 = vector.shape_cast %410 : vector<8xf32> to vector<8x1xf32>
    %412 = tpu.reciprocal %411 {approx = true} : vector<8x1xf32> -> vector<8x1xf32>
    %413 = vector.broadcast %412 : vector<8x1xf32> to vector<8x8xf32>
    %414 = arith.mulf %409, %413 : vector<8x8xf32>
    %415 = arith.truncf %414 : vector<8x8xf32> to vector<8x8xbf16>
    %416 = vector.extract_strided_slice %248 {offsets = [8, 24], sizes = [8, 8], strides = [1, 1]} : vector<16x32xbf16> to vector<8x8xbf16>
    %cst_133 = arith.constant dense<0.000000e+00> : vector<8x8xf32>
    %417 = tpu.matmul %415, %416, %cst_133 {dimension_numbers = #tpu.dot_dimension_numbers<[1], [0], [0], [1], [0, 0, 1, 1], [], []>} : vector<8x8xbf16>, vector<8x8xbf16>, vector<8x8xf32> -> vector<8x8xf32>
    %418 = tpu.concatenate %354, %375, %396, %417 in 1 : vector<8x8xf32>, vector<8x8xf32>, vector<8x8xf32>, vector<8x8xf32> -> vector<8x32xf32>
    %419 = tpu.concatenate %333, %418 in 0 : vector<8x32xf32>, vector<8x32xf32> -> vector<16x32xf32>
    %420 = arith.truncf %419 : vector<16x32xf32> to vector<16x32xbf16>
    %c0_134 = arith.constant 0 : index
    %c0_135 = arith.constant 0 : index
    %421 = vector.load %arg21[%c0_134, %c0_135] : memref<32x32xbf16, #tpu.memory_space<vmem>>, vector<32x32xbf16>
    %cst_136 = arith.constant dense<0.000000e+00> : vector<16x32xf32>
    %422 = tpu.matmul %420, %421, %cst_136 {dimension_numbers = #tpu.dot_dimension_numbers<[1], [0], [0], [1], [0, 0, 1, 1], [], []>} : vector<16x32xbf16>, vector<32x32xbf16>, vector<16x32xf32> -> vector<16x32xf32>
    %c0_137 = arith.constant 0 : index
    %c0_138 = arith.constant 0 : index
    %423 = vector.load %arg22[%c0_137, %c0_138] : memref<1x32xf32, #tpu.memory_space<vmem>>, vector<1x32xf32>
    %424 = vector.broadcast %423 : vector<1x32xf32> to vector<16x32xf32>
    %425 = arith.addf %422, %424 : vector<16x32xf32>
    %426 = arith.addf %425, %227 : vector<16x32xf32>
    %cst_139 = arith.constant dense<0.000000e+00> : vector<16xf32>
    %427 = vector.multi_reduction <add>, %426, %cst_139 [1] : vector<16x32xf32> to vector<16xf32>
    %428 = vector.shape_cast %427 : vector<16xf32> to vector<16x1xf32>
    %cst_140 = arith.constant 3.200000e+01 : f32
    %429 = vector.broadcast %cst_140 : f32 to vector<16x1xf32>
    %430 = arith.divf %428, %429 : vector<16x1xf32>
    %431 = vector.broadcast %430 : vector<16x1xf32> to vector<16x32xf32>
    %432 = arith.subf %426, %431 : vector<16x32xf32>
    %433 = arith.mulf %432, %432 : vector<16x32xf32>
    %cst_141 = arith.constant dense<0.000000e+00> : vector<16xf32>
    %434 = vector.multi_reduction <add>, %433, %cst_141 [1] : vector<16x32xf32> to vector<16xf32>
    %435 = vector.shape_cast %434 : vector<16xf32> to vector<16x1xf32>
    %cst_142 = arith.constant 3.200000e+01 : f32
    %436 = vector.broadcast %cst_142 : f32 to vector<16x1xf32>
    %437 = arith.divf %435, %436 : vector<16x1xf32>
    %438 = vector.broadcast %430 : vector<16x1xf32> to vector<16x32xf32>
    %439 = arith.subf %426, %438 : vector<16x32xf32>
    %cst_143 = arith.constant 3.200000e+01 : f32
    %440 = vector.broadcast %cst_143 : f32 to vector<16x1xf32>
    %441 = arith.addf %437, %440 : vector<16x1xf32>
    %442 = math.rsqrt %441 : vector<16x1xf32>
    %443 = vector.broadcast %442 : vector<16x1xf32> to vector<16x32xf32>
    %444 = arith.mulf %439, %443 : vector<16x32xf32>
    %c0_144 = arith.constant 0 : index
    %c0_145 = arith.constant 0 : index
    %445 = vector.load %arg23[%c0_144, %c0_145] : memref<1x32xf32, #tpu.memory_space<vmem>>, vector<1x32xf32>
    %446 = vector.broadcast %445 : vector<1x32xf32> to vector<16x32xf32>
    %447 = arith.mulf %444, %446 : vector<16x32xf32>
    %c0_146 = arith.constant 0 : index
    %c0_147 = arith.constant 0 : index
    %448 = vector.load %arg24[%c0_146, %c0_147] : memref<1x32xf32, #tpu.memory_space<vmem>>, vector<1x32xf32>
    %449 = vector.broadcast %448 : vector<1x32xf32> to vector<16x32xf32>
    %450 = arith.addf %447, %449 : vector<16x32xf32>
    %451 = arith.truncf %450 : vector<16x32xf32> to vector<16x32xbf16>
    %c0_148 = arith.constant 0 : index
    %c0_149 = arith.constant 0 : index
    %452 = vector.load %arg25[%c0_148, %c0_149] : memref<32x64xbf16, #tpu.memory_space<vmem>>, vector<32x64xbf16>
    %cst_150 = arith.constant dense<0.000000e+00> : vector<16x64xf32>
    %453 = tpu.matmul %451, %452, %cst_150 {dimension_numbers = #tpu.dot_dimension_numbers<[1], [0], [0], [1], [0, 0, 1, 1], [], []>} : vector<16x32xbf16>, vector<32x64xbf16>, vector<16x64xf32> -> vector<16x64xf32>
    %c0_151 = arith.constant 0 : index
    %c0_152 = arith.constant 0 : index
    %454 = vector.load %arg26[%c0_151, %c0_152] : memref<1x64xf32, #tpu.memory_space<vmem>>, vector<1x64xf32>
    %455 = vector.broadcast %454 : vector<1x64xf32> to vector<16x64xf32>
    %456 = arith.addf %453, %455 : vector<16x64xf32>
    %cst_153 = arith.constant 0.000000e+00 : f32
    %457 = vector.broadcast %cst_153 : f32 to vector<16x64xf32>
    %458 = arith.maximumf %456, %457 : vector<16x64xf32>
    %459 = arith.truncf %458 : vector<16x64xf32> to vector<16x64xbf16>
    %c0_154 = arith.constant 0 : index
    %c0_155 = arith.constant 0 : index
    %460 = vector.load %arg27[%c0_154, %c0_155] : memref<64x32xbf16, #tpu.memory_space<vmem>>, vector<64x32xbf16>
    %cst_156 = arith.constant dense<0.000000e+00> : vector<16x32xf32>
    %461 = tpu.matmul %459, %460, %cst_156 {dimension_numbers = #tpu.dot_dimension_numbers<[1], [0], [0], [1], [0, 0, 1, 1], [], []>} : vector<16x64xbf16>, vector<64x32xbf16>, vector<16x32xf32> -> vector<16x32xf32>
    %c0_157 = arith.constant 0 : index
    %c0_158 = arith.constant 0 : index
    %462 = vector.load %arg28[%c0_157, %c0_158] : memref<1x32xf32, #tpu.memory_space<vmem>>, vector<1x32xf32>
    %463 = vector.broadcast %462 : vector<1x32xf32> to vector<16x32xf32>
    %464 = arith.addf %461, %463 : vector<16x32xf32>
    %465 = arith.addf %464, %450 : vector<16x32xf32>
    %cst_159 = arith.constant dense<0.000000e+00> : vector<16xf32>
    %466 = vector.multi_reduction <add>, %465, %cst_159 [1] : vector<16x32xf32> to vector<16xf32>
    %467 = vector.shape_cast %466 : vector<16xf32> to vector<16x1xf32>
    %cst_160 = arith.constant 3.200000e+01 : f32
    %468 = vector.broadcast %cst_160 : f32 to vector<16x1xf32>
    %469 = arith.divf %467, %468 : vector<16x1xf32>
    %470 = vector.broadcast %469 : vector<16x1xf32> to vector<16x32xf32>
    %471 = arith.subf %465, %470 : vector<16x32xf32>
    %472 = arith.mulf %471, %471 : vector<16x32xf32>
    %cst_161 = arith.constant dense<0.000000e+00> : vector<16xf32>
    %473 = vector.multi_reduction <add>, %472, %cst_161 [1] : vector<16x32xf32> to vector<16xf32>
    %474 = vector.shape_cast %473 : vector<16xf32> to vector<16x1xf32>
    %cst_162 = arith.constant 3.200000e+01 : f32
    %475 = vector.broadcast %cst_162 : f32 to vector<16x1xf32>
    %476 = arith.divf %474, %475 : vector<16x1xf32>
    %477 = vector.broadcast %469 : vector<16x1xf32> to vector<16x32xf32>
    %478 = arith.subf %465, %477 : vector<16x32xf32>
    %cst_163 = arith.constant 3.200000e+01 : f32
    %479 = vector.broadcast %cst_163 : f32 to vector<16x1xf32>
    %480 = arith.addf %476, %479 : vector<16x1xf32>
    %481 = math.rsqrt %480 : vector<16x1xf32>
    %482 = vector.broadcast %481 : vector<16x1xf32> to vector<16x32xf32>
    %483 = arith.mulf %478, %482 : vector<16x32xf32>
    %c0_164 = arith.constant 0 : index
    %c0_165 = arith.constant 0 : index
    %484 = vector.load %arg29[%c0_164, %c0_165] : memref<1x32xf32, #tpu.memory_space<vmem>>, vector<1x32xf32>
    %485 = vector.broadcast %484 : vector<1x32xf32> to vector<16x32xf32>
    %486 = arith.mulf %483, %485 : vector<16x32xf32>
    %c0_166 = arith.constant 0 : index
    %c0_167 = arith.constant 0 : index
    %487 = vector.load %arg30[%c0_166, %c0_167] : memref<1x32xf32, #tpu.memory_space<vmem>>, vector<1x32xf32>
    %488 = vector.broadcast %487 : vector<1x32xf32> to vector<16x32xf32>
    %489 = arith.addf %486, %488 : vector<16x32xf32>
    %c0_168 = arith.constant 0 : index
    %c0_169 = arith.constant 0 : index
    %490 = vector.load %arg31[%c0_168, %c0_169] : memref<16x32xf32, #tpu.memory_space<vmem>>, vector<16x32xf32>
    tpu.vector_store %arg31[%c0_168, %c0_169], %489 {strides = array<i32>} : memref<16x32xf32, #tpu.memory_space<vmem>>, vector<16x32xf32>,
    return
  }
}

</mosaic_0001>

<bundles_post_ra>
// kernel: tpu_custom_call.1
= control target key start
LH: loop header
LB: loop body
LE: loop exit
PB: predicated region body
PF: predicated region fallthrough
CT: control target
= control target key end

     0   :  { %s4153_s6 = smov 1   ;;  %s4154_s10 = smov 2   ;;  %s4888_s0 = inlined_call_operand.smem [shape: u32[32], index: -1, kind: input, shape index: {}] }
   0x1   :  { %s4222_s5 = sld [smem:[%s4888_s0]]   ;;  %s4155_s14 = smov 3  }
   0x2   :  { %s4227_s9 = sld [smem:[%s4888_s0 + %s4153_s6]]   ;;  %s4156_s18 = smov 4  }
   0x3   :  { %s4232_s13 = sld [smem:[%s4888_s0 + %s4154_s10]]   ;;  %s4157_s22 = smov 5  }
   0x4   :  { %s4237_s17 = sld [smem:[%s4888_s0 + %s4155_s14]]   ;;  %s4158_s26 = smov 6  }
   0x5   :  { %s4242_s21 = sld [smem:[%s4888_s0 + %s4156_s18]]   ;;  %s4159_s30 = smov 7  }
   0x6   :  { %s4247_s25 = sld [smem:[%s4888_s0 + %s4157_s22]]   ;;  %s4160_s4 = smov 8  }
   0x7   :  { %4894 = sst [smem:[#allocation43_spill]] %s4222_s5  ;;  %s4161_s10 = smov 9  }
   0x8   :  { %4895 = sst [smem:[#allocation44_spill]] %s4227_s9  ;;  %s4162_s15 = smov 10  }
   0x9   :  { %4896 = sst [smem:[#allocation45_spill]] %s4232_s13  ;;  %s4163_s20 = smov 11  }
   0xa   :  { %s4252_s29 = sld [smem:[%s4888_s0 + %s4158_s26]]   ;;  %s4164_s26 = smov 12  }
   0xb   :  { %s4257_s3 = sld [smem:[%s4888_s0 + %s4159_s30]]   ;;  %s4165_s1 = smov 13  }
   0xc   :  { %s4262_s8 = sld [smem:[%s4888_s0 + %s4160_s4]]   ;;  %s4166_s7 = smov 14  }
   0xd   :  { %s4267_s14 = sld [smem:[%s4888_s0 + %s4161_s10]]   ;;  %s4168_s22 = smov 16  }
   0xe   :  { %s4272_s19 = sld [smem:[%s4888_s0 + %s4162_s15]]   ;;  %s4167_s15 = smov 15  }
   0xf   :  { %s4277_s24 = sld [smem:[%s4888_s0 + %s4163_s20]]   ;;  %s4169_s28 = smov 17  }
  0x10   :  { %s4282_s30 = sld [smem:[%s4888_s0 + %s4164_s26]]  }
  0x11   :  { %s4287_s6 = sld [smem:[%s4888_s0 + %s4165_s1]]  }
  0x12   :  { %s4292_s12 = sld [smem:[%s4888_s0 + %s4166_s7]]   ;;  %s4170_s7 = smov 18  }
  0x13   :  { %4897 = sst [smem:[#allocation46_spill]] %s4267_s14 }
  0x14   :  { %s4297_s20 = sld [smem:[%s4888_s0 + %s4167_s15]]   ;;  %s4171_s15 = smov 19  }
  0x15   :  { %s4302_s27 = sld [smem:[%s4888_s0 + %s4168_s22]]   ;;  %s4172_s22 = smov 20  }
  0x16   :  { %s4307_s4 = sld [smem:[%s4888_s0 + %s4169_s28]]   ;;  %s4173_s28 = smov 21  }
  0x17   :  { %s4312_s13 = sld [smem:[%s4888_s0 + %s4170_s7]]   ;;  %s4174_s7 = smov 22  }
  0x18   :  { %s4317_s9 = sld [smem:[%s4888_s0 + %s4171_s15]]   ;;  %s4175_s15 = smov 23  }
  0x19   :  { %s4322_s14 = sld [smem:[%s4888_s0 + %s4172_s22]]   ;;  %s4176_s22 = smov 24  }
  0x1a   :  { %s4327_s5 = sld [smem:[%s4888_s0 + %s4173_s28]]   ;;  %s4177_s28 = smov 25  }
  0x1b   :  { %4898 = sst [smem:[#allocation47_spill]] %s4302_s27 }
  0x1c   :  { %s4337_s27 = sld [smem:[%s4888_s0 + %s4175_s15]]   ;;  %s4179_s15 = smov 27  }
  0x1d   :  { %4899 = sst [smem:[#allocation48_spill]] %s4312_s13 }
  0x1e   :  { %s4332_s13 = sld [smem:[%s4888_s0 + %s4174_s7]]   ;;  %s4178_s7 = smov 26  }
  0x1f   :  { %4900 = sst [smem:[#allocation49_spill]] %s4322_s14 }
  0x20   :  { %4901 = sst [smem:[#allocation50_spill]] %s4327_s5 }
  0x21   :  { %s4342_s14 = sld [smem:[%s4888_s0 + %s4176_s22]]   ;;  %s4180_s22 = smov 28  }
  0x22   :  { %4903 = sst [smem:[#allocation52_spill]] %s4337_s27 }
  0x23   :  { %s4347_s5 = sld [smem:[%s4888_s0 + %s4177_s28]]   ;;  %s4181_s28 = smov 29  }
  0x24   :  { %4902 = sst [smem:[#allocation51_spill]] %s4332_s13 }
  0x25   :  { %s4352_s13 = sld [smem:[%s4888_s0 + %s4178_s7]]   ;;  %s4182_s7 = smov 30  }
  0x26   :  { %s4357_s27 = sld [smem:[%s4888_s0 + %s4179_s15]]   ;;  %s4183_s15 = smov 31  }
  0x27   :  { %4904 = sst [smem:[#allocation53_spill]] %s4342_s14 }
  0x28   :  { %s4362_s14 = sld [smem:[%s4888_s0 + %s4180_s22]]  }
  0x29   :  { %4905 = sst [smem:[#allocation54_spill]] %s4347_s5 }
  0x2a   :  { %s4367_s5 = sld [smem:[%s4888_s0 + %s4181_s28]]  }
  0x2b   :  { %4906 = sst [smem:[#allocation55_spill]] %s4352_s13 }
  0x2c   :  { %4907 = sst [smem:[#allocation56_spill]] %s4357_s27 }
  0x2d   :  { %s4372_s13 = sld [smem:[%s4888_s0 + %s4182_s7]]  }
  0x2e   :  { %s4377_s27 = sld [smem:[%s4888_s0 + %s4183_s15]]  }
  0x2f   :  { %68 = vsyncpa [#allocation3], 0 }
  0x30   :  { %69 = vsyncpa [#allocation6], 0 }
  0x31   :  { %70 = vsyncpa [#allocation9], 0 }
  0x32   :  { %71 = vsyncpa [#allocation12], 0 }
  0x33   :  { %72 = vsyncpa [#allocation15], 0 }
  0x34   :  { %73 = vsyncpa [#allocation18], 0 }
  0x35   :  { %74 = vsyncpa [#allocation21], 0 }
  0x36   :  { %75 = vsyncpa [#allocation24], 0 }
  0x37   :  { %76 = vsyncpa [#allocation27], 0 }
  0x38   :  { %77 = vsyncpa [#allocation30], 0 }
  0x39   :  { %78 = vsyncpa [#allocation4], 0  ;;  %s4184_s22 = smov [#allocation5]   ;;  %s4185_s26 = smov [#allocation8]  }
  0x3a   :  { %s102_s23 = sshll.u32 %s4184_s22, 4  ;;  %s127_s28 = sshll.u32 %s4185_s26, 4  ;;  %s103_s23 = int_to_ptr.vmem [resolvable:$true] %s102_s23  ;;  %s128_s28 = int_to_ptr.vmem [resolvable:$true] %s127_s28 }
  0x3b   :  { %s3759_s1 = scalar_lea.vmem %s103_s23, 256  ;;  %p3764_p1 = scmp.lt.s32.totalorder %s103_s23, %s103_s23 }
  0x3c   :  { %p3760_p0 = scmp.ne.s32.totalorder %s103_s23, %s3759_s1  ;;  %p3765_p2 = scmp.lt.s32.totalorder %s3759_s1, %s3759_s1 }
  0x3e   :  { %p3766_p3 = por %p3765_p2, %p3764_p1 }
  0x40   :  { %p3767_p4 = pnand %p3766_p3, %p3760_p0 }
  0x42   :  { %3770 = shalt.err (!%p3767_p4)
}
  0x43   :  { %s4186_s0 = smov 128   ;;  %s4187_s2 = smov 8  }
  0x44   :  { %108 = dma.hbm_to_vmem [thread:$0]  %s4242_s21, 256, %s103_s23, [#allocation6], %s4186_s0, %s4186_s0, %s4187_s2  }
  0x45   :  { %s3779_s7 = scalar_lea.vmem %s128_s28, 16  ;;  %s3783_s10 = scalar_lea.vmem %s128_s28, 32 }
  0x46   :  { %p3780_p5 = scmp.ne.s32.totalorder %s128_s28, %s3779_s7  ;;  %p3784_p6 = scmp.lt.s32.totalorder %s128_s28, %s128_s28 }
  0x47   :  { %p3785_p7 = scmp.lt.s32.totalorder %s3783_s10, %s3779_s7 }
  0x49   :  { %p3786_p8 = por %p3785_p7, %p3784_p6 }
  0x4b   :  { %p3787_p9 = pnand %p3786_p8, %p3780_p5 }
  0x4d   :  { %3790 = shalt.err (!%p3787_p9)
}
  0x4e   :  { %130 = dma.hbm_to_vmem [thread:$0]  %s4252_s29, 16, %s128_s28, [#allocation9]  }
  0x4f   :  { %s4188_s11 = smov [#allocation11]  }
  0x50   :  { %s149_s15 = sshll.u32 %s4188_s11, 4  ;;  %s150_s15 = int_to_ptr.vmem [resolvable:$true] %s149_s15 }
  0x51   :  { %s3799_s16 = scalar_lea.vmem %s150_s15, 16  ;;  %s3803_s18 = scalar_lea.vmem %s150_s15, 32 }
  0x52   :  { %p3800_p10 = scmp.ne.s32.totalorder %s150_s15, %s3799_s16  ;;  %p3804_p11 = scmp.lt.s32.totalorder %s150_s15, %s150_s15 }
  0x53   :  { %p3805_p12 = scmp.lt.s32.totalorder %s3803_s18, %s3799_s16 }
  0x55   :  { %p3806_p13 = por %p3805_p12, %p3804_p11 }
  0x57   :  { %p3807_p0 = pnand %p3806_p13, %p3800_p10 }
  0x59   :  { %3810 = shalt.err (!%p3807_p0)
}
  0x5a   :  { %152 = dma.hbm_to_vmem [thread:$0]  %s4262_s8, 16, %s150_s15, [#allocation12]  }
  0x5b   :  { %s4189_s21 = smov [#allocation14]   ;;  %s4190_s23 = smov [#allocation17]  }
  0x5c   :  { %s170_s22 = sshll.u32 %s4189_s21, 4  ;;  %s193_s26 = sshll.u32 %s4190_s23, 4  ;;  %s171_s22 = int_to_ptr.vmem [resolvable:$true] %s170_s22  ;;  %s194_s26 = int_to_ptr.vmem [resolvable:$true] %s193_s26 }
  0x5d   :  { %s3819_s1 = scalar_lea.vmem %s171_s22, 256  ;;  %p3824_p2 = scmp.lt.s32.totalorder %s171_s22, %s171_s22 }
  0x5e   :  { %p3820_p1 = scmp.ne.s32.totalorder %s171_s22, %s3819_s1  ;;  %p3825_p3 = scmp.lt.s32.totalorder %s3819_s1, %s3819_s1 }
  0x60   :  { %p3826_p4 = por %p3825_p3, %p3824_p2 }
  0x62   :  { %p3827_p5 = pnand %p3826_p4, %p3820_p1 }
  0x64   :  { %3830 = shalt.err (!%p3827_p5)
}
  0x65   :  { %s4191_s29 = smov 64   ;;  %s4192_s28 = smov 4  }
  0x66   :  { %176 = dma.hbm_to_vmem [thread:$0]  %s4277_s24, 256, %s171_s22, [#allocation15], %s4191_s29, %s4191_s29, %s4192_s28  }
  0x67   :  { %s3839_s8 = scalar_lea.vmem %s194_s26, 16  ;;  %s3843_s7 = scalar_lea.vmem %s194_s26, 32 }
  0x68   :  { %p3840_p6 = scmp.ne.s32.totalorder %s194_s26, %s3839_s8  ;;  %p3844_p7 = scmp.lt.s32.totalorder %s194_s26, %s194_s26 }
  0x69   :  { %p3845_p8 = scmp.lt.s32.totalorder %s3843_s7, %s3839_s8 }
  0x6b   :  { %p3846_p9 = por %p3845_p8, %p3844_p7 }
  0x6d   :  { %p3847_p10 = pnand %p3846_p9, %p3840_p6 }
  0x6f   :  { %3850 = shalt.err (!%p3847_p10)
}
  0x70   :  { %196 = dma.hbm_to_vmem [thread:$0]  %s4287_s6, 16, %s194_s26, [#allocation18]  }
  0x71   :  { %s4193_s10 = smov [#allocation20]   ;;  %s4194_s15 = smov [#allocation23]  }
  0x72   :  { %s212_s11 = sshll.u32 %s4193_s10, 4  ;;  %s234_s16 = sshll.u32 %s4194_s15, 4  ;;  %s213_s11 = int_to_ptr.vmem [resolvable:$true] %s212_s11  ;;  %s235_s16 = int_to_ptr.vmem [resolvable:$true] %s234_s16 }
  0x73   :  { %s3859_s18 = scalar_lea.vmem %s213_s11, 256  ;;  %p3864_p12 = scmp.lt.s32.totalorder %s213_s11, %s213_s11 }
  0x74   :  { %p3860_p11 = scmp.ne.s32.totalorder %s213_s11, %s3859_s18  ;;  %p3865_p13 = scmp.lt.s32.totalorder %s3859_s18, %s3859_s18 }
  0x76   :  { %p3866_p0 = por %p3865_p13, %p3864_p12 }
  0x78   :  { %p3867_p1 = pnand %p3866_p0, %p3860_p11 }
  0x7a   :  { %3870 = shalt.err (!%p3867_p1)
}
  0x7b   :  { %218 = dma.hbm_to_vmem [thread:$0]  %s4297_s20, 256, %s213_s11, [#allocation21], %s4191_s29, %s4191_s29, %s4192_s28  }
  0x7c   :  { %s3879_s24 = scalar_lea.vmem %s235_s16, 256  ;;  %p3884_p3 = scmp.lt.s32.totalorder %s235_s16, %s235_s16 }
  0x7d   :  { %p3880_p2 = scmp.ne.s32.totalorder %s235_s16, %s3879_s24  ;;  %p3885_p4 = scmp.lt.s32.totalorder %s3879_s24, %s3879_s24 }
  0x7f   :  { %p3886_p5 = por %p3885_p4, %p3884_p3 }
  0x81   :  { %p3887_p6 = pnand %p3886_p5, %p3880_p2 }
  0x83   :  { %3890 = shalt.err (!%p3887_p6)
}
  0x84   :  { %240 = dma.hbm_to_vmem [thread:$0]  %s4307_s4, 256, %s235_s16, [#allocation24], %s4191_s29, %s4191_s29, %s4192_s28  }
  0x85   :  { %s4195_s6 = smov [#allocation26]   ;;  %s4196_s22 = smov [#allocation2]  }
  0x86   :  { %s256_s21 = sshll.u32 %s4195_s6, 4  ;;  %s90_s23 = sshll.u32 %s4196_s22, 4  ;;  %s257_s21 = int_to_ptr.vmem [resolvable:$true] %s256_s21  ;;  %s91_s23 = int_to_ptr.vmem [resolvable:$true] %s90_s23 }
  0x87   :  { %s3899_s26 = scalar_lea.vmem %s257_s21, 256  ;;  %p3904_p8 = scmp.lt.s32.totalorder %s257_s21, %s257_s21 }
  0x88   :  { %p3900_p7 = scmp.ne.s32.totalorder %s257_s21, %s3899_s26  ;;  %p3905_p9 = scmp.lt.s32.totalorder %s3899_s26, %s3899_s26 }
  0x8a   :  { %p3906_p10 = por %p3905_p9, %p3904_p8 }
  0x8c   :  { %p3907_p11 = pnand %p3906_p10, %p3900_p7 }
  0x8e   :  { %3910 = shalt.err (!%p3907_p11)
}
  0x8f   :  { %262 = dma.hbm_to_vmem [thread:$0]  %s4317_s9, 256, %s257_s21, [#allocation27], %s4191_s29, %s4191_s29, %s4192_s28  }
  0x90   :  { %s3919_s20 = scalar_lea.vmem %s91_s23, 256  ;;  %p3924_p13 = scmp.lt.s32.totalorder %s91_s23, %s91_s23 }
  0x91   :  { %p3920_p12 = scmp.ne.s32.totalorder %s91_s23, %s3919_s20  ;;  %p3925_p0 = scmp.lt.s32.totalorder %s3919_s20, %s3919_s20 }
  0x93   :  { %p3926_p1 = por %p3925_p0, %p3924_p13 }
  0x95   :  { %p3927_p2 = pnand %p3926_p1, %p3920_p12 }
  0x97   :  { %3930 = shalt.err (!%p3927_p2)
}
  0x98   :  { %96 = dma.hbm_to_vmem [thread:$0]  %s4237_s17, 256, %s91_s23, [#allocation3], %s4186_s0, %s4186_s0, %s4187_s2  }
  0x99   :  { %s4197_s4 = smov [#allocation7]   ;;  %s4198_s8 = smov [#allocation10]  }
  0x9a   :  { %s114_s1 = sshll.u32 %s4197_s4, 4  ;;  %s136_s7 = sshll.u32 %s4198_s8, 4  ;;  %s115_s1 = int_to_ptr.vmem [resolvable:$true] %s114_s1  ;;  %s137_s7 = int_to_ptr.vmem [resolvable:$true] %s136_s7 }
  0x9b   :  { %s3939_s10 = scalar_lea.vmem %s115_s1, 256  ;;  %p3944_p4 = scmp.lt.s32.totalorder %s115_s1, %s115_s1 }
  0x9c   :  { %p3940_p3 = scmp.ne.s32.totalorder %s115_s1, %s3939_s10  ;;  %p3945_p5 = scmp.lt.s32.totalorder %s3939_s10, %s3939_s10 }
  0x9e   :  { %p3946_p6 = por %p3945_p5, %p3944_p4 }
  0xa0   :  { %p3947_p7 = pnand %p3946_p6, %p3940_p3 }
  0xa2   :  { %3950 = shalt.err (!%p3947_p7)
}
  0xa3   :  { %120 = dma.hbm_to_vmem [thread:$0]  %s4247_s25, 256, %s115_s1, [#allocation6], %s4191_s29, %s4191_s29, %s4192_s28  }
  0xa4   :  { %s3959_s9 = scalar_lea.vmem %s137_s7, 256  ;;  %p3964_p9 = scmp.lt.s32.totalorder %s137_s7, %s137_s7 }
  0xa5   :  { %p3960_p8 = scmp.ne.s32.totalorder %s137_s7, %s3959_s9  ;;  %p3965_p10 = scmp.lt.s32.totalorder %s3959_s9, %s3959_s9 }
  0xa7   :  { %p3966_p11 = por %p3965_p10, %p3964_p9 }
  0xa9   :  { %p3967_p12 = pnand %p3966_p11, %p3960_p8 }
  0xab   :  { %3970 = shalt.err (!%p3967_p12)
}
  0xac   :  { %142 = dma.hbm_to_vmem [thread:$0]  %s4257_s3, 256, %s137_s7, [#allocation9], %s4191_s29, %s4191_s29, %s4192_s28  }
  0xad   :  { %s4199_s17 = smov [#allocation13]   ;;  %s4200_s15 = smov [#allocation16]  }
  0xae   :  { %s161_s11 = sshll.u32 %s4199_s17, 4  ;;  %s183_s16 = sshll.u32 %s4200_s15, 4  ;;  %s162_s11 = int_to_ptr.vmem [resolvable:$true] %s161_s11  ;;  %s184_s16 = int_to_ptr.vmem [resolvable:$true] %s183_s16 }
  0xaf   :  { %s3979_s18 = scalar_lea.vmem %s162_s11, 16  ;;  %s3983_s25 = scalar_lea.vmem %s162_s11, 32 }
  0xb0   :  { %p3980_p13 = scmp.ne.s32.totalorder %s162_s11, %s3979_s18  ;;  %p3984_p0 = scmp.lt.s32.totalorder %s162_s11, %s162_s11 }
  0xb1   :  { %p3985_p1 = scmp.lt.s32.totalorder %s3983_s25, %s3979_s18 }
  0xb3   :  { %p3986_p2 = por %p3985_p1, %p3984_p0 }
  0xb5   :  { %p3987_p3 = pnand %p3986_p2, %p3980_p13 }
  0xb7   :  { %3990 = shalt.err (!%p3987_p3)
}
  0xb8   :  { %164 = dma.hbm_to_vmem [thread:$0]  %s4272_s19, 16, %s162_s11, [#allocation12]  }
  0xb9   :  { %s3999_s24 = scalar_lea.vmem %s184_s16, 16  ;;  %s4003_s6 = scalar_lea.vmem %s184_s16, 32 }
  0xba   :  { %p4000_p4 = scmp.ne.s32.totalorder %s184_s16, %s3999_s24  ;;  %p4004_p5 = scmp.lt.s32.totalorder %s184_s16, %s184_s16 }
  0xbb   :  { %p4005_p6 = scmp.lt.s32.totalorder %s4003_s6, %s3999_s24 }
  0xbd   :  { %p4006_p7 = por %p4005_p6, %p4004_p5 }
  0xbf   :  { %p4007_p8 = pnand %p4006_p7, %p4000_p4 }
  0xc1   :  { %4010 = shalt.err (!%p4007_p8)
}
  0xc2   :  { %186 = dma.hbm_to_vmem [thread:$0]  %s4282_s30, 16, %s184_s16, [#allocation15]  }
  0xc3   :  { %s4201_s3 = smov [#allocation19]   ;;  %s4202_s22 = smov [#allocation22]  }
  0xc4   :  { %s203_s21 = sshll.u32 %s4201_s3, 4  ;;  %s225_s23 = sshll.u32 %s4202_s22, 4  ;;  %s204_s21 = int_to_ptr.vmem [resolvable:$true] %s203_s21  ;;  %s226_s23 = int_to_ptr.vmem [resolvable:$true] %s225_s23 }
  0xc5   :  { %s4019_s26 = scalar_lea.vmem %s204_s21, 16  ;;  %s4023_s20 = scalar_lea.vmem %s204_s21, 32 }
  0xc6   :  { %p4020_p9 = scmp.ne.s32.totalorder %s204_s21, %s4019_s26  ;;  %p4024_p10 = scmp.lt.s32.totalorder %s204_s21, %s204_s21 }
  0xc7   :  { %p4025_p11 = scmp.lt.s32.totalorder %s4023_s20, %s4019_s26 }
  0xc9   :  { %p4026_p12 = por %p4025_p11, %p4024_p10 }
  0xcb   :  { %p4027_p13 = pnand %p4026_p12, %p4020_p9 }
  0xcd   :  { %4030 = shalt.err (!%p4027_p13)
}
  0xce   :  { %206 = dma.hbm_to_vmem [thread:$0]  %s4292_s12, 16, %s204_s21, [#allocation18]  }
  0xcf   :  { %s4039_s19 = scalar_lea.vmem %s226_s23, 16  ;;  %s4043_s4 = scalar_lea.vmem %s226_s23, 32 }
  0xd0   :  { %p4040_p0 = scmp.ne.s32.totalorder %s226_s23, %s4039_s19  ;;  %p4044_p1 = scmp.lt.s32.totalorder %s226_s23, %s226_s23 }
  0xd1   :  { %p4045_p2 = scmp.lt.s32.totalorder %s4043_s4, %s4039_s19 }
  0xd3   :  { %p4046_p3 = por %p4045_p2, %p4044_p1 }
  0xd5   :  { %p4047_p4 = pnand %p4046_p3, %p4040_p0 }
  0xd7   :  { %4050 = shalt.err (!%p4047_p4)
}
  0xd8   :  { %s4908_s30 = sld [smem:[#allocation47_spill]]  ;;  %s4203_s1 = smov [#allocation25]  }
  0xd9   :  { %s247_s8 = sshll.u32 %s4203_s1, 4  ;;  %s4204_s7 = smov [#allocation28]   ;;  %s248_s8 = int_to_ptr.vmem [resolvable:$true] %s247_s8 }
  0xda   :  { %s270_s10 = sshll.u32 %s4204_s7, 4  ;;  %s4059_s9 = scalar_lea.vmem %s248_s8, 16  ;;  %s271_s10 = int_to_ptr.vmem [resolvable:$true] %s270_s10 }
  0xdb   :  { %p4060_p5 = scmp.ne.s32.totalorder %s248_s8, %s4059_s9  ;;  %s4063_s17 = scalar_lea.vmem %s248_s8, 32 }
  0xdc   :  { %p4064_p6 = scmp.lt.s32.totalorder %s248_s8, %s248_s8  ;;  %p4065_p7 = scmp.lt.s32.totalorder %s4063_s17, %s4059_s9 }
  0xde   :  { %228 = dma.hbm_to_vmem [thread:$0]  %s4908_s30, 16, %s226_s23, [#allocation21]  }
  0xdf   :  { %p4066_p8 = por %p4065_p7, %p4064_p6 }
  0xe1   :  { %p4067_p9 = pnand %p4066_p8, %p4060_p5 }
  0xe3   :  { %4070 = shalt.err (!%p4067_p9)
}
  0xe4   :  { %s4909_s12 = sld [smem:[#allocation48_spill]]  ;;  %s4079_s11 = scalar_lea.vmem %s271_s10, 256 }
  0xe5   :  { %p4080_p10 = scmp.ne.s32.totalorder %s271_s10, %s4079_s11  ;;  %p4084_p11 = scmp.lt.s32.totalorder %s271_s10, %s271_s10 }
  0xe6   :  { %p4085_p12 = scmp.lt.s32.totalorder %s4079_s11, %s4079_s11 }
  0xe8   :  { %p4086_p13 = por %p4085_p12, %p4084_p11 }
  0xea   :  { %250 = dma.hbm_to_vmem [thread:$0]  %s4909_s12, 16, %s248_s8, [#allocation24]  }
  0xeb   :  { %p4087_p0 = pnand %p4086_p13, %p4080_p10 }
  0xed   :  { %4090 = shalt.err (!%p4087_p0)
}
  0xee   :  { %s4910_s15 = sld [smem:[#allocation50_spill]]  ;;  %s4205_s16 = smov [#allocation29]  }
  0xef   :  { %s288_s18 = sshll.u32 %s4205_s16, 4  ;;  %s289_s18 = int_to_ptr.vmem [resolvable:$true] %s288_s18 }
  0xf0   :  { %s4099_s25 = scalar_lea.vmem %s289_s18, 256  ;;  %p4104_p2 = scmp.lt.s32.totalorder %s289_s18, %s289_s18 }
  0xf1   :  { %p4100_p1 = scmp.ne.s32.totalorder %s289_s18, %s4099_s25  ;;  %p4105_p3 = scmp.lt.s32.totalorder %s4099_s25, %s4099_s25 }
  0xf3   :  { %p4106_p4 = por %p4105_p3, %p4104_p2 }
  0xf4   :  { %276 = dma.hbm_to_vmem [thread:$0]  %s4910_s15, 256, %s271_s10, [#allocation27], %s4191_s29, %s4191_s29, %s4192_s28  }
  0xf5   :  { %p4107_p5 = pnand %p4106_p4, %p4100_p1 }
  0xf7   :  { %4110 = shalt.err (!%p4107_p5)
}
  0xf8   :  { %s4911_s24 = sld [smem:[#allocation54_spill]] }
  0xfe   :  { %294 = dma.hbm_to_vmem [thread:$0]  %s4911_s24, 256, %s289_s18, [#allocation30], %s4191_s29, %s4191_s29, %s4192_s28  }
  0xff   :  { %4131 = dma.done.wait [#allocation3], 256  }
 0x100   :  { %4132 = vsyncadd [#allocation3], 4294967040 }
 0x101   :  { %4133 = dma.done.wait [#allocation6], 512  }
 0x102   :  { %4134 = vsyncadd [#allocation6], 4294966784 }
 0x103   :  { %4135 = dma.done.wait [#allocation9], 272  }
 0x104   :  { %4136 = vsyncadd [#allocation9], 4294967024 }
 0x105   :  { %4137 = dma.done.wait [#allocation12], 32  }
 0x106   :  { %4138 = vsyncadd [#allocation12], 4294967264 }
 0x107   :  { %4139 = dma.done.wait [#allocation15], 272  }
 0x108   :  { %4140 = vsyncadd [#allocation15], 4294967024 }
 0x109   :  { %4141 = dma.done.wait [#allocation18], 32  }
 0x10a   :  { %4142 = vsyncadd [#allocation18], 4294967264 }
 0x10b   :  { %4143 = dma.done.wait [#allocation21], 272  }
 0x10c   :  { %4144 = vsyncadd [#allocation21], 4294967024 }
 0x10d   :  { %4145 = dma.done.wait [#allocation24], 272  }
 0x10e   :  { %4146 = vsyncadd [#allocation24], 4294967024 }
 0x10f   :  { %4147 = dma.done.wait [#allocation27], 512  }
 0x110   :  { %4148 = vsyncadd [#allocation27], 4294966784 }
 0x111   :  { %4149 = dma.done.wait [#allocation30], 256  }
 0x112   :  { %4150 = vsyncadd [#allocation30], 4294967040  ;;  %s4912_s29 = sld [smem:[#allocation43_spill]]  ;;  %v4206_v0 = vmov 0.0   ;;  %vm4207_vm0 = vmmov 0   ;;  %v3653_v1 = vld [vmem:[#allocation10 + $0x8] sm:$0xff]  }
 0x113   :  { %3294 = vmatprep.subr.bf16.mxu1 %v4206_v0  ;;  %3286 = vmatprep.subr.bf16.mxu0 %v4206_v0  ;;  %v3654_v2 = vld [vmem:[#allocation7 + $0x8] sm:$0xff]   ;;  %v3655_v3 = vld [vmem:[#allocation10] sm:$0xff]   ;;  %v3656_v4 = vld [vmem:[#allocation7] sm:$0xff]   ;;  %vm394_vm1 = vcmask 261120   ;;  %vm570_vm2 = vcmask 64512   ;;  %s4208_s28 = smov 112  }
 0x114   :  { %3298 = vmatprep.mubr.msk.bf16.mxu1 %vm4207_vm0, %v4206_v0  ;;  %3290 = vmatprep.mubr.msk.bf16.mxu0 %vm4207_vm0, %v4206_v0  ;;  %v3114_v10 = vld [vmem:[#allocation11] ss:$0 sm:$0xff]  ;;  %v3110_v11 = vld [vmem:[#allocation8] ss:$0 sm:$0xff]  ;;  %s4209_s6 = smov 120   ;;  %s4913_s3 = sld [smem:[#allocation46_spill]] }
 0x115   :  { %3295 = vmatpush3.bf16.msra.mxu1 %v3653_v1  ;;  %3287 = vmatpush3.bf16.msra.mxu0 %v3654_v2  ;;  %s4210_s21 = smov 104   ;;  %v368_v49 = vld [vmem:[#allocation5] sm:$0xff]  ;;  %vm634_vm3 = vcmask 1043456   ;;  %s4211_s22 = smov 16   ;;  %vm1030_vm4 = vcmask 130048   ;;  %vm1032_vm5 = vcmask 195584  }
 0x116   :  { %3296 = vmatprep.subr.bf16.mxu1 %v4206_v0  ;;  %3288 = vmatprep.subr.bf16.mxu0 %v4206_v0  ;;  %s4212_s23 = smov 24   ;;  %s4914_s26 = sld [smem:[#allocation44_spill]]  ;;  %vm2960_vm6 = vcmask 523264  }
 0x117   :  { %s4915_s20 = sld [smem:[#allocation45_spill]] }
 0x118   :  { %v4436_v5 = vld [vmem:[%s4912_s29] sm:$0xff]  ;;  %v4439_v6 = vld [vmem:[%s4912_s29 + $0x8] sm:$0xff]  ;;  %s4916_s19 = sld [smem:[#allocation49_spill]] }
 0x119   :  { %v370_v7 = vpack.c.bf16 %v4439_v6, %v4436_v5  ;;  %3297 = vmatpush3.bf16.msra.mxu1 %v3655_v3  ;;  %3289 = vmatpush3.bf16.msra.mxu0 %v3656_v4  ;;  %s4917_s4 = sld [smem:[#allocation51_spill]] }
 0x11a   :  { %3310 = vmatprep.subr.bf16.mxu1 %v4206_v0  ;;  %3302 = vmatprep.subr.bf16.mxu0 %v4206_v0  ;;  %v3657_v27 = vld [vmem:[%s4913_s3 + $0x8] sm:$0xff]   ;;  %v3658_v28 = vld [vmem:[%s4913_s3] sm:$0xff]   ;;  %s4918_s30 = sld [smem:[#allocation56_spill]] }
 0x11b   :  { %s4919_s1 = sld [smem:[#allocation52_spill]] }
 0x11c   :  { %3299 = vmatmul.mubr.msk.bf16.vlgmr.msra.gmra.mxu1 %vm394_vm1, %v370_v7  ;;  %3291 = vmatmul.mubr.msk.bf16.vlgmr.msra.gmra.mxu0 %vm394_vm1, %v370_v7  ;;  %s4920_s8 = sld [smem:[#allocation53_spill]] }
 0x11d   :  { %3312 = vmatprep.mubr.msk.bf16.mxu1 %vm4207_vm0, %v4206_v0  ;;  %3306 = vmatprep.mubr.msk.bf16.mxu0 %vm4207_vm0, %v4206_v0  ;;  %s4921_s7 = sld [smem:[#allocation55_spill]] }
 0x11e   :  { %3303 = vmatpush3.bf16.msra.mxu0 %v3657_v27 }
 0x11f   :  { %3304 = vmatprep.subr.bf16.mxu0 %v4206_v0 }
 0x122   :  { %3305 = vmatpush3.bf16.msra.mxu0 %v3658_v28 }
 0x123   :  { %3316 = vmatprep.subr.bf16.mxu0 %v4206_v0 }
 0x125   :  { %3307 = vmatmul.mubr.msk.bf16.vlgmr.msra.gmra.mxu0 %vm394_vm1, %v370_v7 }
 0x126   :  { %3318 = vmatprep.mubr.msk.bf16.mxu0 %vm4207_vm0, %v4206_v0 }
 0x1dc   :  { %v496_v8 = vpop.f32.mrf.mxu1  ;;  %v432_v9 = vpop.f32.mrf.mxu0 }
 0x1dd   :  { %v497_v15 = vadd.f32 %v3114_v10, %v496_v8  ;;  %v433_v16 = vadd.f32 %v3110_v11, %v432_v9 }
 0x1de   :  { %v3300_v12 = vpop.f32.mrf.mxu1  ;;  %v3292_v13 = vpop.f32.mrf.mxu0 }
 0x1e0   :  { %v499_v14 = vpop.f32.mrf.mxu1  ;;  %v435_v18 = vpop.f32.mrf.mxu0 }
 0x1e1   :  { %v500_v17 = vadd.f32 %v3114_v10, %v499_v14  ;;  %v436_v19 = vadd.f32 %v3110_v11, %v435_v18 }
 0x1e2   :  { %v3301_v20 = vpop.f32.mrf.mxu1  ;;  %v3293_v22 = vpop.f32.mrf.mxu0 }
 0x1e3   :  { %v568_v21 = vpack.c.bf16 %v500_v17, %v497_v15  ;;  %v567_v23 = vpack.c.bf16 %v436_v19, %v433_v16  ;;  %v369_v17 = vld [vmem:[#allocation5 + $0x8] sm:$0xff] }
 0x1e5   :  { %795 = vrot.lane.b32.xlu1 %v568_v21, %s4208_s28  ;;  %682 = vrot.lane.b32.xlu0 %v568_v21, %s4209_s6  ;;  %v575_v24 = vsel %vm570_vm2, %v568_v21, 0  ;;  %v1035_v25 = vrot.slane %v568_v21, 4  ;;  %v1034_v26 = vrot.slane %v567_v23, 4 }
 0x1e6   :  { %3311 = vmatpush3.bf16.xpose.msra.mxu1 %v575_v24 }
 0x1e7   :  { %3322 = vmatprep.subr.bf16.mxu1 %v4206_v0  ;;  %v1040_v38 = vsel %vm570_vm2, %v1035_v25, 0 }
 0x1e9   :  { %793 = vrot.lane.b32.xlu1 %v567_v23, %s4208_s28  ;;  %679 = vrot.lane.b32.xlu0 %v567_v23, %s4209_s6 }
 0x1ed   :  { %905 = vrot.lane.b32.xlu1 %v567_v23, %s4210_s21  ;;  %907 = vrot.lane.b32.xlu0 %v568_v21, %s4210_s21 }
 0x1ee   :  { %3313 = vmatmul.mubr.msk.bf16.vlgmr.msra.gmra.mxu1 %vm570_vm2, %v567_v23 }
 0x1ef   :  { %3324 = vmatprep.mubr.msk.bf16.mxu1 %vm4207_vm0, %v4206_v0 }
 0x1f1   :  { %1145 = vrot.lane.b32.xlu0 %v1035_v25, %s4209_s6  ;;  %1143 = vrot.lane.b32.xlu1 %v1034_v26, %s4209_s6 }
 0x1f5   :  { %1257 = vrot.lane.b32.xlu0 %v1035_v25, %s4208_s28  ;;  %1255 = vrot.lane.b32.xlu1 %v1034_v26, %s4208_s28 }
 0x1f9   :  { %1369 = vrot.lane.b32.xlu0 %v1035_v25, %s4210_s21  ;;  %1367 = vrot.lane.b32.xlu1 %v1034_v26, %s4210_s21 }
 0x257   :  { %v683_v29 = vpop.permute.xlu0 %682  ;;  %v796_v31 = vpop.permute.xlu1 %795 }
 0x258   :  { %v688_v30 = vsel %vm570_vm2, %v683_v29, 0  ;;  %v801_v33 = vsel %vm570_vm2, %v796_v31, 0 }
 0x259   :  { %3323 = vmatpush3.bf16.xpose.msra.mxu1 %v688_v30 }
 0x25a   :  { %3334 = vmatprep.subr.bf16.mxu1 %v4206_v0 }
 0x25b   :  { %v680_v32 = vpop.permute.xlu0 %679  ;;  %v794_v35 = vpop.permute.xlu1 %793 }
 0x25f   :  { %v908_v34 = vpop.permute.xlu0 %907  ;;  %v906_v37 = vpop.permute.xlu1 %905 }
 0x260   :  { %3325 = vmatmul.mubr.msk.bf16.vlgmr.msra.gmra.mxu1 %vm570_vm2, %v680_v32  ;;  %v913_v36 = vsel %vm570_vm2, %v908_v34, 0 }
 0x261   :  { %3335 = vmatpush3.bf16.xpose.msra.mxu1 %v801_v33  ;;  %3336 = vmatprep.mubr.msk.bf16.mxu1 %vm4207_vm0, %v4206_v0 }
 0x262   :  { %3346 = vmatprep.subr.bf16.mxu1 %v4206_v0 }
 0x263   :  { %v1146_v39 = vpop.permute.xlu0 %1145  ;;  %v1144_v42 = vpop.permute.xlu1 %1143 }
 0x264   :  { %v1151_v40 = vsel %vm570_vm2, %v1146_v39, 0  ;;  %v560_v39 = vpop.f32.mrf.mxu0 }
 0x267   :  { %v1258_v41 = vpop.permute.xlu0 %1257  ;;  %v1256_v45 = vpop.permute.xlu1 %1255 }
 0x268   :  { %3337 = vmatmul.mubr.msk.bf16.vlgmr.msra.gmra.mxu1 %vm570_vm2, %v794_v35  ;;  %v1263_v43 = vsel %vm570_vm2, %v1258_v41, 0 }
 0x269   :  { %3347 = vmatpush3.bf16.xpose.msra.mxu1 %v913_v36  ;;  %3348 = vmatprep.mubr.msk.bf16.mxu1 %vm4207_vm0, %v4206_v0 }
 0x26a   :  { %3358 = vmatprep.subr.bf16.mxu1 %v4206_v0 }
 0x26b   :  { %v1370_v44 = vpop.permute.xlu0 %1369  ;;  %v1368_v47 = vpop.permute.xlu1 %1367 }
 0x26c   :  { %v1375_v46 = vsel %vm570_vm2, %v1370_v44, 0  ;;  %v3118_v44 = vld [vmem:[#allocation13] ss:$0 sm:$0xff] }
 0x270   :  { %3349 = vmatmul.mubr.msk.bf16.vlgmr.msra.gmra.mxu1 %vm570_vm2, %v906_v37 }
 0x271   :  { %3359 = vmatpush3.bf16.xpose.msra.mxu1 %v1040_v38  ;;  %3360 = vmatprep.mubr.msk.bf16.mxu1 %vm4207_vm0, %v4206_v0 }
 0x272   :  { %3370 = vmatprep.subr.bf16.mxu1 %v4206_v0 }
 0x278   :  { %3361 = vmatmul.mubr.msk.bf16.vlgmr.msra.gmra.mxu1 %vm570_vm2, %v1034_v26 }
 0x279   :  { %3371 = vmatpush3.bf16.xpose.msra.mxu1 %v1151_v40  ;;  %3372 = vmatprep.mubr.msk.bf16.mxu1 %vm4207_vm0, %v4206_v0 }
 0x27a   :  { %3382 = vmatprep.subr.bf16.mxu1 %v4206_v0 }
 0x280   :  { %3373 = vmatmul.mubr.msk.bf16.vlgmr.msra.gmra.mxu1 %vm570_vm2, %v1144_v42  ;;  %v3308_v42 = vpop.f32.mrf.mxu0 }
 0x281   :  { %3383 = vmatpush3.bf16.xpose.msra.mxu1 %v1263_v43  ;;  %3384 = vmatprep.mubr.msk.bf16.mxu1 %vm4207_vm0, %v4206_v0 }
 0x282   :  { %3394 = vmatprep.subr.bf16.mxu1 %v4206_v0 }
 0x288   :  { %3385 = vmatmul.mubr.msk.bf16.vlgmr.msra.gmra.mxu1 %vm570_vm2, %v1256_v45 }
 0x289   :  { %3395 = vmatpush3.bf16.xpose.msra.mxu1 %v1375_v46  ;;  %3396 = vmatprep.mubr.msk.bf16.mxu1 %vm4207_vm0, %v4206_v0 }
 0x28a   :  { %3406 = vmatprep.subr.bf16.mxu1 %v4206_v0 }
 0x290   :  { %3397 = vmatmul.mubr.msk.bf16.vlgmr.msra.gmra.mxu1 %vm570_vm2, %v1368_v47 }
 0x291   :  { %3410 = vmatprep.mubr.msk.bf16.mxu1 %vm4207_vm0, %v4206_v0 }
 0x2ae   :  { %v611_v48 = vpop.f32.mrf.mxu1 }
 0x2af   :  { %v617_v50 = vmul.f32 0.35355338, %v611_v48 }
 0x2b0   :  { %v3314_v51 = vpop.f32.mrf.mxu1 }
 0x2b1   :  { %v618_v52 = vadd.f32 %v617_v50, %v368_v49  ;;  %v563_v50 = vpop.f32.mrf.mxu0 }
 0x2b2   :  { %v614_v53 = vpop.f32.mrf.mxu1 }
 0x2b3   :  { %v619_v54 = vsel %vm570_vm2, %v618_v52, -inf  ;;  %v564_v53 = vadd.f32 %v3118_v44, %v563_v50 }
 0x2b4   :  { %620 = vmax.xlane.f32.xlu0 %v619_v54  ;;  %v3315_v55 = vpop.f32.mrf.mxu1  ;;  %v3309_v54 = vpop.f32.mrf.mxu0 }
 0x320   :  { %v724_v56 = vpop.f32.mrf.mxu1 }
 0x321   :  { %v730_v57 = vmul.f32 0.35355338, %v724_v56 }
 0x322   :  { %v3326_v58 = vpop.f32.mrf.mxu1 }
 0x323   :  { %v4511_v59 = vadd.f32 %v730_v57, %v368_v49 }
 0x324   :  { %v727_v60 = vpop.f32.mrf.mxu1 }
 0x325   :  { %v732_v61 = vsel %vm570_vm2, %v4511_v59, -inf }
 0x326   :  { %733 = vmax.xlane.f32.xlu1 %v732_v61  ;;  %v3327_v62 = vpop.f32.mrf.mxu1 }
 0x328   :  { %v837_v63 = vpop.f32.mrf.mxu1 }
 0x329   :  { %v843_v1 = vmul.f32 0.35355338, %v837_v63 }
 0x32a   :  { %v3338_v2 = vpop.f32.mrf.mxu1 }
 0x32b   :  { %v4515_v3 = vadd.f32 %v843_v1, %v368_v49 }
 0x32c   :  { %v840_v4 = vpop.f32.mrf.mxu1 }
 0x32d   :  { %v845_v7 = vsel %vm570_vm2, %v4515_v3, -inf }
 0x32e   :  { %846 = vmax.xlane.f32.xlu0 %v845_v7  ;;  %v3339_v8 = vpop.f32.mrf.mxu1 }
 0x330   :  { %v949_v9 = vpop.f32.mrf.mxu1 }
 0x331   :  { %v955_v10 = vmul.f32 0.35355338, %v949_v9 }
 0x332   :  { %v3350_v11 = vpop.f32.mrf.mxu1 }
 0x333   :  { %v4519_v12 = vadd.f32 %v955_v10, %v368_v49  ;;  %v561_v49 = vadd.f32 %v3118_v44, %v560_v39 }
 0x334   :  { %v952_v13 = vpop.f32.mrf.mxu1 }
 0x335   :  { %v957_v14 = vsel %vm570_vm2, %v4519_v12, -inf  ;;  %v4537_v57 = vpack.c.bf16 %v564_v53, %v561_v49 }
 0x336   :  { %958 = vmax.xlane.f32.xlu0 %v957_v14  ;;  %v3351_v15 = vpop.f32.mrf.mxu1 }
 0x337   :  { %v636_v58 = vsel %vm634_vm3, %v4537_v57, 0 }
 0x338   :  { %v1076_v16 = vpop.f32.mrf.mxu1  ;;  %3317 = vmatpush3.bf16.msra.mxu0 %v636_v58 }
 0x339   :  { %v1082_v18 = vmul.f32 0.35355338, %v1076_v16  ;;  %3328 = vmatprep.subr.bf16.mxu0 %v4206_v0 }
 0x33a   :  { %v3362_v19 = vpop.f32.mrf.mxu1 }
 0x33b   :  { %v4523_v20 = vadd.f32 %v1082_v18, %v369_v17 }
 0x33c   :  { %v1079_v21 = vpop.f32.mrf.mxu1 }
 0x33d   :  { %v621_v22 = vpop.xlane.xlu0 %620  ;;  %v1084_v23 = vsel %vm570_vm2, %v4523_v20, -inf }
 0x33e   :  { %v622_v24 = vsub.f32 %v618_v52, %v621_v22  ;;  %1085 = vmax.xlane.f32.xlu1 %v1084_v23  ;;  %v3363_v25 = vpop.f32.mrf.mxu1 }
 0x340   :  { %v623_v26 = vmul.f32 1.442695, %v622_v24  ;;  %v1187_v27 = vpop.f32.mrf.mxu1 }
 0x341   :  { %v1193_v28 = vmul.f32 0.35355338, %v1187_v27 }
 0x342   :  { %3675 = vpow2.f32 %v623_v26  ;;  %v3374_v29 = vpop.f32.mrf.mxu1 }
 0x343   :  { %v4527_v30 = vadd.f32 %v1193_v28, %v369_v17 }
 0x344   :  { %v1190_v31 = vpop.f32.mrf.mxu1 }
 0x345   :  { %v1195_v32 = vsel %vm570_vm2, %v4527_v30, -inf }
 0x346   :  { %1196 = vmax.xlane.f32.xlu0 %v1195_v32  ;;  %v3375_v33 = vpop.f32.mrf.mxu1 }
 0x348   :  { %v1299_v34 = vpop.f32.mrf.mxu1 }
 0x349   :  { %v1305_v35 = vmul.f32 0.35355338, %v1299_v34 }
 0x34a   :  { %v3386_v36 = vpop.f32.mrf.mxu1 }
 0x34b   :  { %v4531_v37 = vadd.f32 %v1305_v35, %v369_v17 }
 0x34c   :  { %v1302_v38 = vpop.f32.mrf.mxu1 }
 0x34d   :  { %v1307_v40 = vsel %vm570_vm2, %v4531_v37, -inf }
 0x34e   :  { %1308 = vmax.xlane.f32.xlu1 %v1307_v40  ;;  %v3387_v41 = vpop.f32.mrf.mxu1 }
 0x34f   :  { %v3676_v43 = vpop.eup %3675 }
 0x350   :  { %v1411_v45 = vpop.f32.mrf.mxu1  ;;  %v625_v47 = vsel %vm570_vm2, %v3676_v43, 0.0 }
 0x351   :  { %v1417_v46 = vmul.f32 0.35355338, %v1411_v45 }
 0x352   :  { %626 = vadd.xlane.f32.xlu1 %v625_v47  ;;  %v3398_v48 = vpop.f32.mrf.mxu1 }
 0x353   :  { %v1418_v51 = vadd.f32 %v1417_v46, %v369_v17 }
 0x354   :  { %v1414_v52 = vpop.f32.mrf.mxu1 }
 0x355   :  { %v1419_v55 = vsel %vm570_vm2, %v1418_v51, -inf }
 0x356   :  { %1420 = vmax.xlane.f32.xlu0 %v1419_v55  ;;  %v3399_v56 = vpop.f32.mrf.mxu1 }
 0x3af   :  { %v734_v60 = vpop.xlane.xlu1 %733 }
 0x3b0   :  { %v735_v61 = vsub.f32 %v4511_v59, %v734_v60 }
 0x3b2   :  { %v736_v62 = vmul.f32 1.442695, %v735_v61 }
 0x3b4   :  { %3677 = vpow2.f32 %v736_v62 }
 0x3b7   :  { %v847_v63 = vpop.xlane.xlu0 %846 }
 0x3b8   :  { %v848_v1 = vsub.f32 %v4515_v3, %v847_v63 }
 0x3ba   :  { %v849_v2 = vmul.f32 1.442695, %v848_v1 }
 0x3bc   :  { %3679 = vpow2.f32 %v849_v2 }
 0x3bf   :  { %v959_v4 = vpop.xlane.xlu0 %958 }
 0x3c0   :  { %v960_v7 = vsub.f32 %v4519_v12, %v959_v4 }
 0x3c1   :  { %v3678_v8 = vpop.eup %3677 }
 0x3c2   :  { %v961_v9 = vmul.f32 1.442695, %v960_v7  ;;  %v738_v10 = vsel %vm570_vm2, %v3678_v8, 0.0 }
 0x3c3   :  { %739 = vadd.xlane.f32.xlu0 %v738_v10 }
 0x3c4   :  { %3681 = vpow2.f32 %v961_v9 }
 0x3c7   :  { %v1086_v14 = vpop.xlane.xlu1 %1085 }
 0x3c8   :  { %v1087_v17 = vsub.f32 %v4523_v20, %v1086_v14 }
 0x3c9   :  { %v4546_v11 = vpop.eup %3679 }
 0x3ca   :  { %v851_v59 = vsel %vm570_vm2, %v4546_v11, 0.0  ;;  %v1088_v23 = vmul.f32 1.442695, %v1087_v17 }
 0x3cb   :  { %852 = vadd.xlane.f32.xlu1 %v851_v59 }
 0x3cf   :  { %v1197_v18 = vpop.xlane.xlu0 %1196 }
 0x3d0   :  { %v1198_v22 = vsub.f32 %v4527_v30, %v1197_v18 }
 0x3d1   :  { %v4550_v13 = vpop.eup %3681 }
 0x3d2   :  { %v963_v3 = vsel %vm570_vm2, %v4550_v13, 0.0  ;;  %v1199_v26 = vmul.f32 1.442695, %v1198_v22 }
 0x3d3   :  { %964 = vadd.xlane.f32.xlu0 %v963_v3 }
 0x3d7   :  { %v1309_v12 = vpop.xlane.xlu1 %1308 }
 0x3d8   :  { %v1310_v24 = vsub.f32 %v4531_v37, %v1309_v12  ;;  %v1096_v37 = vrot.slane %v4537_v57, 4 }
 0x3da   :  { %v1311_v27 = vmul.f32 1.442695, %v1310_v24  ;;  %v1101_v56 = vsel %vm634_vm3, %v1096_v37, 0 }
 0x3db   :  { %v627_v15 = vpop.xlane.xlu1 %626 }
 0x3dc   :  { %857 = vrot.lane.b32.xlu1 %v4537_v57, %s4208_s28  ;;  %3683 = vrcp.f32 %v627_v15 }
 0x3dd   :  { %3685 = vpow2.f32 %v1088_v23 }
 0x3de   :  { %3687 = vpow2.f32 %v1199_v26 }
 0x3df   :  { %v1421_v25 = vpop.xlane.xlu0 %1420  ;;  %3689 = vpow2.f32 %v1311_v27 }
 0x3e0   :  { %969 = vrot.lane.b32.xlu1 %v4537_v57, %s4210_s21  ;;  %v1422_v28 = vsub.f32 %v1418_v51, %v1421_v25 }
 0x3e2   :  { %v1423_v20 = vmul.f32 1.442695, %v1422_v28 }
 0x3e4   :  { %3691 = vpow2.f32 %v1423_v20 }
 0x3e9   :  { %745 = vrot.lane.b32.xlu0 %v4537_v57, %s4209_s6  ;;  %v3684_v16 = vpop.eup %3683 }
 0x3ea   :  { %v629_v19 = vmul.f32 %v3684_v16, %v3676_v43  ;;  %v3686_v29 = vpop.eup %3685 }
 0x3eb   :  { %v4566_v31 = vpop.eup %3687  ;;  %v1090_v30 = vsel %vm570_vm2, %v3686_v29, 0.0 }
 0x3ec   :  { %v630_v21 = vpack.c.bf16 %v629_v19, %v629_v19  ;;  %v4569_v32 = vpop.eup %3689  ;;  %v1201_v33 = vsel %vm570_vm2, %v4566_v31, 0.0 }
 0x3ed   :  { %v1313_v34 = vsel %vm570_vm2, %v4569_v32, 0.0 }
 0x3ee   :  { %3319 = vmatmul.mubr.msk.bf16.vlgmr.msra.gmra.mxu0 %vm570_vm2, %v630_v21 }
 0x3ef   :  { %3330 = vmatprep.mubr.msk.bf16.mxu0 %vm4207_vm0, %v4206_v0 }
 0x3f1   :  { %v4575_v35 = vpop.eup %3691 }
 0x3f2   :  { %v1425_v36 = vsel %vm570_vm2, %v4575_v35, 0.0 }
 0x404   :  { %1091 = vadd.xlane.f32.xlu1 %v1090_v30 }
 0x408   :  { %1202 = vadd.xlane.f32.xlu1 %v1201_v33  ;;  %1314 = vadd.xlane.f32.xlu0 %v1313_v34 }
 0x40c   :  { %1426 = vadd.xlane.f32.xlu1 %v1425_v36 }
 0x41d   :  { %1319 = vrot.lane.b32.xlu1 %v1096_v37, %s4208_s28 }
 0x41e   :  { %1207 = vrot.lane.b32.xlu0 %v1096_v37, %s4209_s6 }
 0x422   :  { %1431 = vrot.lane.b32.xlu0 %v1096_v37, %s4210_s21 }
 0x44c   :  { %v740_v38 = vpop.xlane.xlu0 %739 }
 0x44d   :  { %3693 = vrcp.f32 %v740_v38 }
 0x454   :  { %v853_v39 = vpop.xlane.xlu1 %852 }
 0x455   :  { %3695 = vrcp.f32 %v853_v39  ;;  %v3659_v39 = vld [vmem:[#allocation14 + $0x8] sm:$0xff]  }
 0x456   :  { %3407 = vmatpush3.bf16.msra.mxu1 %v3659_v39 }
 0x457   :  { %3408 = vmatprep.subr.bf16.mxu1 %v4206_v0 }
 0x458   :  { %v858_v45 = vpop.permute.xlu1 %857 }
 0x459   :  { %v863_v48 = vsel %vm634_vm3, %v858_v45, 0 }
 0x45a   :  { %v3694_v40 = vpop.eup %3693 }
 0x45b   :  { %v742_v42 = vmul.f32 %v3694_v40, %v3678_v8 }
 0x45c   :  { %v965_v41 = vpop.xlane.xlu0 %964  ;;  %v970_v50 = vpop.permute.xlu1 %969 }
 0x45d   :  { %3697 = vrcp.f32 %v965_v41  ;;  %v743_v46 = vpack.c.bf16 %v742_v42, %v742_v42  ;;  %v975_v53 = vsel %vm634_vm3, %v970_v50, 0 }
 0x460   :  { %v746_v43 = vpop.permute.xlu0 %745 }
 0x461   :  { %v751_v44 = vsel %vm634_vm3, %v746_v43, 0 }
 0x462   :  { %3329 = vmatpush3.bf16.msra.mxu0 %v751_v44  ;;  %v3696_v47 = vpop.eup %3695  ;;  %v3660_v44 = vld [vmem:[#allocation14] sm:$0xff]  }
 0x463   :  { %3340 = vmatprep.subr.bf16.mxu0 %v4206_v0  ;;  %v855_v49 = vmul.f32 %v3696_v47, %v4546_v11  ;;  %3409 = vmatpush3.bf16.msra.mxu1 %v3660_v44  ;;  %v3142_v44 = vld [vmem:[#allocation17] ss:$0 sm:$0xff] }
 0x464   :  { %3422 = vmatprep.subr.bf16.mxu1 %v4206_v0 }
 0x465   :  { %3331 = vmatmul.mubr.msk.bf16.vlgmr.msra.gmra.mxu0 %vm570_vm2, %v743_v46  ;;  %v856_v51 = vpack.c.bf16 %v855_v49, %v855_v49 }
 0x466   :  { %3341 = vmatpush3.bf16.msra.mxu0 %v863_v48  ;;  %3342 = vmatprep.mubr.msk.bf16.mxu0 %vm4207_vm0, %v4206_v0 }
 0x467   :  { %3352 = vmatprep.subr.bf16.mxu0 %v4206_v0 }
 0x46a   :  { %v3698_v52 = vpop.eup %3697 }
 0x46b   :  { %v967_v54 = vmul.f32 %v3698_v52, %v4550_v13 }
 0x46d   :  { %3343 = vmatmul.mubr.msk.bf16.vlgmr.msra.gmra.mxu0 %vm570_vm2, %v856_v51  ;;  %v968_v55 = vpack.c.bf16 %v967_v54, %v967_v54 }
 0x46e   :  { %3353 = vmatpush3.bf16.msra.mxu0 %v975_v53  ;;  %3354 = vmatprep.mubr.msk.bf16.mxu0 %vm4207_vm0, %v4206_v0 }
 0x46f   :  { %3364 = vmatprep.subr.bf16.mxu0 %v4206_v0 }
 0x475   :  { %3355 = vmatmul.mubr.msk.bf16.vlgmr.msra.gmra.mxu0 %vm570_vm2, %v968_v55 }
 0x476   :  { %3365 = vmatpush3.bf16.msra.mxu0 %v1101_v56  ;;  %3366 = vmatprep.mubr.msk.bf16.mxu0 %vm4207_vm0, %v4206_v0 }
 0x477   :  { %3376 = vmatprep.subr.bf16.mxu0 %v4206_v0 }
 0x48d   :  { %v1092_v57 = vpop.xlane.xlu1 %1091 }
 0x48e   :  { %3699 = vrcp.f32 %v1092_v57 }
 0x491   :  { %v1203_v58 = vpop.xlane.xlu1 %1202  ;;  %v1315_v60 = vpop.xlane.xlu0 %1314 }
 0x492   :  { %3701 = vrcp.f32 %v1203_v58 }
 0x493   :  { %3703 = vrcp.f32 %v1315_v60 }
 0x495   :  { %v1208_v63 = vpop.permute.xlu0 %1207  ;;  %v1427_v4 = vpop.xlane.xlu1 %1426 }
 0x496   :  { %v1213_v7 = vsel %vm634_vm3, %v1208_v63, 0  ;;  %3705 = vrcp.f32 %v1427_v4 }
 0x499   :  { %v1320_v9 = vpop.permute.xlu1 %1319  ;;  %v1432_v3 = vpop.permute.xlu0 %1431 }
 0x49a   :  { %v1325_v59 = vsel %vm634_vm3, %v1320_v9, 0  ;;  %v1437_v16 = vsel %vm634_vm3, %v1432_v3, 0 }
 0x49b   :  { %v3700_v61 = vpop.eup %3699 }
 0x49c   :  { %v1094_v62 = vmul.f32 %v3700_v61, %v3686_v29 }
 0x49e   :  { %v1095_v1 = vpack.c.bf16 %v1094_v62, %v1094_v62 }
 0x49f   :  { %v3702_v2 = vpop.eup %3701 }
 0x4a0   :  { %3367 = vmatmul.mubr.msk.bf16.vlgmr.msra.gmra.mxu0 %vm570_vm2, %v1095_v1  ;;  %v1205_v8 = vmul.f32 %v3702_v2, %v4566_v31  ;;  %v3704_v11 = vpop.eup %3703 }
 0x4a1   :  { %3377 = vmatpush3.bf16.msra.mxu0 %v1213_v7  ;;  %3378 = vmatprep.mubr.msk.bf16.mxu0 %vm4207_vm0, %v4206_v0  ;;  %v1317_v13 = vmul.f32 %v3704_v11, %v4569_v32 }
 0x4a2   :  { %3388 = vmatprep.subr.bf16.mxu0 %v4206_v0  ;;  %v1206_v10 = vpack.c.bf16 %v1205_v8, %v1205_v8 }
 0x4a3   :  { %v1318_v14 = vpack.c.bf16 %v1317_v13, %v1317_v13  ;;  %v3706_v12 = vpop.eup %3705 }
 0x4a4   :  { %v1429_v18 = vmul.f32 %v3706_v12, %v4575_v35 }
 0x4a6   :  { %v1430_v22 = vpack.c.bf16 %v1429_v18, %v1429_v18 }
 0x4a8   :  { %3379 = vmatmul.mubr.msk.bf16.vlgmr.msra.gmra.mxu0 %vm570_vm2, %v1206_v10 }
 0x4a9   :  { %3389 = vmatpush3.bf16.msra.mxu0 %v1325_v59  ;;  %3390 = vmatprep.mubr.msk.bf16.mxu0 %vm4207_vm0, %v4206_v0  ;;  %v3138_v59 = vld [vmem:[#allocation16] ss:$0 sm:$0xff] }
 0x4aa   :  { %3400 = vmatprep.subr.bf16.mxu0 %v4206_v0 }
 0x4ae   :  { %v4614_v15 = vpop.f32.mrf.mxu0 }
 0x4b0   :  { %3391 = vmatmul.mubr.msk.bf16.vlgmr.msra.gmra.mxu0 %vm570_vm2, %v1318_v14  ;;  %v3320_v17 = vpop.f32.mrf.mxu0 }
 0x4b1   :  { %3401 = vmatpush3.bf16.msra.mxu0 %v1437_v16  ;;  %3402 = vmatprep.mubr.msk.bf16.mxu0 %vm4207_vm0, %v4206_v0 }
 0x4b2   :  { %3414 = vmatprep.subr.bf16.mxu0 %v4206_v0  ;;  %v675_v19 = vpop.f32.mrf.mxu0 }
 0x4b4   :  { %v3321_v21 = vpop.f32.mrf.mxu0 }
 0x4b8   :  { %3403 = vmatmul.mubr.msk.bf16.vlgmr.msra.gmra.mxu0 %vm570_vm2, %v1430_v22 }
 0x4b9   :  { %3418 = vmatprep.mubr.msk.bf16.mxu0 %vm4207_vm0, %v4206_v0 }
 0x525   :  { %v787_v23 = vpop.f32.mrf.mxu0 }
 0x527   :  { %v3332_v24 = vpop.f32.mrf.mxu0 }
 0x529   :  { %v790_v25 = vpop.f32.mrf.mxu0 }
 0x52b   :  { %v3333_v26 = vpop.f32.mrf.mxu0 }
 0x52d   :  { %v899_v27 = vpop.f32.mrf.mxu0 }
 0x52f   :  { %v3344_v28 = vpop.f32.mrf.mxu0 }
 0x531   :  { %v902_v20 = vpop.f32.mrf.mxu0 }
 0x533   :  { %v3345_v29 = vpop.f32.mrf.mxu0 }
 0x535   :  { %v1011_v31 = vpop.f32.mrf.mxu0 }
 0x537   :  { %v3356_v30 = vpop.f32.mrf.mxu0 }
 0x538   :  { %v362_v30 = vld [vmem:[%s4914_s26] sm:$0xff] }
 0x539   :  { %v1014_v32 = vpop.f32.mrf.mxu0 }
 0x53a   :  { %v363_v32 = vld [vmem:[%s4914_s26 + $0x8] sm:$0xff] }
 0x53b   :  { %v3357_v33 = vpop.f32.mrf.mxu0 }
 0x53c   :  { %v1677_v33 = vpack.c.bf16 %v363_v32, %v362_v30 }
 0x560   :  { %v1137_v34 = vpop.f32.mrf.mxu0 }
 0x562   :  { %v3368_v35 = vpop.f32.mrf.mxu0 }
 0x563   :  { %v3664_v35 = vld [vmem:[#allocation20] sm:$0xff]  }
 0x564   :  { %v1140_v36 = vpop.f32.mrf.mxu0 }
 0x566   :  { %v3369_v37 = vpop.f32.mrf.mxu0 }
 0x568   :  { %v1249_v38 = vpop.f32.mrf.mxu0 }
 0x569   :  { %v3623_v40 = vpack.i.bf16 %v1249_v38, %v787_v23 }
 0x56a   :  { %v3380_v41 = vpop.f32.mrf.mxu0 }
 0x56b   :  { %3624 = vrot.lane.b32.xlu0 %v3623_v40, %s4187_s2 }
 0x56c   :  { %v1252_v42 = vpop.f32.mrf.mxu0 }
 0x56e   :  { %v3381_v43 = vpop.f32.mrf.mxu0 }
 0x570   :  { %v1361_v45 = vpop.f32.mrf.mxu0 }
 0x571   :  { %v3628_v46 = vpack.i.bf16 %v1361_v45, %v899_v27 }
 0x572   :  { %v3392_v47 = vpop.f32.mrf.mxu0 }
 0x573   :  { %3629 = vrot.lane.b32.xlu1 %v3628_v46, %s4211_s22 }
 0x574   :  { %v1364_v48 = vpop.f32.mrf.mxu0 }
 0x575   :  { %v3143_v48 = vld [vmem:[#allocation19] ss:$0 sm:$0xff] }
 0x576   :  { %v3393_v49 = vpop.f32.mrf.mxu0 }
 0x578   :  { %v1473_v50 = vpop.f32.mrf.mxu0 }
 0x579   :  { %v3633_v51 = vpack.i.bf16 %v1473_v50, %v1011_v31  ;;  %v3662_v31 = vld [vmem:[#allocation23] sm:$0xff]  }
 0x57a   :  { %v3404_v52 = vpop.f32.mrf.mxu0 }
 0x57b   :  { %3634 = vrot.lane.b32.xlu0 %v3633_v51, %s4212_s23 }
 0x57c   :  { %v1476_v53 = vpop.f32.mrf.mxu0 }
 0x57d   :  { %v3148_v53 = vld [vmem:[#allocation25] ss:$0 sm:$0xff] }
 0x57e   :  { %v3405_v54 = vpop.f32.mrf.mxu0 }
 0x5dd   :  { %v3625_v55 = vpop.permute.xlu0 %3624 }
 0x5de   :  { %v3627_v57 = vunpack.i.h.bf16 %v3625_v55  ;;  %v3626_v58 = vunpack.i.l.bf16 %v3625_v55 }
 0x5e0   :  { %v1491_v63 = vsel %vm570_vm2, %v1137_v34, %v3627_v57  ;;  %v1029_v1 = vsel %vm570_vm2, %v4614_v15, %v3626_v58  ;;  %v3663_v34 = vld [vmem:[#allocation20 + $0x8] sm:$0xff]  }
 0x5e1   :  { %3415 = vmatpush3.bf16.msra.mxu0 %v3663_v34  ;;  %v366_v34 = vld [vmem:[#allocation2] sm:$0xff] }
 0x5e2   :  { %3416 = vmatprep.subr.bf16.mxu0 %v4206_v0 }
 0x5e5   :  { %v3630_v56 = vpop.permute.xlu1 %3629  ;;  %3417 = vmatpush3.bf16.msra.mxu0 %v3664_v35 }
 0x5e6   :  { %v3632_v60 = vunpack.i.h.bf16 %v3630_v56  ;;  %v3631_v61 = vunpack.i.l.bf16 %v3630_v56  ;;  %3430 = vmatprep.subr.bf16.mxu0 %v4206_v0 }
 0x5e8   :  { %v1492_v7 = vsel %vm1030_vm4, %v1491_v63, %v3632_v60  ;;  %v1031_v8 = vsel %vm1030_vm4, %v1029_v1, %v3631_v61  ;;  %v3144_v1 = vld [vmem:[#allocation22] ss:$0 sm:$0xff] }
 0x5ed   :  { %v3635_v62 = vpop.permute.xlu0 %3634 }
 0x5ee   :  { %v3637_v2 = vunpack.i.h.bf16 %v3635_v62  ;;  %v3636_v4 = vunpack.i.l.bf16 %v3635_v62 }
 0x5f0   :  { %v1493_v9 = vsel %vm1032_vm5, %v1492_v7, %v3637_v2  ;;  %v1033_v10 = vsel %vm1032_vm5, %v1031_v8, %v3636_v4 }
 0x5f1   :  { %v1494_v11 = vpack.c.bf16 %v1493_v9, %v1033_v10 }
 0x5f3   :  { %3411 = vmatmul.mubr.msk.bf16.vlgmr.msra.gmra.mxu1 %vm394_vm1, %v1494_v11 }
 0x5f4   :  { %3426 = vmatprep.mubr.msk.bf16.mxu1 %vm4207_vm0, %v4206_v0 }
 0x6b3   :  { %v1555_v13 = vpop.f32.mrf.mxu1 }
 0x6b4   :  { %v1556_v3 = vadd.f32 %v3138_v59, %v1555_v13 }
 0x6b5   :  { %v3412_v14 = vpop.f32.mrf.mxu1 }
 0x6b6   :  { %v1562_v12 = vadd.f32 %v1556_v3, %v4436_v5  ;;  %v3665_v14 = vld [vmem:[#allocation26 + $0x8] sm:$0xff]  }
 0x6b7   :  { %v1558_v15 = vpop.f32.mrf.mxu1 }
 0x6b8   :  { %v1559_v16 = vadd.f32 %v3138_v59, %v1558_v15  ;;  %v1564_v17 = vsel %vm394_vm1, %v1562_v12, 0.0  ;;  %v364_v15 = vld [vmem:[%s4915_s20] sm:$0xff] }
 0x6b9   :  { %1565 = vadd.xlane.f32.xlu1 %v1564_v17  ;;  %v3413_v18 = vpop.f32.mrf.mxu1 }
 0x6ba   :  { %v1563_v19 = vadd.f32 %v1559_v16, %v4439_v6  ;;  %v3661_v6 = vld [vmem:[#allocation23 + $0x8] sm:$0xff]   ;;  %v365_v16 = vld [vmem:[%s4915_s20 + $0x8] sm:$0xff] }
 0x6bb   :  { %3423 = vmatpush3.bf16.msra.mxu1 %v3661_v6  ;;  %v1745_v17 = vpack.c.bf16 %v365_v16, %v364_v15 }
 0x6bc   :  { %v1567_v21 = vsel %vm394_vm1, %v1563_v19, 0.0  ;;  %3424 = vmatprep.subr.bf16.mxu1 %v4206_v0 }
 0x6bd   :  { %1568 = vadd.xlane.f32.xlu0 %v1567_v21 }
 0x6bf   :  { %3425 = vmatpush3.bf16.msra.mxu1 %v3662_v31 }
 0x6c0   :  { %3438 = vmatprep.subr.bf16.mxu1 %v4206_v0 }
 0x6c2   :  { %3427 = vmatmul.mubr.msk.bf16.vlgmr.msra.gmra.mxu1 %vm394_vm1, %v1677_v33 }
 0x6c3   :  { %3440 = vmatprep.mubr.msk.bf16.mxu1 %vm4207_vm0, %v4206_v0 }
 0x742   :  { %v1566_v22 = vpop.xlane.xlu1 %1565 }
 0x743   :  { %v1571_v23 = vmul.f32 0.03125, %v1566_v22 }
 0x745   :  { %v1573_v24 = vsub.f32 %v1562_v12, %v1571_v23  ;;  %v3666_v12 = vld [vmem:[#allocation26] sm:$0xff]  }
 0x746   :  { %v1569_v25 = vpop.xlane.xlu0 %1568 }
 0x747   :  { %v1572_v26 = vmul.f32 0.03125, %v1569_v25  ;;  %v1575_v27 = vmul.f32 %v1573_v24, %v1573_v24 }
 0x749   :  { %v1574_v5 = vsub.f32 %v1563_v19, %v1572_v26  ;;  %v1577_v28 = vsel %vm394_vm1, %v1575_v27, 0.0 }
 0x74a   :  { %1578 = vadd.xlane.f32.xlu0 %v1577_v28 }
 0x74b   :  { %v1576_v20 = vmul.f32 %v1574_v5, %v1574_v5 }
 0x74d   :  { %v1580_v29 = vsel %vm394_vm1, %v1576_v20, 0.0 }
 0x74e   :  { %1581 = vadd.xlane.f32.xlu1 %v1580_v29 }
 0x782   :  { %v1738_v54 = vpop.f32.mrf.mxu1 }
 0x783   :  { %v1739_v56 = vadd.f32 %v3148_v53, %v1738_v54  ;;  %v3152_v54 = vld [vmem:[%s4916_s19] ss:$0 sm:$0xff] }
 0x784   :  { %v3428_v55 = vpop.f32.mrf.mxu1 }
 0x786   :  { %v1741_v57 = vpop.f32.mrf.mxu1 }
 0x787   :  { %v1742_v58 = vadd.f32 %v3148_v53, %v1741_v57 }
 0x788   :  { %v3429_v60 = vpop.f32.mrf.mxu1 }
 0x789   :  { %v1814_v61 = vpack.c.bf16 %v1742_v58, %v1739_v56 }
 0x78b   :  { %1926 = vrot.lane.b32.xlu0 %v1814_v61, %s4209_s6  ;;  %v1820_v62 = vsel %vm570_vm2, %v1814_v61, 0  ;;  %v2277_v3 = vrot.slane %v1814_v61, 4 }
 0x78c   :  { %3439 = vmatpush3.bf16.xpose.msra.mxu1 %v1820_v62 }
 0x78d   :  { %3450 = vmatprep.subr.bf16.mxu1 %v4206_v0  ;;  %v2282_v26 = vsel %vm570_vm2, %v2277_v3, 0 }
 0x7d3   :  { %v1579_v36 = vpop.xlane.xlu0 %1578 }
 0x7d4   :  { %v1583_v37 = vmul.f32 0.03125, %v1579_v36 }
 0x7d6   :  { %v1585_v38 = vadd.f32 32.0, %v1583_v37 }
 0x7d7   :  { %v1582_v39 = vpop.xlane.xlu1 %1581 }
 0x7d8   :  { %3707 = vrsqrt.f32 %v1585_v38  ;;  %v1584_v40 = vmul.f32 0.03125, %v1582_v39 }
 0x7da   :  { %v1586_v41 = vadd.f32 32.0, %v1584_v40 }
 0x7dc   :  { %3709 = vrsqrt.f32 %v1586_v41 }
 0x7e5   :  { %v3708_v42 = vpop.eup %3707 }
 0x7e6   :  { %v1589_v43 = vmul.f32 %v3708_v42, %v1573_v24 }
 0x7e8   :  { %v1598_v47 = vmul.f32 %v3142_v44, %v1589_v43 }
 0x7e9   :  { %v3710_v45 = vpop.eup %3709 }
 0x7ea   :  { %v1590_v46 = vmul.f32 %v3710_v45, %v1574_v5  ;;  %v4655_v50 = vadd.f32 %v3143_v48, %v1598_v47 }
 0x7ec   :  { %v1599_v49 = vmul.f32 %v3142_v44, %v1590_v46 }
 0x7ee   :  { %v4657_v51 = vadd.f32 %v3143_v48, %v1599_v49 }
 0x7f0   :  { %v1609_v52 = vpack.c.bf16 %v4657_v51, %v4655_v50 }
 0x7f2   :  { %3419 = vmatmul.mubr.msk.bf16.vlgmr.msra.gmra.mxu0 %vm394_vm1, %v1609_v52 }
 0x7f3   :  { %3434 = vmatprep.mubr.msk.bf16.mxu0 %vm4207_vm0, %v4206_v0  ;;  %3431 = vmatpush3.bf16.msra.mxu0 %v3665_v14  ;;  %v367_v14 = vld [vmem:[#allocation2 + $0x8] sm:$0xff] }
 0x7f4   :  { %3432 = vmatprep.subr.bf16.mxu0 %v4206_v0 }
 0x7f7   :  { %3433 = vmatpush3.bf16.msra.mxu0 %v3666_v12 }
 0x7f8   :  { %3444 = vmatprep.subr.bf16.mxu0 %v4206_v0 }
 0x7fa   :  { %3435 = vmatmul.mubr.msk.bf16.vlgmr.msra.gmra.mxu0 %vm394_vm1, %v1745_v17 }
 0x7fb   :  { %3446 = vmatprep.mubr.msk.bf16.mxu0 %vm4207_vm0, %v4206_v0 }
 0x7fd   :  { %v1927_v9 = vpop.permute.xlu0 %1926 }
 0x7fe   :  { %v1932_v59 = vsel %vm570_vm2, %v1927_v9, 0 }
 0x8b2   :  { %v1670_v63 = vpop.f32.mrf.mxu0 }
 0x8b3   :  { %v1671_v7 = vadd.f32 %v3144_v1, %v1670_v63 }
 0x8b4   :  { %v3420_v2 = vpop.f32.mrf.mxu0 }
 0x8b6   :  { %v1673_v4 = vpop.f32.mrf.mxu0 }
 0x8b7   :  { %v1674_v8 = vadd.f32 %v3144_v1, %v1673_v4 }
 0x8b8   :  { %v3421_v10 = vpop.f32.mrf.mxu0 }
 0x8b9   :  { %v1813_v11 = vpack.c.bf16 %v1674_v8, %v1671_v7 }
 0x8ba   :  { %v1806_v41 = vpop.f32.mrf.mxu0 }
 0x8bb   :  { %2037 = vrot.lane.b32.xlu0 %v1813_v11, %s4208_s28  ;;  %1923 = vrot.lane.b32.xlu1 %v1813_v11, %s4209_s6  ;;  %v2276_v13 = vrot.slane %v1813_v11, 4  ;;  %v1807_v58 = vadd.f32 %v3152_v54, %v1806_v41 }
 0x8bc   :  { %3441 = vmatmul.mubr.msk.bf16.vlgmr.msra.gmra.mxu1 %vm570_vm2, %v1813_v11  ;;  %v3436_v42 = vpop.f32.mrf.mxu0 }
 0x8bd   :  { %3451 = vmatpush3.bf16.xpose.msra.mxu1 %v1932_v59  ;;  %3452 = vmatprep.mubr.msk.bf16.mxu1 %vm4207_vm0, %v4206_v0 }
 0x8be   :  { %3462 = vmatprep.subr.bf16.mxu1 %v4206_v0  ;;  %v1809_v43 = vpop.f32.mrf.mxu0 }
 0x8bf   :  { %2149 = vrot.lane.b32.xlu0 %v1813_v11, %s4210_s21  ;;  %2039 = vrot.lane.b32.xlu1 %v1814_v61, %s4208_s28  ;;  %v1810_v60 = vadd.f32 %v3152_v54, %v1809_v43 }
 0x8c0   :  { %v3437_v44 = vpop.f32.mrf.mxu0 }
 0x8c1   :  { %v4733_v2 = vpack.c.bf16 %v1810_v60, %v1807_v58 }
 0x8c3   :  { %2151 = vrot.lane.b32.xlu1 %v1814_v61, %s4210_s21  ;;  %2385 = vrot.lane.b32.xlu0 %v2276_v13, %s4209_s6  ;;  %v1880_v7 = vsel %vm634_vm3, %v4733_v2, 0 }
 0x8c4   :  { %3445 = vmatpush3.bf16.msra.mxu0 %v1880_v7 }
 0x8c5   :  { %3456 = vmatprep.subr.bf16.mxu0 %v4206_v0 }
 0x8c7   :  { %2387 = vrot.lane.b32.xlu1 %v2277_v3, %s4209_s6  ;;  %2497 = vrot.lane.b32.xlu0 %v2276_v13, %s4208_s28 }
 0x8cb   :  { %2499 = vrot.lane.b32.xlu1 %v2277_v3, %s4208_s28  ;;  %2609 = vrot.lane.b32.xlu0 %v2276_v13, %s4210_s21 }
 0x8cf   :  { %2611 = vrot.lane.b32.xlu1 %v2277_v3, %s4210_s21 }
 0x92d   :  { %v1924_v18 = vpop.permute.xlu1 %1923  ;;  %v2038_v23 = vpop.permute.xlu0 %2037 }
 0x92e   :  { %3453 = vmatmul.mubr.msk.bf16.vlgmr.msra.gmra.mxu1 %vm570_vm2, %v1924_v18 }
 0x92f   :  { %3464 = vmatprep.mubr.msk.bf16.mxu1 %vm4207_vm0, %v4206_v0 }
 0x931   :  { %v2040_v19 = vpop.permute.xlu1 %2039  ;;  %v2150_v25 = vpop.permute.xlu0 %2149 }
 0x932   :  { %v2045_v21 = vsel %vm570_vm2, %v2040_v19, 0 }
 0x933   :  { %3463 = vmatpush3.bf16.xpose.msra.mxu1 %v2045_v21 }
 0x934   :  { %3474 = vmatprep.subr.bf16.mxu1 %v4206_v0 }
 0x935   :  { %v2152_v22 = vpop.permute.xlu1 %2151  ;;  %v2386_v20 = vpop.permute.xlu0 %2385 }
 0x936   :  { %v2157_v24 = vsel %vm570_vm2, %v2152_v22, 0 }
 0x939   :  { %v2388_v27 = vpop.permute.xlu1 %2387  ;;  %v2498_v31 = vpop.permute.xlu0 %2497 }
 0x93a   :  { %3465 = vmatmul.mubr.msk.bf16.vlgmr.msra.gmra.mxu1 %vm570_vm2, %v2038_v23  ;;  %v2393_v5 = vsel %vm570_vm2, %v2388_v27, 0 }
 0x93b   :  { %3475 = vmatpush3.bf16.xpose.msra.mxu1 %v2157_v24  ;;  %3476 = vmatprep.mubr.msk.bf16.mxu1 %vm4207_vm0, %v4206_v0 }
 0x93c   :  { %3486 = vmatprep.subr.bf16.mxu1 %v4206_v0 }
 0x93d   :  { %v2500_v28 = vpop.permute.xlu1 %2499  ;;  %v2610_v32 = vpop.permute.xlu0 %2609 }
 0x93e   :  { %v2505_v29 = vsel %vm570_vm2, %v2500_v28, 0 }
 0x941   :  { %v2612_v6 = vpop.permute.xlu1 %2611 }
 0x942   :  { %3477 = vmatmul.mubr.msk.bf16.vlgmr.msra.gmra.mxu1 %vm570_vm2, %v2150_v25  ;;  %v2617_v30 = vsel %vm570_vm2, %v2612_v6, 0 }
 0x943   :  { %3487 = vmatpush3.bf16.xpose.msra.mxu1 %v2282_v26  ;;  %3488 = vmatprep.mubr.msk.bf16.mxu1 %vm4207_vm0, %v4206_v0 }
 0x944   :  { %3498 = vmatprep.subr.bf16.mxu1 %v4206_v0 }
 0x94a   :  { %3489 = vmatmul.mubr.msk.bf16.vlgmr.msra.gmra.mxu1 %vm570_vm2, %v2276_v13 }
 0x94b   :  { %3499 = vmatpush3.bf16.xpose.msra.mxu1 %v2393_v5  ;;  %3500 = vmatprep.mubr.msk.bf16.mxu1 %vm4207_vm0, %v4206_v0 }
 0x94c   :  { %3510 = vmatprep.subr.bf16.mxu1 %v4206_v0 }
 0x952   :  { %3501 = vmatmul.mubr.msk.bf16.vlgmr.msra.gmra.mxu1 %vm570_vm2, %v2386_v20 }
 0x953   :  { %3511 = vmatpush3.bf16.xpose.msra.mxu1 %v2505_v29  ;;  %3512 = vmatprep.mubr.msk.bf16.mxu1 %vm4207_vm0, %v4206_v0 }
 0x954   :  { %3522 = vmatprep.subr.bf16.mxu1 %v4206_v0 }
 0x95a   :  { %3513 = vmatmul.mubr.msk.bf16.vlgmr.msra.gmra.mxu1 %vm570_vm2, %v2498_v31 }
 0x95b   :  { %3523 = vmatpush3.bf16.xpose.msra.mxu1 %v2617_v30  ;;  %3524 = vmatprep.mubr.msk.bf16.mxu1 %vm4207_vm0, %v4206_v0 }
 0x95c   :  { %3534 = vmatprep.subr.bf16.mxu1 %v4206_v0 }
 0x962   :  { %3525 = vmatmul.mubr.msk.bf16.vlgmr.msra.gmra.mxu1 %vm570_vm2, %v2610_v32 }
 0x963   :  { %3538 = vmatprep.mubr.msk.bf16.mxu1 %vm4207_vm0, %v4206_v0 }
 0x97c   :  { %v1856_v33 = vpop.f32.mrf.mxu1 }
 0x97d   :  { %v1862_v35 = vmul.f32 0.35355338, %v1856_v33 }
 0x97e   :  { %v3442_v36 = vpop.f32.mrf.mxu1 }
 0x97f   :  { %v1863_v37 = vadd.f32 %v1862_v35, %v366_v34 }
 0x980   :  { %v1859_v38 = vpop.f32.mrf.mxu1 }
 0x981   :  { %v1864_v39 = vsel %vm570_vm2, %v1863_v37, -inf }
 0x982   :  { %1865 = vmax.xlane.f32.xlu1 %v1864_v39  ;;  %v3443_v40 = vpop.f32.mrf.mxu1 }
 0x9ee   :  { %v1968_v45 = vpop.f32.mrf.mxu1 }
 0x9ef   :  { %v1974_v46 = vmul.f32 0.35355338, %v1968_v45 }
 0x9f0   :  { %v3454_v47 = vpop.f32.mrf.mxu1 }
 0x9f1   :  { %v4724_v48 = vadd.f32 %v1974_v46, %v366_v34 }
 0x9f2   :  { %v1971_v49 = vpop.f32.mrf.mxu1 }
 0x9f3   :  { %v1976_v52 = vsel %vm570_vm2, %v4724_v48, -inf }
 0x9f4   :  { %1977 = vmax.xlane.f32.xlu0 %v1976_v52  ;;  %v3455_v53 = vpop.f32.mrf.mxu1 }
 0x9fa   :  { %v2081_v55 = vpop.f32.mrf.mxu1 }
 0x9fb   :  { %v2087_v56 = vmul.f32 0.35355338, %v2081_v55 }
 0x9fc   :  { %v3466_v57 = vpop.f32.mrf.mxu1 }
 0x9fd   :  { %v4729_v61 = vadd.f32 %v2087_v56, %v366_v34 }
 0x9fe   :  { %v2084_v62 = vpop.f32.mrf.mxu1 }
 0x9ff   :  { %v2089_v63 = vsel %vm570_vm2, %v4729_v61, -inf }
 0xa00   :  { %2090 = vmax.xlane.f32.xlu0 %v2089_v63  ;;  %v3467_v1 = vpop.f32.mrf.mxu1 }
 0xa02   :  { %v2193_v4 = vpop.f32.mrf.mxu1 }
 0xa03   :  { %v2199_v8 = vmul.f32 0.35355338, %v2193_v4 }
 0xa04   :  { %v3478_v9 = vpop.f32.mrf.mxu1 }
 0xa05   :  { %v2200_v10 = vadd.f32 %v2199_v8, %v366_v34 }
 0xa06   :  { %v2196_v11 = vpop.f32.mrf.mxu1 }
 0xa07   :  { %v2201_v59 = vsel %vm570_vm2, %v2200_v10, -inf  ;;  %v4773_v11 = vrot.slane %v4733_v2, 4 }
 0xa08   :  { %2202 = vmax.xlane.f32.xlu1 %v2201_v59  ;;  %v3479_v13 = vpop.f32.mrf.mxu1 }
 0xa0a   :  { %v2318_v3 = vpop.f32.mrf.mxu1 }
 0xa0b   :  { %v1866_v12 = vpop.xlane.xlu1 %1865  ;;  %v2324_v15 = vmul.f32 0.35355338, %v2318_v3 }
 0xa0c   :  { %v1867_v16 = vsub.f32 %v1863_v37, %v1866_v12  ;;  %v3490_v17 = vpop.f32.mrf.mxu1 }
 0xa0d   :  { %v2325_v18 = vadd.f32 %v2324_v15, %v367_v14 }
 0xa0e   :  { %v2321_v19 = vpop.f32.mrf.mxu1  ;;  %v1868_v21 = vmul.f32 1.442695, %v1867_v16 }
 0xa0f   :  { %v2326_v22 = vsel %vm570_vm2, %v2325_v18, -inf }
 0xa10   :  { %2327 = vmax.xlane.f32.xlu0 %v2326_v22  ;;  %v3491_v23 = vpop.f32.mrf.mxu1  ;;  %3711 = vpow2.f32 %v1868_v21 }
 0xa12   :  { %v2429_v24 = vpop.f32.mrf.mxu1 }
 0xa13   :  { %v2435_v25 = vmul.f32 0.35355338, %v2429_v24 }
 0xa14   :  { %v3502_v26 = vpop.f32.mrf.mxu1 }
 0xa15   :  { %v4740_v27 = vadd.f32 %v2435_v25, %v367_v14 }
 0xa16   :  { %v2432_v5 = vpop.f32.mrf.mxu1 }
 0xa17   :  { %v2437_v28 = vsel %vm570_vm2, %v4740_v27, -inf }
 0xa18   :  { %2438 = vmax.xlane.f32.xlu1 %v2437_v28  ;;  %v3503_v20 = vpop.f32.mrf.mxu1 }
 0xa1a   :  { %v2541_v29 = vpop.f32.mrf.mxu1 }
 0xa1b   :  { %v2547_v6 = vmul.f32 0.35355338, %v2541_v29 }
 0xa1c   :  { %v3514_v31 = vpop.f32.mrf.mxu1 }
 0xa1d   :  { %v4744_v30 = vadd.f32 %v2547_v6, %v367_v14  ;;  %v3712_v34 = vpop.eup %3711 }
 0xa1e   :  { %v2544_v32 = vpop.f32.mrf.mxu1  ;;  %v1870_v38 = vsel %vm570_vm2, %v3712_v34, 0.0 }
 0xa1f   :  { %v2549_v33 = vsel %vm570_vm2, %v4744_v30, -inf }
 0xa20   :  { %2550 = vmax.xlane.f32.xlu0 %v2549_v33  ;;  %v3515_v35 = vpop.f32.mrf.mxu1 }
 0xa22   :  { %v2653_v36 = vpop.f32.mrf.mxu1 }
 0xa23   :  { %v2659_v37 = vmul.f32 0.35355338, %v2653_v36 }
 0xa24   :  { %1871 = vadd.xlane.f32.xlu0 %v1870_v38  ;;  %v3526_v39 = vpop.f32.mrf.mxu1 }
 0xa25   :  { %v2660_v40 = vadd.f32 %v2659_v37, %v367_v14 }
 0xa26   :  { %v2656_v41 = vpop.f32.mrf.mxu1 }
 0xa27   :  { %v2661_v42 = vsel %vm570_vm2, %v2660_v40, -inf }
 0xa28   :  { %2662 = vmax.xlane.f32.xlu1 %v2661_v42  ;;  %v3527_v43 = vpop.f32.mrf.mxu1  ;;  %v2343_v42 = vsel %vm634_vm3, %v4773_v11, 0 }
 0xa39   :  { %1989 = vrot.lane.b32.xlu1 %v4733_v2, %s4209_s6 }
 0xa3a   :  { %2101 = vrot.lane.b32.xlu0 %v4733_v2, %s4208_s28 }
 0xa7d   :  { %v1978_v44 = vpop.xlane.xlu0 %1977 }
 0xa7e   :  { %v1979_v45 = vsub.f32 %v4724_v48, %v1978_v44 }
 0xa80   :  { %v1980_v46 = vmul.f32 1.442695, %v1979_v45 }
 0xa82   :  { %3713 = vpow2.f32 %v1980_v46 }
 0xa89   :  { %v2091_v47 = vpop.xlane.xlu0 %2090 }
 0xa8a   :  { %v2092_v49 = vsub.f32 %v4729_v61, %v2091_v47 }
 0xa8c   :  { %v2093_v52 = vmul.f32 1.442695, %v2092_v49 }
 0xa8e   :  { %3715 = vpow2.f32 %v2093_v52 }
 0xa8f   :  { %v4756_v53 = vpop.eup %3713 }
 0xa90   :  { %v1982_v54 = vsel %vm570_vm2, %v4756_v53, 0.0 }
 0xa91   :  { %v2203_v55 = vpop.xlane.xlu1 %2202  ;;  %1983 = vadd.xlane.f32.xlu1 %v1982_v54 }
 0xa92   :  { %v2204_v56 = vsub.f32 %v2200_v10, %v2203_v55 }
 0xa94   :  { %v2205_v57 = vmul.f32 1.442695, %v2204_v56 }
 0xa96   :  { %3717 = vpow2.f32 %v2205_v57 }
 0xa99   :  { %v2328_v58 = vpop.xlane.xlu0 %2327 }
 0xa9a   :  { %v2329_v60 = vsub.f32 %v2325_v18, %v2328_v58 }
 0xa9b   :  { %v4760_v48 = vpop.eup %3715 }
 0xa9c   :  { %v2330_v62 = vmul.f32 1.442695, %v2329_v60  ;;  %v2095_v61 = vsel %vm570_vm2, %v4760_v48, 0.0 }
 0xa9d   :  { %2096 = vadd.xlane.f32.xlu0 %v2095_v61 }
 0xa9e   :  { %3719 = vpow2.f32 %v2330_v62 }
 0xaa1   :  { %v2439_v10 = vpop.xlane.xlu1 %2438 }
 0xaa2   :  { %v2440_v18 = vsub.f32 %v4740_v27, %v2439_v10 }
 0xaa3   :  { %v4764_v63 = vpop.eup %3717 }
 0xaa4   :  { %v2207_v1 = vsel %vm570_vm2, %v4764_v63, 0.0  ;;  %v2441_v19 = vmul.f32 1.442695, %v2440_v18 }
 0xaa5   :  { %2208 = vadd.xlane.f32.xlu1 %v2207_v1 }
 0xaa9   :  { %v2551_v4 = vpop.xlane.xlu0 %2550 }
 0xaaa   :  { %v2552_v16 = vsub.f32 %v4744_v30, %v2551_v4 }
 0xaab   :  { %v4768_v7 = vpop.eup %3719 }
 0xaac   :  { %v2332_v8 = vsel %vm570_vm2, %v4768_v7, 0.0  ;;  %v2553_v17 = vmul.f32 1.442695, %v2552_v16 }
 0xaad   :  { %v1872_v9 = vpop.xlane.xlu0 %1871  ;;  %2333 = vadd.xlane.f32.xlu0 %v2332_v8 }
 0xaae   :  { %3721 = vrcp.f32 %v1872_v9 }
 0xaaf   :  { %3723 = vpow2.f32 %v2553_v17 }
 0xab0   :  { %3725 = vpow2.f32 %v2441_v19 }
 0xab1   :  { %v2663_v59 = vpop.xlane.xlu1 %2662  ;;  %v2102_v28 = vpop.permute.xlu0 %2101 }
 0xab2   :  { %v2664_v21 = vsub.f32 %v2660_v40, %v2663_v59  ;;  %v2107_v30 = vsel %vm634_vm3, %v2102_v28, 0 }
 0xab4   :  { %v2665_v22 = vmul.f32 1.442695, %v2664_v21 }
 0xab5   :  { %v1990_v3 = vpop.permute.xlu1 %1989 }
 0xab6   :  { %2449 = vrot.lane.b32.xlu1 %v4773_v11, %s4209_s6  ;;  %v1995_v15 = vsel %vm634_vm3, %v1990_v3, 0  ;;  %3727 = vpow2.f32 %v2665_v22 }
 0xabb   :  { %v3722_v13 = vpop.eup %3721 }
 0xabc   :  { %v1874_v14 = vmul.f32 %v3722_v13, %v3712_v34  ;;  %v4786_v23 = vpop.eup %3723 }
 0xabd   :  { %v2555_v24 = vsel %vm570_vm2, %v4786_v23, 0.0  ;;  %v3726_v25 = vpop.eup %3725 }
 0xabe   :  { %v1875_v12 = vpack.c.bf16 %v1874_v14, %v1874_v14 }
 0xac0   :  { %3447 = vmatmul.mubr.msk.bf16.vlgmr.msra.gmra.mxu0 %vm570_vm2, %v1875_v12 }
 0xac1   :  { %3457 = vmatpush3.bf16.msra.mxu0 %v1995_v15  ;;  %3458 = vmatprep.mubr.msk.bf16.mxu0 %vm4207_vm0, %v4206_v0 }
 0xac2   :  { %3468 = vmatprep.subr.bf16.mxu0 %v4206_v0 }
 0xac3   :  { %2213 = vrot.lane.b32.xlu0 %v4733_v2, %s4210_s21  ;;  %v2443_v2 = vsel %vm570_vm2, %v3726_v25, 0.0  ;;  %v4791_v26 = vpop.eup %3727 }
 0xac4   :  { %v2667_v27 = vsel %vm570_vm2, %v4791_v26, 0.0 }
 0xada   :  { %2556 = vadd.xlane.f32.xlu1 %v2555_v24 }
 0xae2   :  { %2444 = vadd.xlane.f32.xlu0 %v2443_v2 }
 0xae6   :  { %2668 = vadd.xlane.f32.xlu0 %v2667_v27  ;;  %v3667_v27 = vld [vmem:[#allocation28 + $0x8] sm:$0xff]  }
 0xae7   :  { %3535 = vmatpush3.bf16.msra.mxu1 %v3667_v27 }
 0xae8   :  { %3536 = vmatprep.subr.bf16.mxu1 %v4206_v0 }
 0xaeb   :  { %2673 = vrot.lane.b32.xlu1 %v4773_v11, %s4210_s21 }
 0xafc   :  { %2561 = vrot.lane.b32.xlu0 %v4773_v11, %s4208_s28 }
 0xb1a   :  { %v1984_v5 = vpop.xlane.xlu1 %1983 }
 0xb1b   :  { %3729 = vrcp.f32 %v1984_v5 }
 0xb26   :  { %v2097_v20 = vpop.xlane.xlu0 %2096 }
 0xb27   :  { %3731 = vrcp.f32 %v2097_v20 }
 0xb28   :  { %v3730_v29 = vpop.eup %3729 }
 0xb29   :  { %v1986_v6 = vmul.f32 %v3730_v29, %v4756_v53 }
 0xb2b   :  { %v1987_v31 = vpack.c.bf16 %v1986_v6, %v1986_v6  ;;  %v3668_v6 = vld [vmem:[#allocation28] sm:$0xff]  }
 0xb2c   :  { %3537 = vmatpush3.bf16.msra.mxu1 %v3668_v6  ;;  %v3177_v6 = vld [vmem:[%s4920_s8] ss:$0 sm:$0xff] }
 0xb2d   :  { %3459 = vmatmul.mubr.msk.bf16.vlgmr.msra.gmra.mxu0 %vm570_vm2, %v1987_v31  ;;  %3550 = vmatprep.subr.bf16.mxu1 %v4206_v0 }
 0xb2e   :  { %3469 = vmatpush3.bf16.msra.mxu0 %v2107_v30  ;;  %v2209_v32 = vpop.xlane.xlu1 %2208  ;;  %3470 = vmatprep.mubr.msk.bf16.mxu0 %vm4207_vm0, %v4206_v0 }
 0xb2f   :  { %3733 = vrcp.f32 %v2209_v32  ;;  %3480 = vmatprep.subr.bf16.mxu0 %v4206_v0 }
 0xb32   :  { %v2450_v45 = vpop.permute.xlu1 %2449 }
 0xb33   :  { %v2455_v47 = vsel %vm634_vm3, %v2450_v45, 0 }
 0xb34   :  { %v3732_v33 = vpop.eup %3731 }
 0xb35   :  { %v2099_v34 = vmul.f32 %v3732_v33, %v4760_v48 }
 0xb36   :  { %v2334_v35 = vpop.xlane.xlu0 %2333 }
 0xb37   :  { %3735 = vrcp.f32 %v2334_v35  ;;  %v2100_v36 = vpack.c.bf16 %v2099_v34, %v2099_v34 }
 0xb39   :  { %3471 = vmatmul.mubr.msk.bf16.vlgmr.msra.gmra.mxu0 %vm570_vm2, %v2100_v36 }
 0xb3a   :  { %v2214_v37 = vpop.permute.xlu0 %2213  ;;  %3482 = vmatprep.mubr.msk.bf16.mxu0 %vm4207_vm0, %v4206_v0 }
 0xb3b   :  { %v2219_v38 = vsel %vm634_vm3, %v2214_v37, 0 }
 0xb3c   :  { %v3734_v39 = vpop.eup %3733  ;;  %3481 = vmatpush3.bf16.msra.mxu0 %v2219_v38 }
 0xb3d   :  { %3492 = vmatprep.subr.bf16.mxu0 %v4206_v0  ;;  %v2211_v40 = vmul.f32 %v3734_v39, %v4764_v63 }
 0xb3f   :  { %v2212_v41 = vpack.c.bf16 %v2211_v40, %v2211_v40 }
 0xb41   :  { %3483 = vmatmul.mubr.msk.bf16.vlgmr.msra.gmra.mxu0 %vm570_vm2, %v2212_v41 }
 0xb42   :  { %3493 = vmatpush3.bf16.msra.mxu0 %v2343_v42  ;;  %3494 = vmatprep.mubr.msk.bf16.mxu0 %vm4207_vm0, %v4206_v0 }
 0xb43   :  { %3504 = vmatprep.subr.bf16.mxu0 %v4206_v0 }
 0xb44   :  { %v3736_v43 = vpop.eup %3735 }
 0xb45   :  { %v2336_v44 = vmul.f32 %v3736_v43, %v4768_v7 }
 0xb47   :  { %v2337_v46 = vpack.c.bf16 %v2336_v44, %v2336_v44 }
 0xb49   :  { %3495 = vmatmul.mubr.msk.bf16.vlgmr.msra.gmra.mxu0 %vm570_vm2, %v2337_v46 }
 0xb4a   :  { %3505 = vmatpush3.bf16.msra.mxu0 %v2455_v47  ;;  %3506 = vmatprep.mubr.msk.bf16.mxu0 %vm4207_vm0, %v4206_v0 }
 0xb4b   :  { %3516 = vmatprep.subr.bf16.mxu0 %v4206_v0 }
 0xb63   :  { %v2557_v52 = vpop.xlane.xlu1 %2556 }
 0xb67   :  { %v2674_v61 = vpop.permute.xlu1 %2673 }
 0xb68   :  { %v2679_v8 = vsel %vm634_vm3, %v2674_v61, 0 }
 0xb6b   :  { %v2445_v49 = vpop.xlane.xlu0 %2444 }
 0xb6c   :  { %3737 = vrcp.f32 %v2445_v49 }
 0xb6d   :  { %3739 = vrcp.f32 %v2557_v52 }
 0xb6f   :  { %v2669_v53 = vpop.xlane.xlu0 %2668 }
 0xb70   :  { %3741 = vrcp.f32 %v2669_v53 }
 0xb73   :  { %v2562_v56 = vpop.permute.xlu0 %2561 }
 0xb74   :  { %v2567_v60 = vsel %vm634_vm3, %v2562_v56, 0 }
 0xb79   :  { %v3738_v54 = vpop.eup %3737 }
 0xb7a   :  { %v2447_v55 = vmul.f32 %v3738_v54, %v3726_v25  ;;  %v3740_v58 = vpop.eup %3739 }
 0xb7b   :  { %v2559_v48 = vmul.f32 %v3740_v58, %v4786_v23 }
 0xb7c   :  { %v2448_v57 = vpack.c.bf16 %v2447_v55, %v2447_v55 }
 0xb7d   :  { %v2560_v1 = vpack.c.bf16 %v2559_v48, %v2559_v48  ;;  %v3742_v4 = vpop.eup %3741 }
 0xb7e   :  { %3507 = vmatmul.mubr.msk.bf16.vlgmr.msra.gmra.mxu0 %vm570_vm2, %v2448_v57  ;;  %v2671_v10 = vmul.f32 %v3742_v4, %v4791_v26 }
 0xb7f   :  { %3517 = vmatpush3.bf16.msra.mxu0 %v2567_v60  ;;  %3518 = vmatprep.mubr.msk.bf16.mxu0 %vm4207_vm0, %v4206_v0  ;;  %v3172_v60 = vld [vmem:[%s4917_s4] ss:$0 sm:$0xff] }
 0xb80   :  { %3528 = vmatprep.subr.bf16.mxu0 %v4206_v0  ;;  %v4830_v62 = vpop.f32.mrf.mxu0  ;;  %v2672_v11 = vpack.c.bf16 %v2671_v10, %v2671_v10 }
 0xb82   :  { %v3448_v63 = vpop.f32.mrf.mxu0 }
 0xb84   :  { %v1919_v7 = vpop.f32.mrf.mxu0 }
 0xb86   :  { %3519 = vmatmul.mubr.msk.bf16.vlgmr.msra.gmra.mxu0 %vm570_vm2, %v2560_v1  ;;  %v3449_v9 = vpop.f32.mrf.mxu0 }
 0xb87   :  { %3529 = vmatpush3.bf16.msra.mxu0 %v2679_v8  ;;  %3530 = vmatprep.mubr.msk.bf16.mxu0 %vm4207_vm0, %v4206_v0 }
 0xb88   :  { %3542 = vmatprep.subr.bf16.mxu0 %v4206_v0 }
 0xb8e   :  { %3531 = vmatmul.mubr.msk.bf16.vlgmr.msra.gmra.mxu0 %vm570_vm2, %v2672_v11 }
 0xb8f   :  { %3546 = vmatprep.mubr.msk.bf16.mxu0 %vm4207_vm0, %v4206_v0 }
 0xbed   :  { %v2031_v59 = vpop.f32.mrf.mxu0 }
 0xbef   :  { %v3460_v13 = vpop.f32.mrf.mxu0 }
 0xbf1   :  { %v2034_v3 = vpop.f32.mrf.mxu0 }
 0xbf3   :  { %v3461_v14 = vpop.f32.mrf.mxu0 }
 0xbf9   :  { %v2143_v12 = vpop.f32.mrf.mxu0 }
 0xbfb   :  { %v3472_v15 = vpop.f32.mrf.mxu0 }
 0xbfd   :  { %v2146_v16 = vpop.f32.mrf.mxu0 }
 0xbff   :  { %v3473_v17 = vpop.f32.mrf.mxu0 }
 0xc01   :  { %v2255_v18 = vpop.f32.mrf.mxu0 }
 0xc03   :  { %v3484_v19 = vpop.f32.mrf.mxu0 }
 0xc04   :  { %v3671_v19 = vld [vmem:[%s4918_s30 + $0x18] sm:$0xff]  }
 0xc05   :  { %v2258_v21 = vpop.f32.mrf.mxu0 }
 0xc07   :  { %v3485_v22 = vpop.f32.mrf.mxu0 }
 0xc09   :  { %v2379_v23 = vpop.f32.mrf.mxu0 }
 0xc0b   :  { %v3496_v24 = vpop.f32.mrf.mxu0 }
 0xc0d   :  { %v2382_v25 = vpop.f32.mrf.mxu0 }
 0xc0f   :  { %v3497_v2 = vpop.f32.mrf.mxu0 }
 0xc3e   :  { %v2491_v26 = vpop.f32.mrf.mxu0 }
 0xc3f   :  { %v3638_v5 = vpack.i.bf16 %v2491_v26, %v2031_v59 }
 0xc40   :  { %v3508_v28 = vpop.f32.mrf.mxu0 }
 0xc41   :  { %3639 = vrot.lane.b32.xlu1 %v3638_v5, %s4187_s2  ;;  %v3176_v5 = vld [vmem:[%s4919_s1] ss:$0 sm:$0xff] }
 0xc42   :  { %v2494_v20 = vpop.f32.mrf.mxu0 }
 0xc44   :  { %v3509_v29 = vpop.f32.mrf.mxu0 }
 0xc46   :  { %v2603_v31 = vpop.f32.mrf.mxu0 }
 0xc47   :  { %v3643_v30 = vpack.i.bf16 %v2603_v31, %v2143_v12 }
 0xc48   :  { %v3520_v32 = vpop.f32.mrf.mxu0 }
 0xc49   :  { %3644 = vrot.lane.b32.xlu1 %v3643_v30, %s4211_s22 }
 0xc4a   :  { %v2606_v33 = vpop.f32.mrf.mxu0 }
 0xc4c   :  { %v3521_v34 = vpop.f32.mrf.mxu0 }
 0xc4d   :  { %v3672_v34 = vld [vmem:[%s4918_s30 + $0x10] sm:$0xff]  }
 0xc4e   :  { %v2715_v35 = vpop.f32.mrf.mxu0 }
 0xc4f   :  { %v3648_v36 = vpack.i.bf16 %v2715_v35, %v2255_v18  ;;  %v3669_v18 = vld [vmem:[#allocation29 + $0x8] sm:$0xff]  }
 0xc50   :  { %v3532_v37 = vpop.f32.mrf.mxu0  ;;  %3543 = vmatpush3.bf16.msra.mxu0 %v3669_v18  ;;  %v3673_v35 = vld [vmem:[%s4918_s30 + $0x8] sm:$0xff]  }
 0xc51   :  { %3649 = vrot.lane.b32.xlu1 %v3648_v36, %s4212_s23  ;;  %3544 = vmatprep.subr.bf16.mxu0 %v4206_v0  ;;  %v3674_v36 = vld [vmem:[%s4918_s30] sm:$0xff]  }
 0xc52   :  { %v2718_v38 = vpop.f32.mrf.mxu0  ;;  %v3178_v37 = vld [vmem:[%s4921_s7] ss:$0 sm:$0xff] }
 0xc54   :  { %v3533_v39 = vpop.f32.mrf.mxu0 }
 0xcb3   :  { %v3640_v40 = vpop.permute.xlu1 %3639 }
 0xcb4   :  { %v3642_v42 = vunpack.i.h.bf16 %v3640_v40  ;;  %v3641_v43 = vunpack.i.l.bf16 %v3640_v40 }
 0xcb6   :  { %v2733_v47 = vsel %vm570_vm2, %v2379_v23, %v3642_v42  ;;  %v2273_v49 = vsel %vm570_vm2, %v4830_v62, %v3641_v43 }
 0xcbb   :  { %v3645_v41 = vpop.permute.xlu1 %3644 }
 0xcbc   :  { %v3647_v44 = vunpack.i.h.bf16 %v3645_v41  ;;  %v3646_v45 = vunpack.i.l.bf16 %v3645_v41 }
 0xcbe   :  { %v2734_v54 = vsel %vm1030_vm4, %v2733_v47, %v3647_v44  ;;  %v2274_v55 = vsel %vm1030_vm4, %v2273_v49, %v3646_v45  ;;  %v3182_v47 = vld [vmem:[%s4362_s14] ss:$0 sm:$0xff]  ;;  %s4213_s14 = smov [#allocation31]  }
 0xcbf   :  { %s3058_s10 = sshll.u32 %s4213_s14, 4  ;;  %s3059_s10 = int_to_ptr.vmem [resolvable:$true] %s3058_s10 }
 0xcc0   :  { %s4111_s9 = scalar_lea.vmem %s3059_s10, 256  ;;  %p4116_p7 = scmp.lt.s32.totalorder %s3059_s10, %s3059_s10 }
 0xcc1   :  { %p4112_p6 = scmp.ne.s32.totalorder %s3059_s10, %s4111_s9  ;;  %p4117_p8 = scmp.lt.s32.totalorder %s4111_s9, %s4111_s9 }
 0xcc3   :  { %v3650_v46 = vpop.permute.xlu1 %3649  ;;  %p4118_p9 = por %p4117_p8, %p4116_p7 }
 0xcc4   :  { %v3652_v52 = vunpack.i.h.bf16 %v3650_v46  ;;  %v3651_v53 = vunpack.i.l.bf16 %v3650_v46 }
 0xcc5   :  { %p4119_p10 = pnand %p4118_p9, %p4112_p6 }
 0xcc6   :  { %v2735_v56 = vsel %vm1032_vm5, %v2734_v54, %v3652_v52  ;;  %v2275_v57 = vsel %vm1032_vm5, %v2274_v55, %v3651_v53 }
 0xcc7   :  { %v2736_v58 = vpack.c.bf16 %v2735_v56, %v2275_v57 }
 0xcc9   :  { %3539 = vmatmul.mubr.msk.bf16.vlgmr.msra.gmra.mxu1 %vm394_vm1, %v2736_v58 }
 0xcca   :  { %3558 = vmatprep.mubr.msk.bf16.mxu1 %vm4207_vm0, %v4206_v0  ;;  %3551 = vmatpush3.bf16.msra.mxu1 %v3671_v19 }
 0xccb   :  { %3552 = vmatprep.subr.bf16.mxu1 %v4206_v0 }
 0xcce   :  { %3553 = vmatpush3.bf16.msra.mxu1 %v3672_v34 }
 0xccf   :  { %3554 = vmatprep.subr.bf16.mxu1 %v4206_v0 }
 0xcd2   :  { %3555 = vmatpush3.bf16.msra.mxu1 %v3673_v35 }
 0xcd3   :  { %3556 = vmatprep.subr.bf16.mxu1 %v4206_v0 }
 0xcd6   :  { %3557 = vmatpush3.bf16.msra.mxu1 %v3674_v36 }
 0xd89   :  { %v2797_v48 = vpop.f32.mrf.mxu1 }
 0xd8a   :  { %v2798_v61 = vadd.f32 %v3172_v60, %v2797_v48 }
 0xd8b   :  { %v3540_v62 = vpop.f32.mrf.mxu1 }
 0xd8c   :  { %v2804_v63 = vadd.f32 %v2798_v61, %v4655_v50 }
 0xd8d   :  { %v2800_v1 = vpop.f32.mrf.mxu1 }
 0xd8e   :  { %v2801_v4 = vadd.f32 %v3172_v60, %v2800_v1  ;;  %v2806_v7 = vsel %vm394_vm1, %v2804_v63, 0.0 }
 0xd8f   :  { %2807 = vadd.xlane.f32.xlu0 %v2806_v7  ;;  %v3541_v8 = vpop.f32.mrf.mxu1 }
 0xd90   :  { %v2805_v9 = vadd.f32 %v2801_v4, %v4657_v51  ;;  %v3670_v51 = vld [vmem:[#allocation29] sm:$0xff]  }
 0xd91   :  { %3545 = vmatpush3.bf16.msra.mxu0 %v3670_v51 }
 0xd92   :  { %v2809_v10 = vsel %vm394_vm1, %v2805_v9, 0.0 }
 0xd93   :  { %2810 = vadd.xlane.f32.xlu1 %v2809_v10 }
 0xe18   :  { %v2808_v11 = vpop.xlane.xlu0 %2807 }
 0xe19   :  { %v2812_v59 = vmul.f32 0.03125, %v2808_v11 }
 0xe1b   :  { %v2814_v13 = vsub.f32 %v2804_v63, %v2812_v59 }
 0xe1c   :  { %v2811_v3 = vpop.xlane.xlu1 %2810 }
 0xe1d   :  { %v2813_v14 = vmul.f32 0.03125, %v2811_v3  ;;  %v2816_v12 = vmul.f32 %v2814_v13, %v2814_v13 }
 0xe1f   :  { %v2815_v15 = vsub.f32 %v2805_v9, %v2813_v14  ;;  %v2818_v50 = vsel %vm394_vm1, %v2816_v12, 0.0 }
 0xe20   :  { %2819 = vadd.xlane.f32.xlu0 %v2818_v50  ;;  %v3188_v50 = vld [vmem:[%s4367_s5] ss:$0 sm:$0xff] }
 0xe21   :  { %v2817_v16 = vmul.f32 %v2815_v15, %v2815_v15 }
 0xe23   :  { %v2821_v17 = vsel %vm394_vm1, %v2817_v16, 0.0 }
 0xe24   :  { %2822 = vadd.xlane.f32.xlu0 %v2821_v17  ;;  %v3189_v17 = vld [vmem:[%s4372_s13] ss:$0 sm:$0xff] }
 0xea9   :  { %v2820_v21 = vpop.xlane.xlu0 %2819 }
 0xeaa   :  { %v2824_v22 = vmul.f32 0.03125, %v2820_v21 }
 0xeac   :  { %v2826_v23 = vadd.f32 32.0, %v2824_v22 }
 0xead   :  { %v2823_v24 = vpop.xlane.xlu0 %2822 }
 0xeae   :  { %3743 = vrsqrt.f32 %v2826_v23  ;;  %v2825_v25 = vmul.f32 0.03125, %v2823_v24 }
 0xeb0   :  { %v2827_v2 = vadd.f32 32.0, %v2825_v25 }
 0xeb2   :  { %3745 = vrsqrt.f32 %v2827_v2 }
 0xebb   :  { %v3744_v26 = vpop.eup %3743 }
 0xebc   :  { %v2830_v27 = vmul.f32 %v3744_v26, %v2814_v13 }
 0xebe   :  { %v2839_v29 = vmul.f32 %v3176_v5, %v2830_v27 }
 0xebf   :  { %v3746_v28 = vpop.eup %3745 }
 0xec0   :  { %v2831_v20 = vmul.f32 %v3746_v28, %v2815_v15  ;;  %v2848_v30 = vadd.f32 %v3177_v6, %v2839_v29 }
 0xec2   :  { %v2840_v31 = vmul.f32 %v3176_v5, %v2831_v20 }
 0xec4   :  { %v2849_v32 = vadd.f32 %v3177_v6, %v2840_v31 }
 0xec6   :  { %v2850_v33 = vpack.c.bf16 %v2849_v32, %v2848_v30 }
 0xec8   :  { %3547 = vmatmul.mubr.msk.bf16.vlgmr.msra.gmra.mxu0 %vm394_vm1, %v2850_v33 }
 0xf88   :  { %v2911_v38 = vpop.f32.mrf.mxu0 }
 0xf89   :  { %v2912_v40 = vadd.f32 %v3178_v37, %v2911_v38 }
 0xf8a   :  { %v3548_v39 = vpop.f32.mrf.mxu0 }
 0xf8b   :  { %v2918_v44 = vmax.f32 %v2912_v40, 0.0 }
 0xf8c   :  { %v2914_v41 = vpop.f32.mrf.mxu0 }
 0xf8d   :  { %v2915_v42 = vadd.f32 %v3178_v37, %v2914_v41 }
 0xf8e   :  { %v3549_v43 = vpop.f32.mrf.mxu0 }
 0xf8f   :  { %v2919_v45 = vmax.f32 %v2915_v42, 0.0 }
 0xf91   :  { %v2920_v46 = vpack.c.bf16 %v2919_v45, %v2918_v44 }
 0xf93   :  { %3559 = vmatmul.mubr.msk.bf16.vlgmr.msra.gmra.mxu1 %vm2960_vm6, %v2920_v46 }
0x1053   :  { %v2998_v49 = vpop.f32.mrf.mxu1 }
0x1054   :  { %v2999_v52 = vadd.f32 %v3182_v47, %v2998_v49 }
0x1055   :  { %v3560_v53 = vpop.f32.mrf.mxu1 }
0x1056   :  { %v3005_v54 = vadd.f32 %v2999_v52, %v2848_v30 }
0x1057   :  { %v3001_v0 = vpop.f32.mrf.mxu1 }
0x1058   :  { %v3002_v55 = vadd.f32 %v3182_v47, %v3001_v0  ;;  %v3007_v56 = vsel %vm394_vm1, %v3005_v54, 0.0 }
0x1059   :  { %3008 = vadd.xlane.f32.xlu1 %v3007_v56  ;;  %v3561_v57 = vpop.f32.mrf.mxu1 }
0x105a   :  { %v3006_v58 = vadd.f32 %v3002_v55, %v2849_v32 }
0x105c   :  { %v3010_v60 = vsel %vm394_vm1, %v3006_v58, 0.0 }
0x105d   :  { %3011 = vadd.xlane.f32.xlu0 %v3010_v60 }
0x10e2   :  { %v3009_v48 = vpop.xlane.xlu1 %3008 }
0x10e3   :  { %v3013_v61 = vmul.f32 0.03125, %v3009_v48 }
0x10e5   :  { %v3015_v62 = vsub.f32 %v3005_v54, %v3013_v61 }
0x10e6   :  { %v3012_v63 = vpop.xlane.xlu0 %3011 }
0x10e7   :  { %v3014_v1 = vmul.f32 0.03125, %v3012_v63  ;;  %v3017_v4 = vmul.f32 %v3015_v62, %v3015_v62 }
0x10e9   :  { %v3016_v7 = vsub.f32 %v3006_v58, %v3014_v1  ;;  %v3019_v8 = vsel %vm394_vm1, %v3017_v4, 0.0 }
0x10ea   :  { %3020 = vadd.xlane.f32.xlu1 %v3019_v8 }
0x10eb   :  { %v3018_v9 = vmul.f32 %v3016_v7, %v3016_v7 }
0x10ed   :  { %v3022_v10 = vsel %vm394_vm1, %v3018_v9, 0.0 }
0x10ee   :  { %3023 = vadd.xlane.f32.xlu0 %v3022_v10 }
0x1173   :  { %v3021_v11 = vpop.xlane.xlu1 %3020 }
0x1174   :  { %v3025_v59 = vmul.f32 0.03125, %v3021_v11 }
0x1176   :  { %v3027_v13 = vadd.f32 32.0, %v3025_v59 }
0x1177   :  { %v3024_v3 = vpop.xlane.xlu0 %3023 }
0x1178   :  { %3747 = vrsqrt.f32 %v3027_v13  ;;  %v3026_v14 = vmul.f32 0.03125, %v3024_v3 }
0x117a   :  { %v3028_v12 = vadd.f32 32.0, %v3026_v14 }
0x117c   :  { %3749 = vrsqrt.f32 %v3028_v12 }
0x1185   :  { %v3748_v15 = vpop.eup %3747 }
0x1186   :  { %v3031_v16 = vmul.f32 %v3748_v15, %v3015_v62 }
0x1188   :  { %v3040_v18 = vmul.f32 %v3188_v50, %v3031_v16 }
0x1189   :  { %v3750_v51 = vpop.eup %3749 }
0x118a   :  { %v3032_v19 = vmul.f32 %v3750_v51, %v3016_v7  ;;  %v3049_v21 = vadd.f32 %v3189_v17, %v3040_v18 }
0x118c   :  { %v3041_v22 = vmul.f32 %v3188_v50, %v3032_v19  ;;  %3051 = vst.msk [vmem:[#allocation31] sm:$0xff] %vm394_vm1, %v3049_v21 }
0x118e   :  { %v3050_v23 = vadd.f32 %v3189_v17, %v3041_v22 }
0x1190   :  { %3052 = vst.msk [vmem:[#allocation31 + $0x8] sm:$0xff] %vm394_vm1, %v3050_v23 }
0x1191   :  { %4122 = shalt.err (!%p4119_p10)
}
0x1192   :  { %3064 = dma.vmem_to_hbm [thread:$0]  %s3059_s10, 256, %s4377_s27, [#allocation4], %s4186_s0, %s4186_s0, %s4187_s2  }
0x1193   :  { %4151 = dma.done.wait [#allocation4], 256  }
0x1194   :  { %4152 = vsyncadd [#allocation4], 4294967040 }
0x1195   :  { %3068 = vsyncpa [#allocation3], 1 }
0x1196   :  { %3069 = vsyncpa [#allocation6], 1 }
0x1197   :  { %3070 = vsyncpa [#allocation9], 1 }
0x1198   :  { %3071 = vsyncpa [#allocation12], 1 }
0x1199   :  { %3072 = vsyncpa [#allocation15], 1 }
0x119a   :  { %3073 = vsyncpa [#allocation18], 1 }
0x119b   :  { %3074 = vsyncpa [#allocation21], 1 }
0x119c   :  { %3075 = vsyncpa [#allocation24], 1 }
0x119d   :  { %3076 = vsyncpa [#allocation27], 1 }
0x119e   :  { %3077 = vsyncpa [#allocation30], 1 }
0x119f   :  { %3078 = vsyncpa [#allocation4], 1 }

</bundles_post_ra>
